<compile_context>
chip_gen: v5e
topology: v5e:2x2
jax: 0.10.0
libtpu: 0.0.40
codegen_flags: <defaults>
</compile_context>

<pallas_src>
import jax
import jax.numpy as jnp
from jax.experimental import pallas as pl
from jax.experimental.pallas import tpu as pltpu

N_SCALE = 1.0  # self.n in the module


def _round_up(x, m):
    return ((x + m - 1) // m) * m


def _ff_kernel(a_ref, b_ref, b3_ref,            # SMEM scalars
               xT_ref,                          # (input_size, tile_m) VMEM
               w1_ref, b1_ref,                  # (hidden, input_size), (hidden, 1)
               w2_ref, b2_ref,                  # (hidden, hidden),     (hidden, 1)
               w3_ref,                          # (hidden, 1)
               o_ref):                          # (1, tile_m)
    # Hoist scalar scales once (no per-intermediate re-broadcast).
    sa = N_SCALE * a_ref[0]
    sb = N_SCALE * b_ref[0]
    b3 = b3_ref[0]

    xT = xT_ref[...]            # (input_size, tile_m), batch on lanes
    w1 = w1_ref[...]            # (hidden, input_size)
    input_size = xT.shape[0]    # static

    # ---- Layer 1: tiny K -> pure VPU outer-product FMA (no MXU) ----------
    pre1 = w1[:, 0:1] * xT[0:1, :]                       # (hidden, tile_m)
    for k in range(1, input_size):
        pre1 = pre1 + w1[:, k:k + 1] * xT[k:k + 1, :]
    pre1 = pre1 + b1_ref[...]                            # bias broadcast over lanes
    h1 = sa * jax.nn.sigmoid(pre1)                       # full-lane EUP/VPU work

    # ---- Layer 2: hidden x hidden on the MXU, f32 accumulation -----------
    pre2 = jnp.dot(w2_ref[...], h1,
                   preferred_element_type=jnp.float32) + b2_ref[...]
    h2 = sb * jax.nn.sigmoid(pre2)                       # (hidden, tile_m)

    # ---- Layer 3: N = 1 -> VPU multiply + sublane reduce (lane-dense out)
    out_row = jnp.sum(w3_ref[...] * h2, axis=0, keepdims=True) + b3
    o_ref[...] = out_row.astype(o_ref.dtype)             # (1, tile_m) unmasked store


def feedforward_pallas(x, params, *, tile_m=8192):
    """x: [batch, input_size] float32. params: torch-layout weights/biases/a/b."""
    batch, input_size = x.shape
    hidden = params["w1"].shape[0]

    # Lane-dense tiling: batch maps to lanes, so tile_m must be a multiple of 128.
    tile_m = max(128, min(int(tile_m), _round_up(batch, 128)))
    tile_m = _round_up(tile_m, 128)
    padded = _round_up(batch, tile_m)

    x_p = x if padded == batch else jnp.pad(x, ((0, padded - batch), (0, 0)))
    xT = x_p.T                                            # (input_size, padded)

    w1 = params["w1"]                                     # (hidden, input_size)
    b1c = params["b1"].reshape(hidden, 1)
    w2 = params["w2"]                                     # (hidden, hidden)
    b2c = params["b2"].reshape(hidden, 1)
    w3c = params["w3"].reshape(hidden, 1)                 # column vector
    b3 = params["b3"].reshape(1)
    a = params["a"].reshape(1)
    b = params["b"].reshape(1)

    grid = (padded // tile_m,)

    outT = pl.pallas_call(
        _ff_kernel,
        out_shape=jax.ShapeDtypeStruct((1, padded), jnp.float32),
        grid_spec=pltpu.PrefetchScalarGridSpec(
            num_scalar_prefetch=0,
            grid=grid,
            in_specs=[
                # adaptive scales + final bias live in SMEM (scalars)
                pl.BlockSpec(memory_space=pltpu.SMEM),                    # a
                pl.BlockSpec(memory_space=pltpu.SMEM),                    # b
                pl.BlockSpec(memory_space=pltpu.SMEM),                    # b3
                # x (transposed): tiled over the batch/lane axis
                pl.BlockSpec((input_size, tile_m), lambda i: (0, i)),
                # weights / biases: full arrays, block index constant across steps
                pl.BlockSpec((hidden, input_size), lambda i: (0, 0)),     # w1
                pl.BlockSpec((hidden, 1), lambda i: (0, 0)),              # b1
                pl.BlockSpec((hidden, hidden), lambda i: (0, 0)),         # w2
                pl.BlockSpec((hidden, 1), lambda i: (0, 0)),              # b2
                pl.BlockSpec((hidden, 1), lambda i: (0, 0)),              # w3
            ],
            out_specs=pl.BlockSpec((1, tile_m), lambda i: (0, i)),
        ),
        compiler_params=pltpu.CompilerParams(
            dimension_semantics=("parallel",)),           # megacore sharding on v7x
    )(a, b, b3, xT, w1, b1c, w2, b2c, w3c)

    return outT.reshape(padded, 1)[:batch]


def init_params(input_size, hidden_size, key):
    """Deterministic synthetic parameters in torch.nn.Linear layout ([out, in])."""
    k1, k2, k3, k4, k5, k6 = jax.random.split(key, 6)
    return {
        "w1": (jax.random.normal(k1, (hidden_size, input_size)) * 0.1).astype(jnp.float32),
        "b1": (jax.random.normal(k2, (hidden_size,)) * 0.1).astype(jnp.float32),
        "w2": (jax.random.normal(k3, (hidden_size, hidden_size)) * 0.1).astype(jnp.float32),
        "b2": (jax.random.normal(k4, (hidden_size,)) * 0.1).astype(jnp.float32),
        "w3": (jax.random.normal(k5, (1, hidden_size)) * 0.1).astype(jnp.float32),
        "b3": (jax.random.normal(k6, (1,)) * 0.1).astype(jnp.float32),
        # a = ones(1)/n, b = ones(1)/n  (n = 1.0)
        "a": jnp.ones((1,), jnp.float32) / N_SCALE,
        "b": jnp.ones((1,), jnp.float32) / N_SCALE,
    }


def feedforward_ref(x, p):
    h = x @ p["w1"].T + p["b1"]
    h = N_SCALE * p["a"][0] * jax.nn.sigmoid(h)
    h2 = h @ p["w2"].T + p["b2"]
    h2 = N_SCALE * p["b"][0] * jax.nn.sigmoid(h2)
    return h2 @ p["w3"].T + p["b3"]


if __name__ == "__main__":
    # 1D wave-equation PINN: input is (x, t) -> input_size = 2.
    input_size, hidden_size = 2, 32
    batch = 4096               # collocation points; tile_m=2048 -> 2 parallel grid steps

    key = jax.random.PRNGKey(0)
    kx, kp = jax.random.split(key)
    x = jax.random.uniform(kx, (batch, input_size), dtype=jnp.float32)
    params = init_params(input_size, hidden_size, kp)

    out = feedforward_pallas(x, params, tile_m=2048)
    out = jax.block_until_ready(out)

    ref = feedforward_ref(x, params)
    assert out.shape == (batch, 1)
    assert jnp.allclose(out, ref, atol=1e-5, rtol=1e-5), (out, ref)
    print("KERNEL_OK")
</pallas_src>

<mosaic_0001>
module attributes {stable_mosaic.version = 11 : i64} {
  func.func @_ff_kernel(%arg0: i32, %arg1: memref<1xf32, #tpu.memory_space<smem>>, %arg2: memref<1xf32, #tpu.memory_space<smem>>, %arg3: memref<1xf32, #tpu.memory_space<smem>>, %arg4: memref<2x2048xf32, #tpu.memory_space<vmem>>, %arg5: memref<32x2xf32, #tpu.memory_space<vmem>>, %arg6: memref<32x1xf32, #tpu.memory_space<vmem>>, %arg7: memref<32x32xf32, #tpu.memory_space<vmem>>, %arg8: memref<32x1xf32, #tpu.memory_space<vmem>>, %arg9: memref<32x1xf32, #tpu.memory_space<vmem>>, %arg10: memref<1x2048xf32, #tpu.memory_space<vmem>>) attributes {dimension_semantics = [#tpu.dimension_semantics<parallel>], iteration_bounds = array<i64: 2>, scalar_prefetch = 0 : i64, scratch_operands = 0 : i64, tpu.core_type = #tpu.core_type<tc>, window_params = [{transform_indices = @transform_0, window_bounds = array<i64: 1>}, {transform_indices = @transform_1, window_bounds = array<i64: 1>}, {transform_indices = @transform_2, window_bounds = array<i64: 1>}, {transform_indices = @transform_3, window_bounds = array<i64: 2, 2048>}, {pipeline_mode = #tpu.pipeline_mode<synchronous>, transform_indices = @transform_4, window_bounds = array<i64: 32, 2>}, {pipeline_mode = #tpu.pipeline_mode<synchronous>, transform_indices = @transform_5, window_bounds = array<i64: 32, 1>}, {pipeline_mode = #tpu.pipeline_mode<synchronous>, transform_indices = @transform_6, window_bounds = array<i64: 32, 32>}, {pipeline_mode = #tpu.pipeline_mode<synchronous>, transform_indices = @transform_7, window_bounds = array<i64: 32, 1>}, {pipeline_mode = #tpu.pipeline_mode<synchronous>, transform_indices = @transform_8, window_bounds = array<i64: 32, 1>}, {transform_indices = @transform_9, window_bounds = array<i64: 1, 2048>}]} {
    %c0 = arith.constant 0 : index
    %0 = memref.load %arg1[%c0] : memref<1xf32, #tpu.memory_space<smem>>
    %cst = arith.constant 1.000000e+00 : f32
    %1 = arith.mulf %cst, %0 : f32
    %c0_0 = arith.constant 0 : index
    %2 = memref.load %arg2[%c0_0] : memref<1xf32, #tpu.memory_space<smem>>
    %cst_1 = arith.constant 1.000000e+00 : f32
    %3 = arith.mulf %cst_1, %2 : f32
    %c0_2 = arith.constant 0 : index
    %4 = memref.load %arg3[%c0_2] : memref<1xf32, #tpu.memory_space<smem>>
    %c0_3 = arith.constant 0 : index
    %c0_4 = arith.constant 0 : index
    %5 = vector.load %arg4[%c0_3, %c0_4] : memref<2x2048xf32, #tpu.memory_space<vmem>>, vector<2x2048xf32>
    %c0_5 = arith.constant 0 : index
    %c0_6 = arith.constant 0 : index
    %6 = vector.load %arg5[%c0_5, %c0_6] : memref<32x2xf32, #tpu.memory_space<vmem>>, vector<32x2xf32>
    %7 = vector.extract_strided_slice %6 {offsets = [0, 0], sizes = [32, 1], strides = [1, 1]} : vector<32x2xf32> to vector<32x1xf32>
    %8 = vector.extract_strided_slice %5 {offsets = [0, 0], sizes = [1, 2048], strides = [1, 1]} : vector<2x2048xf32> to vector<1x2048xf32>
    %9 = vector.broadcast %7 : vector<32x1xf32> to vector<32x2048xf32>
    %10 = vector.broadcast %8 : vector<1x2048xf32> to vector<32x2048xf32>
    %11 = arith.mulf %9, %10 : vector<32x2048xf32>
    %12 = vector.extract_strided_slice %6 {offsets = [0, 1], sizes = [32, 1], strides = [1, 1]} : vector<32x2xf32> to vector<32x1xf32>
    %13 = vector.extract_strided_slice %5 {offsets = [1, 0], sizes = [1, 2048], strides = [1, 1]} : vector<2x2048xf32> to vector<1x2048xf32>
    %14 = vector.broadcast %12 : vector<32x1xf32> to vector<32x2048xf32>
    %15 = vector.broadcast %13 : vector<1x2048xf32> to vector<32x2048xf32>
    %16 = arith.mulf %14, %15 : vector<32x2048xf32>
    %17 = arith.addf %11, %16 : vector<32x2048xf32>
    %c0_7 = arith.constant 0 : index
    %c0_8 = arith.constant 0 : index
    %18 = vector.load %arg6[%c0_7, %c0_8] : memref<32x1xf32, #tpu.memory_space<vmem>>, vector<32x1xf32>
    %19 = vector.broadcast %18 : vector<32x1xf32> to vector<32x2048xf32>
    %20 = arith.addf %17, %19 : vector<32x2048xf32>
    %21 = arith.negf %20 : vector<32x2048xf32>
    %22 = math.exp %21 : vector<32x2048xf32>
    %cst_9 = arith.constant 1.000000e+00 : f32
    %23 = vector.broadcast %cst_9 : f32 to vector<32x2048xf32>
    %24 = arith.addf %23, %22 : vector<32x2048xf32>
    %25 = arith.divf %23, %24 : vector<32x2048xf32>
    %26 = vector.broadcast %1 : f32 to vector<32x2048xf32>
    %27 = arith.mulf %26, %25 : vector<32x2048xf32>
    %c0_10 = arith.constant 0 : index
    %c0_11 = arith.constant 0 : index
    %28 = vector.load %arg7[%c0_10, %c0_11] : memref<32x32xf32, #tpu.memory_space<vmem>>, vector<32x32xf32>
    %cst_12 = arith.constant dense<0.000000e+00> : vector<32x2048xf32>
    %29 = tpu.matmul %28, %27, %cst_12 {dimension_numbers = #tpu.dot_dimension_numbers<[1], [0], [0], [1], [0, 0, 1, 1], [], []>} : vector<32x32xf32>, vector<32x2048xf32>, vector<32x2048xf32> -> vector<32x2048xf32>
    %c0_13 = arith.constant 0 : index
    %c0_14 = arith.constant 0 : index
    %30 = vector.load %arg8[%c0_13, %c0_14] : memref<32x1xf32, #tpu.memory_space<vmem>>, vector<32x1xf32>
    %31 = vector.broadcast %30 : vector<32x1xf32> to vector<32x2048xf32>
    %32 = arith.addf %29, %31 : vector<32x2048xf32>
    %33 = arith.negf %32 : vector<32x2048xf32>
    %34 = math.exp %33 : vector<32x2048xf32>
    %cst_15 = arith.constant 1.000000e+00 : f32
    %35 = vector.broadcast %cst_15 : f32 to vector<32x2048xf32>
    %36 = arith.addf %35, %34 : vector<32x2048xf32>
    %37 = arith.divf %35, %36 : vector<32x2048xf32>
    %38 = vector.broadcast %3 : f32 to vector<32x2048xf32>
    %39 = arith.mulf %38, %37 : vector<32x2048xf32>
    %c0_16 = arith.constant 0 : index
    %c0_17 = arith.constant 0 : index
    %40 = vector.load %arg9[%c0_16, %c0_17] : memref<32x1xf32, #tpu.memory_space<vmem>>, vector<32x1xf32>
    %41 = vector.broadcast %40 : vector<32x1xf32> to vector<32x2048xf32>
    %42 = arith.mulf %41, %39 : vector<32x2048xf32>
    %cst_18 = arith.constant dense<0.000000e+00> : vector<2048xf32>
    %43 = vector.multi_reduction <add>, %42, %cst_18 [0] : vector<32x2048xf32> to vector<2048xf32>
    %44 = vector.shape_cast %43 : vector<2048xf32> to vector<1x2048xf32>
    %45 = vector.broadcast %4 : f32 to vector<1x2048xf32>
    %46 = arith.addf %44, %45 : vector<1x2048xf32>
    %c0_19 = arith.constant 0 : index
    %c0_20 = arith.constant 0 : index
    %47 = vector.load %arg10[%c0_19, %c0_20] : memref<1x2048xf32, #tpu.memory_space<vmem>>, vector<1x2048xf32>
    tpu.vector_store %arg10[%c0_19, %c0_20], %46 {strides = array<i32>} : memref<1x2048xf32, #tpu.memory_space<vmem>>, vector<1x2048xf32>,
    return
  }
  func.func @transform_0(%arg0: i32) -> i32 {
    %c0_i32 = arith.constant 0 : i32
    %c0_i32_0 = arith.constant 0 : i32
    return %c0_i32 : i32
  }
  func.func @transform_1(%arg0: i32) -> i32 {
    %c0_i32 = arith.constant 0 : i32
    %c0_i32_0 = arith.constant 0 : i32
    return %c0_i32 : i32
  }
  func.func @transform_2(%arg0: i32) -> i32 {
    %c0_i32 = arith.constant 0 : i32
    %c0_i32_0 = arith.constant 0 : i32
    return %c0_i32 : i32
  }
  func.func @transform_3(%arg0: i32) -> (i32, i32) {
    %c0_i32 = arith.constant 0 : i32
    %c0_i32_0 = arith.constant 0 : i32
    return %c0_i32, %arg0 : i32, i32
  }
  func.func @transform_4(%arg0: i32) -> (i32, i32) {
    %c0_i32 = arith.constant 0 : i32
    %c0_i32_0 = arith.constant 0 : i32
    %c0_i32_1 = arith.constant 0 : i32
    return %c0_i32, %c0_i32_0 : i32, i32
  }
  func.func @transform_5(%arg0: i32) -> (i32, i32) {
    %c0_i32 = arith.constant 0 : i32
    %c0_i32_0 = arith.constant 0 : i32
    %c0_i32_1 = arith.constant 0 : i32
    return %c0_i32, %c0_i32_0 : i32, i32
  }
  func.func @transform_6(%arg0: i32) -> (i32, i32) {
    %c0_i32 = arith.constant 0 : i32
    %c0_i32_0 = arith.constant 0 : i32
    %c0_i32_1 = arith.constant 0 : i32
    return %c0_i32, %c0_i32_0 : i32, i32
  }
  func.func @transform_7(%arg0: i32) -> (i32, i32) {
    %c0_i32 = arith.constant 0 : i32
    %c0_i32_0 = arith.constant 0 : i32
    %c0_i32_1 = arith.constant 0 : i32
    return %c0_i32, %c0_i32_0 : i32, i32
  }
  func.func @transform_8(%arg0: i32) -> (i32, i32) {
    %c0_i32 = arith.constant 0 : i32
    %c0_i32_0 = arith.constant 0 : i32
    %c0_i32_1 = arith.constant 0 : i32
    return %c0_i32, %c0_i32_0 : i32, i32
  }
  func.func @transform_9(%arg0: i32) -> (i32, i32) {
    %c0_i32 = arith.constant 0 : i32
    %c0_i32_0 = arith.constant 0 : i32
    return %c0_i32, %arg0 : i32, i32
  }
}

</mosaic_0001>

<bundles_post_ra>
// kernel: tpu_custom_call.1
= control target key start
LH: loop header
LB: loop body
LE: loop exit
PB: predicated region body
PF: predicated region fallthrough
CT: control target
= control target key end

     0   :  { %s8364_s0 = inlined_call_operand.<no memory space> [shape: f32[1], index: 0, kind: input, shape index: {}]   ;;  %s8365_s1 = inlined_call_operand.<no memory space> [shape: f32[1], index: 1, kind: input, shape index: {}]   ;;  %s8366_s2 = inlined_call_operand.<no memory space> [shape: f32[1], index: 2, kind: input, shape index: {}]   ;;  %s8367_s3 = inlined_call_operand.vmem [shape: f32[2,4096], index: 3, kind: input, shape index: {}]   ;;  %s8368_s4 = inlined_call_operand.vmem [shape: f32[32,2], index: 4, kind: input, shape index: {}]   ;;  %s8369_s5 = inlined_call_operand.vmem [shape: f32[32,1], index: 5, kind: input, shape index: {}]   ;;  %s8370_s6 = inlined_call_operand.vmem [shape: f32[32,32], index: 6, kind: input, shape index: {}]   ;;  %s8371_s7 = inlined_call_operand.vmem [shape: f32[32,1], index: 7, kind: input, shape index: {}]   ;;  %s8372_s8 = inlined_call_operand.vmem [shape: f32[32,1], index: 8, kind: input, shape index: {}]   ;;  %s8373_s9 = inlined_call_operand.hbm [shape: f32[1,4096], index: 9, kind: output, shape index: {}]  }
   0x1   :  { %14 = sst [smem:[#allocation2]] %s8364_s0 }
   0x2   :  { %15 = sst [smem:[#allocation3]] %s8365_s1 }
   0x3   :  { %16 = sst [smem:[#allocation4]] %s8366_s2 }
   0x4   :  { %17 = vsyncpa [#allocation6], 0 }
   0x5   :  { %19 = vsyncpa [#allocation6 + $0x1], 0  ;;  %s5104_s15 = smov 0   ;;  %s5106_s16 = smov 0  }
   0x6   :  { %s5108_s17 = smov 0   ;;  %s5110_s18 = smov 0  }
   0x7 LB: > { %s4209_s0 = sadd.s32 4294967295, %s5041_s18   ;;  %s4210_s1 = sadd.s32 4294967294, %s5041_s18   ;;  %s5041_s18 = sphi %s5110_s18, %s8642_s18   ;;  %s5037_s17 = sphi %s5108_s17, %s8641_s17   ;;  %s5033_s16 = sphi %s5106_s16, %s8640_s16   ;;  %s5029_s15 = sphi %s5104_s15, %s8639_s15  }
   0x8   : > { %s5127_s2 = sadd.s32 1, %s5041_s18   ;;  %s226_s19 = sadd.s32 1, %s5037_s17 }
   0x9   : > { %s223_s20 = ssub.s32 %s5041_s18, %s5127_s2  ;;  %p236_p0 = scmp.ne.s32.totalorder %s5037_s17, %s5033_s16 }
   0xa   : > { %p224_p1 = scmp.eq.s32.totalorder %s223_s20, 0  ;;  %p237_p2 = scmp.eq.s32.totalorder %s4209_s0, 1 }
   0xb   : > { %p242_p3 = scmp.ne.s32.totalorder %s5033_s16, %s5029_s15  ;;  %p243_p4 = scmp.eq.s32.totalorder %s4210_s1, 1 }
   0xc   : > { %s5139_s21 = scalar_select %p224_p1, %s5037_s17, %s226_s19  }
   0xd   : > { %p5141_p5 = por %p237_p2, %p236_p0  ;;  %p5145_p6 = por %p243_p4, %p242_p3 }
   0xe   : > { %p4213_p7 = scmp.ge.s32.totalorder %s5041_s18, 1  ;;  %p294_p8 = scmp.lt.s32.totalorder %s5041_s18, 3 }
  0x10   : > { %p295_p9 = pnand %p4213_p7, %p294_p8 }
  0x12   : > { %298 = sbr.rel (%p295_p9) target bundleno = 865 (0x361), region = 56 }
  0x17   : > { %v347_v0 = vld [vmem:[%s8368_s4 + $0x18] sm:$0xff]  ;;  %v346_v1 = vld [vmem:[%s8368_s4 + $0x10] sm:$0xff]  ;;  %v345_v2 = vld [vmem:[%s8368_s4 + $0x8] sm:$0xff]  ;;  %v5043_v3 = vmov 0   ;;  %v5044_v4 = vmov 1   ;;  %s5201_s26 = sshll.u32 %s4209_s0, 4 }
  0x18   : > { %4458 = vset.pattern.permute.xlu2 %v5043_v3  ;;  %4456 = vset.pattern.permute.xlu1 %v5043_v3  ;;  %v344_v5 = vld [vmem:[%s8368_s4] sm:$0xff]  ;;  %v679_v6 = vld [vmem:[%s8369_s5 + $0x18] sm:$0xff]  ;;  %v678_v7 = vld [vmem:[%s8369_s5 + $0x10] sm:$0xff]  ;;  %p331_p10 = scmp.lt.s32.totalorder %s5201_s26, 31  ;;  %s5286_s0 = sld [smem:[#allocation2]] }
  0x19   : > { %4454 = vset.pattern.permute.xlu0 %v5043_v3  ;;  %360 = vperm.xlu1 %4456, %v346_v1   ;;  %v676_v8 = vld [vmem:[%s8369_s5] sm:$0xff]  ;;  %v677_v9 = vld [vmem:[%s8369_s5 + $0x8] sm:$0xff]  ;;  %v2051_v13 = vld [vmem:[%s8371_s7 + $0x10] sm:$0xff]  ;;  %s338_s12 = sld [smem:[#allocation3]]  ;;  %s327_s14 = sand.u32 1, %s5033_s16  }
  0x1a   : > { %365 = vperm.xlu0 %4454, %v347_v0   ;;  %355 = vperm.xlu2 %4458, %v345_v2   ;;  %v2049_v10 = vld [vmem:[%s8371_s7] sm:$0xff]  ;;  %v2050_v12 = vld [vmem:[%s8371_s7 + $0x8] sm:$0xff]  ;;  %v3834_v14 = vld [vmem:[%s8372_s8 + $0x18] sm:$0xff]  ;;  %s332_s27 = scalar_select %p331_p10, %s5201_s26, 31 }
  0x1b   : > { %v3831_v11 = vld [vmem:[%s8372_s8] sm:$0xff]  ;;  %v2052_v15 = vld [vmem:[%s8371_s7 + $0x18] sm:$0xff]  ;;  %v3832_v16 = vld [vmem:[%s8372_s8 + $0x8] sm:$0xff]  ;;  %s8300_s13 = sld [smem:[#allocation4]]  ;;  %s4214_s1 = sshll.u32 %s327_s14, 4 }
  0x1c   : > { %v3833_v17 = vld [vmem:[%s8372_s8 + $0x10] sm:$0xff]  ;;  %s4216_s28 = sshll.u32 %s332_s27, 1  ;;  %s4146_s24 = scalar_lea.hbm %s8373_s9, %s5201_s26 }
  0x1d   : > { %s5210_s10 = scalar_lea.vmem %s8367_s3, %s4216_s28  ;;  %s329_s25 = scalar_lea.vmem [#allocation5], %s4214_s1 }
  0x1e   : > { %v340_v19 = vld [vmem:[%s5210_s10] sm:$0xff]  ;;  %s4148_s27 = sshll.u32 %s329_s25, 4  ;;  %s8330_s28 = sshll.u32 %s4146_s24, 4  ;;  %s4149_s27 = int_to_ptr.vmem [resolvable:$true] %s4148_s27  ;;  %s4151_s28 = int_to_ptr.hbm [resolvable:$true] %s8330_s28 }
  0x1f   : > { %v372_v21 = vperm.slane %v340_v19, 0  ;;  %v500_v22 = vperm.slane %v340_v19, 1  ;;  %v373_v23 = vperm.slane %v340_v19, 2  ;;  %v501_v24 = vperm.slane %v340_v19, 3  ;;  %s4136_s26 = scalar_lea.sflag [#allocation6], %s327_s14  ;;  %s4993_s29 = sshra.s32 %s4151_s28, 4  ;;  %s4994_s29 = int_to_ptr.hbm [resolvable:$true] %s4993_s29 }
  0x20   : > { %v374_v25 = vperm.slane %v340_v19, 4  ;;  %v502_v26 = vperm.slane %v340_v19, 5  ;;  %v375_v34 = vperm.slane %v340_v19, 6  ;;  %v503_v35 = vperm.slane %v340_v19, 7  ;;  %s4995_s30 = scalar_lea.hbm %s4994_s29, 16  ;;  %s4999_s11 = scalar_lea.hbm %s8373_s9, 32 }
  0x21   : > { %4457 = vset.pattern.permute.xlu1 %v5044_v4  ;;  %v5215_v27 = vperm.slane %v372_v21, 0  ;;  %v5217_v28 = vperm.slane %v500_v22, 1  ;;  %v5219_v29 = vperm.slane %v373_v23, 0  ;;  %v5221_v30 = vperm.slane %v501_v24, 1  ;;  %p4996_p11 = scmp.ne.s32.totalorder %s4994_s29, %s4995_s30  ;;  %p5000_p0 = scmp.lt.s32.totalorder %s4994_s29, %s8373_s9 }
  0x22   : > { %4455 = vset.pattern.permute.xlu0 %v5044_v4  ;;  %4459 = vset.pattern.permute.xlu2 %v5044_v4  ;;  %v5225_v32 = vperm.slane %v374_v25, 0  ;;  %v5227_v33 = vperm.slane %v502_v26, 1  ;;  %v5245_v44 = vperm.slane %v375_v34, 0  ;;  %v5247_v45 = vperm.slane %v503_v35, 1  ;;  %p5001_p1 = scmp.lt.s32.totalorder %s4999_s11, %s4995_s30 }
  0x23   : > { %497 = vperm.xlu0 %4455, %v347_v0   ;;  %493 = vperm.xlu1 %4457, %v346_v1   ;;  %p4997_p12 = pnand %p4996_p11, %p5141_p5 }
  0x24   : > { %489 = vperm.xlu2 %4459, %v345_v2   ;;  %p5002_p2 = por %p5001_p1, %p5000_p0 }
  0x25   : > { %p4998_p13 = pneg %p4997_p12 }
  0x27   : > { %p5003_p3 = pnand %p5002_p2, %p4998_p13 }
  0x2b   : > { %4460 = vset.pattern.permute.xlu1 %v5043_v3  ;;  %485 = vperm.xlu0 %4455, %v344_v5  }
  0x2c   : > { %4461 = vset.pattern.permute.xlu2 %v5043_v3  ;;  %697 = vperm.xlu1 %4460, %v679_v6  }
  0x2d   : > { %350 = vperm.xlu2 %4461, %v344_v5  }
  0x33   : > { %4462 = vset.pattern.permute.xlu0 %v5043_v3 }
  0x34   : > { %692 = vperm.xlu1 %4460, %v678_v7   ;;  %682 = vperm.xlu0 %4462, %v676_v8  }
  0x35   : > { %687 = vperm.xlu2 %4461, %v677_v9  }
  0x3c   : > { %2055 = vperm.xlu1 %4460, %v2049_v10   ;;  %3837 = vperm.xlu0 %4462, %v3831_v11  }
  0x3d   : > { %2060 = vperm.xlu2 %4461, %v2050_v12  }
  0x44   : > { %2065 = vperm.xlu1 %4460, %v2051_v13   ;;  %3852 = vperm.xlu0 %4462, %v3834_v14  }
  0x45   : > { %2070 = vperm.xlu2 %4461, %v2052_v15  }
  0x4c   : > { %3842 = vperm.xlu1 %4460, %v3832_v16  }
  0x4d   : > { %3847 = vperm.xlu2 %4461, %v3833_v17  }
  0x74   : > { %v5205_v18 = vpop.permute.xlu2 %355 }
  0x75   : > { %v436_v36 = vmul.f32 %v5215_v27, %v5205_v18  ;;  %v437_v38 = vmul.f32 %v5219_v29, %v5205_v18  ;;  %v438_v41 = vmul.f32 %v5225_v32, %v5205_v18  ;;  %v439_v52 = vmul.f32 %v5245_v44, %v5205_v18 }
  0x7e   : > { %v5213_v20 = vpop.permute.xlu2 %489 }
  0x7f   : > { %8380 = vst [vmem:[#allocation8_spill] sm:$0xff] %v5213_v20  ;;  %v564_v37 = vmul.f32 %v5217_v28, %v5213_v20  ;;  %v565_v39 = vmul.f32 %v5221_v30, %v5213_v20  ;;  %v566_v42 = vmul.f32 %v5227_v33, %v5213_v20  ;;  %v567_v53 = vmul.f32 %v5247_v45, %v5213_v20 }
  0x81   : > { %v628_v46 = vadd.f32 %v564_v37, %v436_v36  ;;  %v629_v47 = vadd.f32 %v565_v39, %v437_v38  ;;  %v630_v49 = vadd.f32 %v566_v42, %v438_v41  ;;  %v631_v57 = vadd.f32 %v567_v53, %v439_v52 }
  0x87   : > { %v5223_v31 = vpop.permute.xlu2 %350 }
  0x8b   : > { %v5237_v40 = vpop.permute.xlu1 %360 }
  0x8c   : > { %v5243_v43 = vpop.permute.xlu0 %365  ;;  %v452_v36 = vmul.f32 %v5215_v27, %v5237_v40  ;;  %v453_v37 = vmul.f32 %v5219_v29, %v5237_v40  ;;  %v454_v39 = vmul.f32 %v5225_v32, %v5237_v40 }
  0x8d   : > { %v468_v3 = vmul.f32 %v5215_v27, %v5243_v43  ;;  %v469_v5 = vmul.f32 %v5219_v29, %v5243_v43  ;;  %v470_v6 = vmul.f32 %v5225_v32, %v5243_v43  ;;  %v471_v7 = vmul.f32 %v5245_v44, %v5243_v43 }
  0x8f   : > { %v5249_v48 = vpop.permute.xlu2 %687 }
  0x90   : > { %8381 = vst [vmem:[#allocation9_spill] sm:$0xff] %v5249_v48  ;;  %v716_v50 = vadd.f32 %v5249_v48, %v628_v46  ;;  %v717_v51 = vadd.f32 %v5249_v48, %v629_v47  ;;  %v718_v56 = vadd.f32 %v5249_v48, %v630_v49  ;;  %v719_v62 = vadd.f32 %v5249_v48, %v631_v57  ;;  %v5310_v46 = vld [vmem:[%s5210_s10 + $0x8] sm:$0xff] }
  0x92   : > { %v4233_v54 = vmul.f32 -1.442695, %v716_v50  ;;  %v4234_v55 = vmul.f32 -1.442695, %v717_v51  ;;  %v4235_v61 = vmul.f32 -1.442695, %v718_v56  ;;  %v455_v50 = vmul.f32 %v5245_v44, %v5237_v40 }
  0x93   : > { %v4236_v11 = vmul.f32 -1.442695, %v719_v62  ;;  %v5323_v56 = vstv %s5286_s0 }
  0x94   : > { %4463 = vpow2.f32 %v4233_v54 }
  0x95   : > { %v5258_v58 = vpop.permute.xlu0 %497  ;;  %v5260_v59 = vpop.permute.xlu1 %493  ;;  %4465 = vpow2.f32 %v4234_v55 }
  0x96   : > { %v596_v60 = vmul.f32 %v5217_v28, %v5258_v58  ;;  %v597_v63 = vmul.f32 %v5221_v30, %v5258_v58  ;;  %v598_v0 = vmul.f32 %v5227_v33, %v5258_v58  ;;  %v599_v1 = vmul.f32 %v5247_v45, %v5258_v58 }
  0x97   : > { %4467 = vpow2.f32 %v4235_v61  ;;  %v580_v22 = vmul.f32 %v5217_v28, %v5260_v59  ;;  %v581_v23 = vmul.f32 %v5221_v30, %v5260_v59  ;;  %v582_v41 = vmul.f32 %v5227_v33, %v5260_v59 }
  0x98   : > { %v660_v9 = vadd.f32 %v596_v60, %v468_v3  ;;  %v661_v12 = vadd.f32 %v597_v63, %v469_v5  ;;  %v662_v13 = vadd.f32 %v598_v0, %v470_v6  ;;  %v663_v14 = vadd.f32 %v599_v1, %v471_v7 }
  0x99   : > { %v583_v42 = vmul.f32 %v5247_v45, %v5260_v59  ;;  %v644_v49 = vadd.f32 %v580_v22, %v452_v36  ;;  %v645_v52 = vadd.f32 %v581_v23, %v453_v37  ;;  %v376_v60 = vperm.slane %v5310_v46, 0 }
  0x9a   : > { %v4464_v2 = vpop.eup %4463  ;;  %v646_v0 = vadd.f32 %v582_v41, %v454_v39 }
  0x9b   : > { %v4466_v4 = vpop.eup %4465  ;;  %v5279_v8 = vadd.f32 1.0, %v4464_v2  ;;  %v647_v1 = vadd.f32 %v583_v42, %v455_v50 }
  0x9c   : > { %v5281_v10 = vadd.f32 1.0, %v4466_v4 }
  0x9d   : > { %4469 = vrcp.f32 %v5279_v8  ;;  %v4468_v34 = vpop.eup %4467  ;;  %v1271_v53 = vand.u32 2147483648, %v5279_v8  ;;  %v1269_v3 = vand.u32 2147483647, %v5279_v8  ;;  %vm1265_vm0 = vweird.f32 %v5279_v8 }
  0x9e   : > { %v5284_v15 = vpop.permute.xlu1 %697  ;;  %4471 = vrcp.f32 %v5281_v10  ;;  %v1286_v54 = vand.u32 2147483648, %v5281_v10  ;;  %v5325_v57 = vadd.f32 1.0, %v4468_v34  ;;  %v8396_v48 = vand.u32 2147483647, %v5281_v10 }
  0x9f   : > { %v748_v16 = vadd.f32 %v5284_v15, %v660_v9  ;;  %v749_v17 = vadd.f32 %v5284_v15, %v661_v12  ;;  %v750_v19 = vadd.f32 %v5284_v15, %v662_v13  ;;  %v751_v21 = vadd.f32 %v5284_v15, %v663_v14 }
  0xa0   : > { %4473 = vpow2.f32 %v4236_v11  ;;  %v5335_v11 = vor.u32 1.1754944e-38, %v1271_v53  ;;  %v5337_v12 = vor.u32 1.1754944e-38, %v1286_v54  ;;  %v1301_v36 = vand.u32 2147483648, %v5325_v57 }
  0xa1   : > { %v4265_v24 = vmul.f32 -1.442695, %v748_v16  ;;  %v4266_v25 = vmul.f32 -1.442695, %v749_v17  ;;  %v4267_v26 = vmul.f32 -1.442695, %v750_v19 }
  0xa2   : > { %v4268_v35 = vmul.f32 -1.442695, %v751_v21  ;;  %v5345_v17 = vperm.slane %v376_v60, 0  ;;  %vm5369_vm2 = vcmp.eq.f32.partialorder %v1269_v3, 8.507059e+37 }
  0xa3   : > { %v5301_v38 = vpop.eup %4469  ;;  %4475 = vpow2.f32 %v4265_v24 }
  0xa4   : > { %v5312_v47 = vpop.eup %4471  ;;  %4477 = vpow2.f32 %v4266_v25  ;;  %v1261_v51 = vmul.f32 %v5301_v38, %v5279_v8  ;;  %vm1266_vm1 = vweird.f32 %v5301_v38 }
  0xa5   : > { %4479 = vpow2.f32 %v4267_v26  ;;  %v1276_v4 = vmul.f32 %v5312_v47, %v5281_v10  ;;  %vm5399_vm6 = vmor %vm1265_vm0, %vm1266_vm1  ;;  %vm1281_vm15 = vweird.f32 %v5312_v47 }
  0xa6   : > { %v5320_v55 = vpop.permute.xlu1 %692  ;;  %4481 = vpow2.f32 %v4268_v35  ;;  %v4474_v61 = vpop.eup %4473  ;;  %v1262_v2 = vsub.f32 1.0, %v1261_v51 }
  0xa7   : > { %v732_v62 = vadd.f32 %v5320_v55, %v644_v49  ;;  %v733_v63 = vadd.f32 %v5320_v55, %v645_v52  ;;  %v734_v9 = vadd.f32 %v5320_v55, %v646_v0  ;;  %4483 = vrcp.f32 %v5325_v57 }
  0xa8   : > { %v5343_v16 = vadd.f32 1.0, %v4474_v61  ;;  %v735_v23 = vadd.f32 %v5320_v55, %v647_v1  ;;  %v1263_v25 = vmul.f32 %v5301_v38, %v1262_v2  ;;  %v1277_v26 = vsub.f32 1.0, %v1276_v4 }
  0xa9   : > { %v4476_v6 = vpop.eup %4475  ;;  %v4249_v7 = vmul.f32 -1.442695, %v732_v62  ;;  %v4250_v22 = vmul.f32 -1.442695, %v733_v63  ;;  %v4251_v34 = vmul.f32 -1.442695, %v734_v9 }
  0xaa   : > { %v4478_v13 = vpop.eup %4477  ;;  %v5339_v14 = vadd.f32 1.0, %v4476_v6  ;;  %v4252_v50 = vmul.f32 -1.442695, %v735_v23  ;;  %v1264_v53 = vadd.f32 %v5301_v38, %v1263_v25  ;;  %v1278_v60 = vmul.f32 %v5312_v47, %v1277_v26 }
  0xab   : > { %v4480_v19 = vpop.eup %4479  ;;  %v5347_v21 = vadd.f32 1.0, %v4478_v13  ;;  %4485 = vpow2.f32 %v4249_v7  ;;  %v5376_v63 = vor.u32 1.1754944e-38, %v1301_v36 }
  0xac   : > { %v4482_v24 = vpop.eup %4481  ;;  %4487 = vrcp.f32 %v5339_v14  ;;  %v1751_v37 = vand.u32 2147483648, %v5339_v14  ;;  %v5357_v39 = vadd.f32 1.0, %v4480_v19  ;;  %v1749_v42 = vand.u32 2147483647, %v5339_v14 }
  0xad   : > { %4489 = vrcp.f32 %v5347_v21  ;;  %v5359_v41 = vadd.f32 1.0, %v4482_v24  ;;  %v1766_v49 = vand.u32 2147483648, %v5347_v21  ;;  %v5364_v51 = vpop.eup %4483  ;;  %v1764_v52 = vand.u32 2147483647, %v5347_v21 }
  0xae   : > { %4491 = vrcp.f32 %v5343_v16  ;;  %v1781_v62 = vand.u32 2147483648, %v5357_v39  ;;  %vm1745_vm3 = vweird.f32 %v5339_v14  ;;  %v1752_v2 = vor.u32 1.1754944e-38, %v1751_v37 }
  0xaf   : > { %4493 = vpow2.f32 %v4250_v22  ;;  %vm1760_vm4 = vweird.f32 %v5347_v21  ;;  %vm5389_vm5 = vcmp.eq.f32.partialorder %v1749_v42, 8.507059e+37  ;;  %v1767_v9 = vor.u32 1.1754944e-38, %v1766_v49 }
  0xb0   : > { %4495 = vrcp.f32 %v5357_v39  ;;  %v1779_v13 = vand.u32 2147483647, %v5357_v39  ;;  %v1796_v19 = vand.u32 2147483648, %v5359_v41  ;;  %vm5407_vm7 = vcmp.eq.f32.partialorder %v1764_v52, 8.507059e+37 }
  0xb1   : > { %v4486_v61 = vpop.eup %4485  ;;  %4497 = vrcp.f32 %v5359_v41  ;;  %v1794_v26 = vand.u32 2147483647, %v5359_v41  ;;  %v1268_v8 = vsel %vm5399_vm6, %v5301_v38, %v1264_v53  ;;  %vm1775_vm8 = vweird.f32 %v5357_v39 }
  0xb2   : > { %v5379_v1 = vpop.eup %4487  ;;  %v5383_v3 = vadd.f32 1.0, %v4486_v61  ;;  %v5417_v42 = vor.u32 1.1754944e-38, %v1781_v62  ;;  %vm1790_vm10 = vweird.f32 %v5359_v41  ;;  %vm5425_vm11 = vcmp.eq.f32.partialorder %v1779_v13, 8.507059e+37 }
  0xb3   : > { %v5385_v4 = vpop.eup %4489  ;;  %v1741_v6 = vmul.f32 %v5379_v1, %v5339_v14  ;;  %vm1746_vm9 = vweird.f32 %v5379_v1  ;;  %v1797_v62 = vor.u32 1.1754944e-38, %v1796_v19  ;;  %vm5433_vm13 = vcmp.eq.f32.partialorder %v1794_v26, 8.507059e+37 }
  0xb4   : > { %v5403_v23 = vpop.eup %4491  ;;  %v1756_v24 = vmul.f32 %v5385_v4, %v5347_v21  ;;  %4499 = vrcp.f32 %v5383_v3  ;;  %vm1761_vm12 = vweird.f32 %v5385_v4  ;;  %vm1505_vm14 = vweird.f32 %v5383_v3  ;;  %vm1747_vm0 = vmor %vm1745_vm3, %vm1746_vm9 }
  0xb5   : > { %v4494_v36 = vpop.eup %4493  ;;  %v1742_v37 = vsub.f32 1.0, %v1741_v6  ;;  %4501 = vpow2.f32 %v4251_v34  ;;  %v1509_v34 = vand.u32 2147483647, %v5383_v3  ;;  %v5444_v19 = vsel %vm5369_vm2, %v5335_v11, %v1268_v8  ;;  %vm1762_vm2 = vmor %vm1760_vm4, %vm1761_vm12 }
  0xb6   : > { %v4496_v49 = vpop.eup %4495  ;;  %v1757_v52 = vsub.f32 1.0, %v1756_v24  ;;  %v5421_v61 = vadd.f32 1.0, %v4494_v36  ;;  %4503 = vpow2.f32 %v4252_v50  ;;  %v1511_v36 = vand.u32 2147483648, %v5383_v3  ;;  %v5509_v50 = vpop.permute.xlu0 %485 }
  0xb7   : > { %v4498_v0 = vpop.eup %4497  ;;  %v1743_v22 = vmul.f32 %v5379_v1, %v1742_v37  ;;  %v1771_v38 = vmul.f32 %v4496_v49, %v5357_v39  ;;  %vm1776_vm1 = vweird.f32 %v4496_v49  ;;  %vm5461_vm3 = vcmp.eq.f32.partialorder %v1509_v34, 8.507059e+37 }
  0xb8   : > { %v1758_v6 = vmul.f32 %v5385_v4, %v1757_v52  ;;  %v1786_v24 = vmul.f32 %v4498_v0, %v5359_v41  ;;  %4505 = vrcp.f32 %v5421_v61  ;;  %vm1791_vm6 = vweird.f32 %v4498_v0 }
  0xb9   : > { %v1744_v13 = vadd.f32 %v5379_v1, %v1743_v22  ;;  %v1772_v37 = vsub.f32 1.0, %v1771_v38  ;;  %v5453_v38 = vadd.f32 %v5312_v47, %v1278_v60  ;;  %vm1280_vm9 = vweird.f32 %v5281_v10 }
  0xba   : > { %v4500_v26 = vpop.eup %4499  ;;  %v1759_v52 = vadd.f32 %v5385_v4, %v1758_v6  ;;  %v1787_v22 = vsub.f32 1.0, %v1786_v24  ;;  %v1524_v21 = vand.u32 2147483647, %v5421_v61  ;;  %vm5475_vm4 = vcmp.eq.f32.partialorder %v8396_v48, 8.507059e+37 }
  0xbb   : > { %v4502_v35 = vpop.eup %4501  ;;  %v1748_v54 = vsel %vm1747_vm0, %v5379_v1, %v1744_v13  ;;  %v1773_v11 = vmul.f32 %v4496_v49, %v1772_v37  ;;  %v1501_v14 = vmul.f32 %v4500_v26, %v5383_v3  ;;  %v1526_v7 = vand.u32 2147483648, %v5421_v61 }
  0xbc   : > { %v4504_v60 = vpop.eup %4503  ;;  %v1753_v6 = vsel %vm5389_vm5, %v1752_v2, %v1748_v54  ;;  %v1763_v1 = vsel %vm1762_vm2, %v5385_v4, %v1759_v52  ;;  %v1788_v24 = vmul.f32 %v4498_v0, %v1787_v22  ;;  %vm1777_vm5 = vmor %vm1775_vm8, %vm1776_vm1  ;;  %v5484_v52 = vadd.f32 1.0, %v4502_v35 }
  0xbd   : > { %v2029_v13 = vmul.f32 %v5323_v56, %v1753_v6  ;;  %v1768_v37 = vsel %vm5407_vm7, %v1767_v9, %v1763_v1  ;;  %v1774_v34 = vadd.f32 %v4496_v49, %v1773_v11  ;;  %v1502_v5 = vsub.f32 1.0, %v1501_v14  ;;  %vm1792_vm7 = vmor %vm1790_vm10, %vm1791_vm6 }
  0xbe   : > { %v2030_v2 = vmul.f32 %v5323_v56, %v1768_v37  ;;  %v1789_v4 = vadd.f32 %v4498_v0, %v1788_v24  ;;  %v4506_v9 = vpop.eup %4505  ;;  %vm1506_vm12 = vweird.f32 %v4500_v26  ;;  %v5489_v22 = vadd.f32 1.0, %v4504_v60 }
  0xbf   : > { %2098 = vmatpush.msra.mxu0 %v2029_v13  ;;  %v1778_v25 = vsel %vm1777_vm5, %v4496_v49, %v1774_v34  ;;  %v1503_v48 = vmul.f32 %v4500_v26, %v1502_v5  ;;  %v1512_v11 = vor.u32 1.1754944e-38, %v1511_v36  ;;  %v1516_v35 = vmul.f32 %v4506_v9, %v5421_v61  ;;  %vm1507_vm8 = vmor %vm1505_vm14, %vm1506_vm12 }
  0xc0   : > { %2127 = vmatpush.msra.mxu1 %v2030_v2  ;;  %v1783_v39 = vsel %vm5425_vm11, %v5417_v42, %v1778_v25  ;;  %v1793_v54 = vsel %vm1792_vm7, %v4498_v0, %v1789_v4  ;;  %4507 = vrcp.f32 %v5484_v52  ;;  %vm1520_vm10 = vweird.f32 %v5421_v61  ;;  %vm1282_vm14 = vmor %vm1280_vm9, %vm1281_vm15 }
  0xc1   : > { %v2031_v14 = vmul.f32 %v5323_v56, %v1783_v39  ;;  %v1798_v49 = vsel %vm5433_vm13, %v1797_v62, %v1793_v54  ;;  %v1504_v41 = vadd.f32 %v4500_v26, %v1503_v48  ;;  %v1517_v60 = vsub.f32 1.0, %v1516_v35 }
  0xc2   : > { %v2032_v5 = vmul.f32 %v5323_v56, %v1798_v49  ;;  %vm5503_vm11 = vcmp.eq.f32.partialorder %v1524_v21, 8.507059e+37  ;;  %v1527_v53 = vor.u32 1.1754944e-38, %v1526_v7  ;;  %v1541_v62 = vand.u32 2147483648, %v5484_v52 }
  0xc3   : > { %2156 = vmatpush.msra.mxu2 %v2031_v14  ;;  %v1508_v42 = vsel %vm1507_vm8, %v4500_v26, %v1504_v41  ;;  %4509 = vrcp.f32 %v5489_v22  ;;  %v1518_v36 = vmul.f32 %v4506_v9, %v1517_v60  ;;  %vm1521_vm13 = vweird.f32 %v4506_v9 }
  0xc4   : > { %2185 = vmatpush.msra.mxu3 %v2032_v5  ;;  %v1513_v3 = vsel %vm5461_vm3, %v1512_v11, %v1508_v42  ;;  %v1539_v6 = vand.u32 2147483647, %v5484_v52  ;;  %vm1295_vm0 = vweird.f32 %v5325_v57  ;;  %v1556_v1 = vand.u32 2147483648, %v5489_v22  ;;  %vm1522_vm15 = vmor %vm1520_vm10, %vm1521_vm13 }
  0xc5   : > { %v2013_v26 = vmul.f32 %v5323_v56, %v1513_v3  ;;  %v1997_v24 = vmul.f32 %v5323_v56, %v5444_v19  ;;  %v1283_v8 = vsel %vm1282_vm14, %v5312_v47, %v5453_v38  ;;  %vm1310_vm1 = vweird.f32 %v5343_v16 }
  0xc6   : > { %v1519_v21 = vadd.f32 %v4506_v9, %v1518_v36  ;;  %vm1535_vm2 = vweird.f32 %v5484_v52  ;;  %v1554_v10 = vand.u32 2147483647, %v5489_v22  ;;  %v1288_v13 = vsel %vm5475_vm4, %v5337_v12, %v1283_v8  ;;  %v4508_v34 = vpop.eup %4507 }
  0xc7   : > { %v1291_v37 = vmul.f32 %v5364_v51, %v5325_v57  ;;  %2099 = vmatpush.msra.mxu0 %v2013_v26  ;;  %v1542_v47 = vor.u32 1.1754944e-38, %v1541_v62  ;;  %v1557_v19 = vor.u32 1.1754944e-38, %v1556_v1  ;;  %v1998_v38 = vmul.f32 %v5323_v56, %v1288_v13 }
  0xc8   : > { %v8401_v2 = vand.u32 2147483647, %v5325_v57  ;;  %v1306_v20 = vmul.f32 %v5403_v23, %v5343_v16  ;;  %v1523_v12 = vsel %vm1522_vm15, %v4506_v9, %v1519_v21  ;;  %v1531_v7 = vmul.f32 %v4508_v34, %v5484_v52 }
  0xc9   : > { %vm5546_vm3 = vcmp.eq.f32.partialorder %v1539_v6, 8.507059e+37  ;;  %vm1550_vm9 = vweird.f32 %v5489_v22  ;;  %v1292_v61 = vsub.f32 1.0, %v1291_v37  ;;  %vm1296_vm4 = vweird.f32 %v5364_v51  ;;  %v4510_v48 = vpop.eup %4509  ;;  %2100 = vmatpush.msra.mxu0 %v1997_v24 }
  0xca   : > { %vm5539_vm6 = vcmp.eq.f32.partialorder %v8401_v2, 8.507059e+37  ;;  %v1528_v39 = vsel %vm5503_vm11, %v1527_v53, %v1523_v12  ;;  %vm1536_vm5 = vweird.f32 %v4508_v34  ;;  %v1307_v54 = vsub.f32 1.0, %v1306_v20  ;;  %vm5581_vm11 = vmor %vm1295_vm0, %vm1296_vm4 }
  0xcb   : > { %vm1311_vm7 = vweird.f32 %v5403_v23  ;;  %v2014_v9 = vmul.f32 %v5323_v56, %v1528_v39  ;;  %v1532_v11 = vsub.f32 1.0, %v1531_v7  ;;  %v1546_v35 = vmul.f32 %v4510_v48, %v5489_v22  ;;  %vm1537_vm14 = vmor %vm1535_vm2, %vm1536_vm5 }
  0xcc   : > { %vm5557_vm12 = vcmp.eq.f32.partialorder %v1554_v10, 8.507059e+37  ;;  %v8408_v49 = vand.u32 2147483647, %v5343_v16  ;;  %v1293_v5 = vmul.f32 %v5364_v51, %v1292_v61  ;;  %v1308_v60 = vmul.f32 %v5403_v23, %v1307_v54  ;;  %vm5594_vm13 = vmor %vm1310_vm1, %vm1311_vm7 }
  0xcd   : > { %v1316_v0 = vand.u32 2147483648, %v5343_v16  ;;  %v420_v42 = vmul.f32 %v5215_v27, %v5223_v31  ;;  %2128 = vmatpush.msra.mxu1 %v2014_v9  ;;  %v1533_v53 = vmul.f32 %v4508_v34, %v1532_v11  ;;  %v1547_v62 = vsub.f32 1.0, %v1546_v35 }
  0xce   : > { %vm5563_vm8 = vcmp.eq.f32.partialorder %v8408_v49, 8.507059e+37  ;;  %v548_v3 = vmul.f32 %v5217_v28, %v5509_v50  ;;  %v421_v36 = vmul.f32 %v5219_v29, %v5223_v31  ;;  %vm1551_vm10 = vweird.f32 %v4510_v48  ;;  %v5588_v28 = vpop.permute.xlu0 %682 }
  0xcf   : > { %v1294_v6 = vadd.f32 %v5364_v51, %v1293_v5  ;;  %v1309_v27 = vadd.f32 %v5403_v23, %v1308_v60  ;;  %v549_v1 = vmul.f32 %v5221_v30, %v5509_v50  ;;  %v1534_v24 = vadd.f32 %v4508_v34, %v1533_v53  ;;  %2129 = vmatpush.msra.mxu1 %v1998_v38  ;;  %vm1552_vm0 = vmor %vm1550_vm9, %vm1551_vm10 }
  0xd0   : > { %v1548_v29 = vmul.f32 %v4510_v48, %v1547_v62  ;;  %v1317_v8 = vor.u32 1.1754944e-38, %v1316_v0  ;;  %v422_v21 = vmul.f32 %v5225_v32, %v5223_v31  ;;  %v612_v10 = vadd.f32 %v548_v3, %v420_v42 }
  0xd1   : > { %v1298_v30 = vsel %vm5581_vm11, %v5364_v51, %v1294_v6  ;;  %v1313_v16 = vsel %vm5594_vm13, %v5403_v23, %v1309_v27  ;;  %v550_v13 = vmul.f32 %v5227_v33, %v5509_v50  ;;  %v1538_v37 = vsel %vm1537_vm14, %v4508_v34, %v1534_v24 }
  0xd2   : > { %v1549_v38 = vadd.f32 %v4510_v48, %v1548_v29  ;;  %v1303_v32 = vsel %vm5539_vm6, %v5376_v63, %v1298_v30  ;;  %v613_v52 = vadd.f32 %v549_v1, %v421_v36  ;;  %v1543_v2 = vsel %vm5546_vm3, %v1542_v47, %v1538_v37 }
  0xd3   : > { %v1999_v51 = vmul.f32 %v5323_v56, %v1303_v32  ;;  %v1318_v23 = vsel %vm5563_vm8, %v1317_v8, %v1313_v16  ;;  %v700_v33 = vadd.f32 %v5588_v28, %v612_v10  ;;  %v2015_v34 = vmul.f32 %v5323_v56, %v1543_v2 }
  0xd4   : > { %v1553_v20 = vsel %vm1552_vm0, %v4510_v48, %v1549_v38  ;;  %v701_v63 = vadd.f32 %v5588_v28, %v613_v52  ;;  %v614_v4 = vadd.f32 %v550_v13, %v422_v21  ;;  %v423_v22 = vmul.f32 %v5245_v44, %v5223_v31 }
  0xd5   : > { %v1558_v47 = vsel %vm5557_vm12, %v1557_v19, %v1553_v20  ;;  %v4217_v12 = vmul.f32 -1.442695, %v700_v33  ;;  %v551_v7 = vmul.f32 %v5247_v45, %v5509_v50  ;;  %2157 = vmatpush.msra.mxu2 %v2015_v34  ;;  %v2000_v61 = vmul.f32 %v5323_v56, %v1318_v23 }
  0xd6   : > { %v2016_v25 = vmul.f32 %v5323_v56, %v1558_v47  ;;  %v4218_v39 = vmul.f32 -1.442695, %v701_v63  ;;  %v702_v48 = vadd.f32 %v5588_v28, %v614_v4  ;;  %v504_v9 = vperm.slane %v5310_v46, 1 }
  0xd7   : > { %4511 = vpow2.f32 %v4217_v12  ;;  %v615_v54 = vadd.f32 %v551_v7, %v423_v22  ;;  %v377_v19 = vperm.slane %v5310_v46, 2  ;;  %2158 = vmatpush.msra.mxu2 %v1999_v51  ;;  %v505_v45 = vperm.slane %v5310_v46, 3 }
  0xd8   : > { %2186 = vmatpush.msra.mxu3 %v2016_v25  ;;  %4513 = vpow2.f32 %v4218_v39  ;;  %v4219_v44 = vmul.f32 -1.442695, %v702_v48  ;;  %v378_v11 = vperm.slane %v5310_v46, 4  ;;  %v5639_v14 = vperm.slane %v504_v9, 1 }
  0xd9   : > { %v703_v35 = vadd.f32 %v5588_v28, %v615_v54  ;;  %v506_v49 = vperm.slane %v5310_v46, 5  ;;  %v472_v41 = vmul.f32 %v5345_v17, %v5243_v43  ;;  %v5646_v0 = vperm.slane %v505_v45, 1 }
  0xda   : > { %2187 = vmatpush.msra.mxu3 %v2000_v61  ;;  %4515 = vpow2.f32 %v4219_v44  ;;  %v600_v60 = vmul.f32 %v5639_v14, %v5258_v58  ;;  %v5650_v53 = vperm.slane %v377_v19, 0  ;;  %v5652_v62 = vperm.slane %v378_v11, 0 }
  0xdb   : > { %v4220_v5 = vmul.f32 -1.442695, %v703_v35  ;;  %v5648_v42 = vperm.slane %v506_v49, 1  ;;  %v601_v6 = vmul.f32 %v5646_v0, %v5258_v58  ;;  %v379_v21 = vperm.slane %v5310_v46, 6 }
  0xdc   : > { %v664_v36 = vadd.f32 %v600_v60, %v472_v41  ;;  %v473_v24 = vmul.f32 %v5650_v53, %v5243_v43  ;;  %v474_v29 = vmul.f32 %v5652_v62, %v5243_v43  ;;  %v507_v30 = vperm.slane %v5310_v46, 7 }
  0xdd   : > { %v4512_v3 = vpop.eup %4511  ;;  %4517 = vpow2.f32 %v4220_v5  ;;  %v602_v26 = vmul.f32 %v5648_v42, %v5258_v58  ;;  %v456_v32 = vmul.f32 %v5345_v17, %v5237_v40  ;;  %v5677_v23 = vperm.slane %v379_v21, 0 }
  0xde   : > { %v4514_v27 = vpop.eup %4513  ;;  %v5658_v1 = vadd.f32 1.0, %v4512_v3  ;;  %v752_v8 = vadd.f32 %v5284_v15, %v664_v36  ;;  %v665_v10 = vadd.f32 %v601_v6, %v473_v24  ;;  %v5679_v46 = vperm.slane %v507_v30, 1 }
  0xdf   : > { %v5664_v57 = vadd.f32 1.0, %v4514_v27  ;;  %v666_v13 = vadd.f32 %v602_v26, %v474_v29  ;;  %v584_v20 = vmul.f32 %v5639_v14, %v5260_v59  ;;  %v475_v54 = vmul.f32 %v5677_v23, %v5243_v43 }
  0xe0   : > { %v4516_v16 = vpop.eup %4515  ;;  %4519 = vrcp.f32 %v5658_v1  ;;  %v4269_v38 = vmul.f32 -1.442695, %v752_v8  ;;  %v753_v2 = vadd.f32 %v5284_v15, %v665_v10  ;;  %v1029_v33 = vand.u32 2147483647, %v5658_v1 }
  0xe1   : > { %4521 = vrcp.f32 %v5664_v57  ;;  %v5671_v37 = vadd.f32 1.0, %v4516_v16  ;;  %v754_v51 = vadd.f32 %v5284_v15, %v666_v13  ;;  %v1031_v34 = vand.u32 2147483648, %v5658_v1 }
  0xe2   : > { %vm1025_vm1 = vweird.f32 %v5658_v1  ;;  %v1044_v63 = vand.u32 2147483647, %v5664_v57  ;;  %v4270_v47 = vmul.f32 -1.442695, %v753_v2  ;;  %vm1040_vm2 = vweird.f32 %v5664_v57 }
  0xe3   : > { %v4518_v52 = vpop.eup %4517  ;;  %4523 = vrcp.f32 %v5671_v37  ;;  %v1046_v22 = vand.u32 2147483648, %v5664_v57  ;;  %v4271_v7 = vmul.f32 -1.442695, %v754_v51  ;;  %v603_v25 = vmul.f32 %v5679_v46, %v5258_v58 }
  0xe4   : > { %v5688_v4 = vadd.f32 1.0, %v4518_v52  ;;  %4525 = vpow2.f32 %v4269_v38  ;;  %v1059_v48 = vand.u32 2147483647, %v5671_v37  ;;  %vm5699_vm15 = vcmp.eq.f32.partialorder %v1029_v33, 8.507059e+37 }
  0xe5   : > { %v1032_v19 = vor.u32 1.1754944e-38, %v1031_v34  ;;  %v1061_v45 = vand.u32 2147483648, %v5671_v37  ;;  %vm5705_vm6 = vcmp.eq.f32.partialorder %v1044_v63, 8.507059e+37  ;;  %vm2073_vm3 = vcmask 261120  }
  0xe6   : > { %v4520_v12 = vpop.eup %4519  ;;  %4527 = vrcp.f32 %v5688_v4  ;;  %v667_v49 = vadd.f32 %v603_v25, %v475_v54  ;;  %v1047_v60 = vor.u32 1.1754944e-38, %v1046_v22  ;;  %vm1055_vm9 = vweird.f32 %v5671_v37 }
  0xe7   : > { %v4522_v61 = vpop.eup %4521  ;;  %v1021_v39 = vmul.f32 %v4520_v12, %v5658_v1  ;;  %4529 = vpow2.f32 %v4270_v47  ;;  %vm1026_vm4 = vweird.f32 %v4520_v12  ;;  %vm5711_vm5 = vcmp.eq.f32.partialorder %v1059_v48, 8.507059e+37 }
  0xe8   : > { %v1036_v44 = vmul.f32 %v4522_v61, %v5664_v57  ;;  %4531 = vpow2.f32 %v4271_v7  ;;  %v755_v27 = vadd.f32 %v5284_v15, %v667_v49  ;;  %vm1041_vm7 = vweird.f32 %v4522_v61  ;;  %vm1027_vm8 = vmor %vm1025_vm1, %vm1026_vm4 }
  0xe9   : > { %v1022_v11 = vsub.f32 1.0, %v1021_v39  ;;  %v4524_v41 = vpop.eup %4523  ;;  %v1062_v29 = vor.u32 1.1754944e-38, %v1061_v45  ;;  %vm1070_vm12 = vweird.f32 %v5688_v4  ;;  %v1074_v10 = vand.u32 2147483647, %v5688_v4  ;;  %vm1042_vm10 = vmor %vm1040_vm2, %vm1041_vm7 }
  0xea   : > { %v1037_v5 = vsub.f32 1.0, %v1036_v44  ;;  %v4526_v3 = vpop.eup %4525  ;;  %v1051_v6 = vmul.f32 %v4524_v41, %v5671_v37  ;;  %v648_v52 = vadd.f32 %v584_v20, %v456_v32  ;;  %vm1056_vm11 = vweird.f32 %v4524_v41 }
  0xeb   : > { %v1023_v36 = vmul.f32 %v4520_v12, %v1022_v11  ;;  %v5716_v8 = vadd.f32 1.0, %v4526_v3  ;;  %v4272_v34 = vmul.f32 -1.442695, %v755_v27  ;;  %v1076_v57 = vand.u32 2147483648, %v5688_v4  ;;  %vm1057_vm13 = vmor %vm1055_vm9, %vm1056_vm11 }
  0xec   : > { %v1038_v24 = vmul.f32 %v4522_v61, %v1037_v5  ;;  %v4528_v21 = vpop.eup %4527  ;;  %v1052_v16 = vsub.f32 1.0, %v1051_v6  ;;  %v736_v7 = vadd.f32 %v5320_v55, %v648_v52  ;;  %vm5742_vm0 = vcmp.eq.f32.partialorder %v1074_v10, 8.507059e+37 }
  0xed   : > { %v1024_v30 = vadd.f32 %v4520_v12, %v1023_v36  ;;  %v1066_v38 = vmul.f32 %v4528_v21, %v5688_v4  ;;  %4533 = vrcp.f32 %v5716_v8  ;;  %v4530_v2 = vpop.eup %4529  ;;  %vm1071_vm14 = vweird.f32 %v4528_v21 }
  0xee   : > { %v1039_v13 = vadd.f32 %v4522_v61, %v1038_v24  ;;  %v1053_v33 = vmul.f32 %v4524_v41, %v1052_v16  ;;  %v4532_v63 = vpop.eup %4531  ;;  %v5740_v48 = vadd.f32 1.0, %v4530_v2  ;;  %4535 = vpow2.f32 %v4272_v34  ;;  %vm1072_vm1 = vmor %vm1070_vm12, %vm1071_vm14 }
  0xef   : > { %v1028_v51 = vsel %vm1027_vm8, %v4520_v12, %v1024_v30  ;;  %v1067_v22 = vsub.f32 1.0, %v1066_v38  ;;  %v2045_v12 = vld [vmem:[%s8370_s6] sm:$0xff]  ;;  %v4253_v11 = vmul.f32 -1.442695, %v736_v7  ;;  %v1077_v49 = vor.u32 1.1754944e-38, %v1076_v57 }
  0xf0   : > { %v1033_v1 = vsel %vm5699_vm15, %v1032_v19, %v1028_v51  ;;  %v1043_v47 = vsel %vm1042_vm10, %v4522_v61, %v1039_v13  ;;  %v1054_v20 = vadd.f32 %v4524_v41, %v1053_v33  ;;  %v5746_v19 = vadd.f32 1.0, %v4532_v63 }
  0xf1   : > { %v1981_v25 = vmul.f32 %v5323_v56, %v1033_v1  ;;  %v1048_v32 = vsel %vm5705_vm6, %v1047_v60, %v1043_v47  ;;  %v1068_v61 = vmul.f32 %v4528_v21, %v1067_v22  ;;  %4537 = vrcp.f32 %v5740_v48 }
  0xf2   : > { %v1982_v39 = vmul.f32 %v5323_v56, %v1048_v32  ;;  %v1058_v54 = vsel %vm1057_vm13, %v4524_v41, %v1054_v20  ;;  %v585_v5 = vmul.f32 %v5646_v0, %v5260_v59  ;;  %v1809_v3 = vand.u32 2147483647, %v5716_v8 }
  0xf3   : > { %2101 = vmatpush.msra.mxu0 %v1981_v25  ;;  %v4534_v44 = vpop.eup %4533  ;;  %v1063_v45 = vsel %vm5711_vm5, %v1062_v29, %v1058_v54  ;;  %v1069_v37 = vadd.f32 %v4528_v21, %v1068_v61  ;;  %v1811_v36 = vand.u32 2147483648, %v5716_v8  ;;  %4539 = vrcp.f32 %v5746_v19 }
  0xf4   : > { %2130 = vmatpush.msra.mxu1 %v1982_v39  ;;  %4281 = vmatmul.msk.f32.vlgmr.msra.gmra.mxu0 %vm2073_vm3, %v2045_v12  ;;  %v1983_v35 = vmul.f32 %v5323_v56, %v1063_v45  ;;  %v1801_v41 = vmul.f32 %v4534_v44, %v5716_v8  ;;  %v1824_v26 = vand.u32 2147483647, %v5740_v48  ;;  %v457_v27 = vmul.f32 %v5650_v53, %v5237_v40 }
  0xf5   : > { %4285 = vmatmul.msk.f32.vlgmr.msra.gmra.mxu1 %vm2073_vm3, %v2045_v12  ;;  %v1073_v60 = vsel %vm1072_vm1, %v4528_v21, %v1069_v37  ;;  %vm1805_vm2 = vweird.f32 %v5716_v8  ;;  %v1826_v29 = vand.u32 2147483648, %v5740_v48  ;;  %4541 = vpow2.f32 %v4253_v11  ;;  %v4536_v21 = vpop.eup %4535 }
  0xf6   : > { %2159 = vmatpush.msra.mxu2 %v1983_v35  ;;  %v1078_v4 = vsel %vm5742_vm0, %v1077_v49, %v1073_v60  ;;  %v1802_v6 = vsub.f32 1.0, %v1801_v41  ;;  %vm1806_vm15 = vweird.f32 %v4534_v44  ;;  %v1839_v16 = vand.u32 2147483647, %v5746_v19 }
  0xf7   : > { %v1984_v24 = vmul.f32 %v5323_v56, %v1078_v4  ;;  %4289 = vmatmul.msk.f32.vlgmr.msra.gmra.mxu2 %vm2073_vm3, %v2045_v12  ;;  %v649_v10 = vadd.f32 %v585_v5, %v457_v27  ;;  %v4538_v13 = vpop.eup %4537  ;;  %vm5773_vm6 = vcmp.eq.f32.partialorder %v1809_v3, 8.507059e+37  ;;  %v1812_v52 = vor.u32 1.1754944e-38, %v1811_v36  ;;  %vm1807_vm7 = vmor %vm1805_vm2, %vm1806_vm15 }
  0xf8   : > { %v1803_v30 = vmul.f32 %v4534_v44, %v1802_v6  ;;  %vm1820_vm9 = vweird.f32 %v5740_v48  ;;  %v5778_v2 = vadd.f32 1.0, %v4536_v21  ;;  %v1816_v33 = vmul.f32 %v4538_v13, %v5740_v48 }
  0xf9   : > { %2188 = vmatpush.msra.mxu3 %v1984_v24  ;;  %vm5782_vm4 = vcmp.eq.f32.partialorder %v1824_v26, 8.507059e+37  ;;  %vm1835_vm5 = vweird.f32 %v5746_v19  ;;  %v737_v63 = vadd.f32 %v5320_v55, %v649_v10  ;;  %v4540_v1 = vpop.eup %4539  ;;  %v1827_v47 = vor.u32 1.1754944e-38, %v1826_v29 }
  0xfa   : > { %4293 = vmatmul.msk.f32.vlgmr.msra.gmra.mxu3 %vm2073_vm3, %v2045_v12  ;;  %v1804_v51 = vadd.f32 %v4534_v44, %v1803_v30  ;;  %v1841_v22 = vand.u32 2147483648, %v5746_v19  ;;  %4543 = vrcp.f32 %v5778_v2  ;;  %v586_v7 = vmul.f32 %v5648_v42, %v5260_v59 }
  0xfb   : > { %v1817_v32 = vsub.f32 1.0, %v1816_v33  ;;  %v1831_v20 = vmul.f32 %v4540_v1, %v5746_v19  ;;  %vm5796_vm12 = vcmp.eq.f32.partialorder %v1839_v16, 8.507059e+37  ;;  %v4542_v12 = vpop.eup %4541  ;;  %vm1821_vm8 = vweird.f32 %v4538_v13 }
  0xfc   : > { %v1808_v25 = vsel %vm1807_vm7, %v4534_v44, %v1804_v51  ;;  %v4254_v39 = vmul.f32 -1.442695, %v737_v63  ;;  %v458_v61 = vmul.f32 %v5652_v62, %v5237_v40  ;;  %v5805_v45 = vadd.f32 1.0, %v4542_v12  ;;  %vm1822_vm11 = vmor %vm1820_vm9, %vm1821_vm8  ;;  %v8429_v51 = vld [vmem:[#allocation8_spill] sm:$0xff] }
  0xfd   : > { %v1813_v8 = vsel %vm5773_vm6, %v1812_v52, %v1808_v25  ;;  %v1818_v9 = vmul.f32 %v4538_v13, %v1817_v32  ;;  %v1832_v44 = vsub.f32 1.0, %v1831_v20  ;;  %v459_v11 = vmul.f32 %v5677_v23, %v5237_v40 }
  0xfe   : > { %v2033_v54 = vmul.f32 %v5323_v56, %v1813_v8  ;;  %4545 = vpow2.f32 %v4254_v39  ;;  %v650_v37 = vadd.f32 %v586_v7, %v458_v61  ;;  %v587_v35 = vmul.f32 %v5679_v46, %v5260_v59  ;;  %v8430_v39 = vld [vmem:[#allocation9_spill] sm:$0xff] }
  0xff   : > { %v1819_v49 = vadd.f32 %v4538_v13, %v1818_v9  ;;  %v1833_v41 = vmul.f32 %v4540_v1, %v1832_v44  ;;  %vm1836_vm10 = vweird.f32 %v4540_v1  ;;  %4547 = vrcp.f32 %v5805_v45 }
 0x100   : > { %2214 = vmatpush.msrb.mxu0 %v2033_v54  ;;  %v4544_v5 = vpop.eup %4543  ;;  %v1842_v60 = vor.u32 1.1754944e-38, %v1841_v22  ;;  %v1854_v3 = vand.u32 2147483647, %v5778_v2  ;;  %v1856_v36 = vand.u32 2147483648, %v5778_v2  ;;  %v738_v4 = vadd.f32 %v5320_v55, %v650_v37  ;;  %vm1837_vm13 = vmor %vm1835_vm5, %vm1836_vm10 }
 0x101   : > { %v1823_v6 = vsel %vm1822_vm11, %v4538_v13, %v1819_v49  ;;  %v1834_v26 = vadd.f32 %v4540_v1, %v1833_v41  ;;  %v1846_v27 = vmul.f32 %v4544_v5, %v5778_v2  ;;  %v651_v24 = vadd.f32 %v587_v35, %v459_v11 }
 0x102   : > { %v1828_v29 = vsel %vm5782_vm4, %v1827_v47, %v1823_v6  ;;  %vm1851_vm14 = vweird.f32 %v4544_v5  ;;  %v4255_v48 = vmul.f32 -1.442695, %v738_v4  ;;  %v440_v21 = vmul.f32 %v5345_v17, %v5205_v18 }
 0x103   : > { %v2034_v30 = vmul.f32 %v5323_v56, %v1828_v29  ;;  %v1838_v16 = vsel %vm1837_vm13, %v4540_v1, %v1834_v26  ;;  %v1847_v10 = vsub.f32 1.0, %v1846_v27  ;;  %v739_v13 = vadd.f32 %v5320_v55, %v651_v24 }
 0x104   : > { %v4546_v38 = vpop.eup %4545  ;;  %v1843_v52 = vsel %vm5796_vm12, %v1842_v60, %v1838_v16  ;;  %4549 = vpow2.f32 %v4255_v48  ;;  %v568_v19 = vmul.f32 %v5639_v14, %v8429_v51  ;;  %v441_v33 = vmul.f32 %v5650_v53, %v5205_v18 }
 0x105   : > { %v4548_v34 = vpop.eup %4547  ;;  %2243 = vmatpush.msrb.mxu1 %v2034_v30  ;;  %v2035_v63 = vmul.f32 %v5323_v56, %v1843_v52  ;;  %v1848_v47 = vmul.f32 %v4544_v5, %v1847_v10  ;;  %v5834_v1 = vadd.f32 1.0, %v4546_v38  ;;  %v4256_v22 = vmul.f32 -1.442695, %v739_v13 }
 0x106   : > { %vm1850_vm0 = vweird.f32 %v5778_v2  ;;  %v1561_v7 = vmul.f32 %v4548_v34, %v5805_v45  ;;  %v632_v25 = vadd.f32 %v568_v19, %v440_v21  ;;  %v569_v32 = vmul.f32 %v5646_v0, %v8429_v51 }
 0x107   : > { %2272 = vmatpush.msrb.mxu2 %v2035_v63  ;;  %v1849_v20 = vadd.f32 %v4544_v5, %v1848_v47  ;;  %vm1855_vm1 = vcmp.eq.f32.partialorder %v1854_v3, 8.507059e+37  ;;  %v1569_v57 = vand.u32 2147483647, %v5805_v45  ;;  %4551 = vrcp.f32 %v5834_v1  ;;  %vm1852_vm2 = vmor %vm1850_vm0, %vm1851_vm14 }
 0x108   : > { %v1857_v12 = vor.u32 1.1754944e-38, %v1856_v36  ;;  %v1562_v8 = vsub.f32 1.0, %v1561_v7  ;;  %4553 = vpow2.f32 %v4256_v22  ;;  %v720_v2 = vadd.f32 %v8430_v39, %v632_v25 }
 0x109   : > { %v1853_v61 = vsel %vm1852_vm2, %v4544_v5, %v1849_v20  ;;  %vm1565_vm15 = vweird.f32 %v5805_v45  ;;  %v1571_v54 = vand.u32 2147483648, %v5805_v45  ;;  %v633_v9 = vadd.f32 %v569_v32, %v441_v33 }
 0x10a   : > { %v4550_v44 = vpop.eup %4549  ;;  %v1858_v37 = vsel %vm1855_vm1, %v1857_v12, %v1853_v61  ;;  %v1563_v11 = vmul.f32 %v4548_v34, %v1562_v8  ;;  %vm1566_vm6 = vweird.f32 %v4548_v34  ;;  %v4237_v35 = vmul.f32 -1.442695, %v720_v2 }
 0x10b   : > { %v2036_v49 = vmul.f32 %v5323_v56, %v1858_v37  ;;  %vm5847_vm9 = vcmp.eq.f32.partialorder %v1569_v57, 8.507059e+37  ;;  %v5851_v60 = vadd.f32 1.0, %v4550_v44  ;;  %v721_v5 = vadd.f32 %v8430_v39, %v633_v9  ;;  %vm1567_vm4 = vmor %vm1565_vm15, %vm1566_vm6 }
 0x10c   : > { %v1564_v3 = vadd.f32 %v4548_v34, %v1563_v11  ;;  %4555 = vpow2.f32 %v4237_v35  ;;  %v442_v36 = vmul.f32 %v5652_v62, %v5205_v18  ;;  %v570_v4 = vmul.f32 %v5648_v42, %v8429_v51 }
 0x10d   : > { %v4552_v6 = vpop.eup %4551  ;;  %2301 = vmatpush.msrb.mxu3 %v2036_v49  ;;  %v1572_v26 = vor.u32 1.1754944e-38, %v1571_v54  ;;  %v1584_v27 = vand.u32 2147483647, %v5834_v1  ;;  %4557 = vrcp.f32 %v5851_v60  ;;  %v443_v24 = vmul.f32 %v5677_v23, %v5205_v18 }
 0x10e   : > { %v4554_v29 = vpop.eup %4553  ;;  %v1568_v48 = vsel %vm1567_vm4, %v4548_v34, %v1564_v3  ;;  %v1576_v21 = vmul.f32 %v4552_v6, %v5834_v1  ;;  %v4238_v30 = vmul.f32 -1.442695, %v721_v5  ;;  %v571_v16 = vmul.f32 %v5679_v46, %v8429_v51 }
 0x10f   : > { %v1573_v45 = vsel %vm5847_vm9, %v1572_v26, %v1568_v48  ;;  %v1586_v10 = vand.u32 2147483648, %v5834_v1  ;;  %v1599_v13 = vand.u32 2147483647, %v5851_v60  ;;  %v5871_v38 = vadd.f32 1.0, %v4554_v29 }
 0x110   : > { %v2017_v52 = vmul.f32 %v5323_v56, %v1573_v45  ;;  %v1577_v19 = vsub.f32 1.0, %v1576_v21  ;;  %4559 = vpow2.f32 %v4238_v30  ;;  %v634_v33 = vadd.f32 %v570_v4, %v442_v36 }
 0x111   : > { %vm1580_vm5 = vweird.f32 %v5834_v1  ;;  %vm5875_vm7 = vcmp.eq.f32.partialorder %v1584_v27, 8.507059e+37  ;;  %4561 = vrcp.f32 %v5871_v38  ;;  %vm1581_vm12 = vweird.f32 %v4552_v6 }
 0x112   : > { %v4556_v63 = vpop.eup %4555  ;;  %2215 = vmatpush.msrb.mxu0 %v2017_v52  ;;  %v1578_v47 = vmul.f32 %v4552_v6, %v1577_v19  ;;  %v722_v22 = vadd.f32 %v8430_v39, %v634_v33  ;;  %v635_v7 = vadd.f32 %v571_v16, %v443_v24  ;;  %v1587_v32 = vor.u32 1.1754944e-38, %v1586_v10  ;;  %vm1582_vm11 = vmor %vm1580_vm5, %vm1581_vm12 }
 0x113   : > { %v4558_v25 = vpop.eup %4557  ;;  %vm1595_vm8 = vweird.f32 %v5851_v60  ;;  %v1601_v20 = vand.u32 2147483648, %v5851_v60  ;;  %v5883_v57 = vadd.f32 1.0, %v4556_v63  ;;  %vm5886_vm10 = vcmp.eq.f32.partialorder %v1599_v13, 8.507059e+37 }
 0x114   : > { %v1579_v12 = vadd.f32 %v4552_v6, %v1578_v47  ;;  %v1591_v8 = vmul.f32 %v4558_v25, %v5851_v60  ;;  %v1614_v61 = vand.u32 2147483647, %v5871_v38  ;;  %v4239_v54 = vmul.f32 -1.442695, %v722_v22 }
 0x115   : > { %v1616_v9 = vand.u32 2147483648, %v5871_v38  ;;  %4563 = vrcp.f32 %v5883_v57  ;;  %v424_v44 = vmul.f32 %v5345_v17, %v5223_v31  ;;  %v552_v37 = vmul.f32 %v5639_v14, %v5509_v50 }
 0x116   : > { %v4560_v11 = vpop.eup %4559  ;;  %v1583_v35 = vsel %vm1582_vm11, %v4552_v6, %v1579_v12  ;;  %v1592_v49 = vsub.f32 1.0, %v1591_v8  ;;  %4565 = vpow2.f32 %v4239_v54  ;;  %v723_v41 = vadd.f32 %v8430_v39, %v635_v7 }
 0x117   : > { %v4562_v5 = vpop.eup %4561  ;;  %v1588_v1 = vsel %vm5875_vm7, %v1587_v32, %v1583_v35  ;;  %v1602_v3 = vor.u32 1.1754944e-38, %v1601_v20  ;;  %vm1610_vm13 = vweird.f32 %v5871_v38  ;;  %v5903_v36 = vadd.f32 1.0, %v4560_v11 }
 0x118   : > { %v2018_v17 = vmul.f32 %v5323_v56, %v1588_v1  ;;  %v1593_v4 = vmul.f32 %v4558_v25, %v1592_v49  ;;  %vm1596_vm14 = vweird.f32 %v4558_v25  ;;  %v1606_v14 = vmul.f32 %v4562_v5, %v5871_v38 }
 0x119   : > { %vm5907_vm0 = vcmp.eq.f32.partialorder %v1614_v61, 8.507059e+37  ;;  %v1617_v26 = vor.u32 1.1754944e-38, %v1616_v9  ;;  %v1329_v27 = vand.u32 2147483647, %v5883_v57  ;;  %4567 = vrcp.f32 %v5903_v36  ;;  %vm1597_vm2 = vmor %vm1595_vm8, %vm1596_vm14 }
 0x11a   : > { %2244 = vmatpush.msrb.mxu1 %v2018_v17  ;;  %v1594_v24 = vadd.f32 %v4558_v25, %v1593_v4  ;;  %v1607_v29 = vsub.f32 1.0, %v1606_v14  ;;  %vm1325_vm1 = vweird.f32 %v5883_v57  ;;  %v4240_v48 = vmul.f32 -1.442695, %v723_v41 }
 0x11b   : > { %v616_v21 = vadd.f32 %v552_v37, %v424_v44  ;;  %v4564_v30 = vpop.eup %4563  ;;  %vm1611_vm15 = vweird.f32 %v4562_v5  ;;  %v1331_v16 = vand.u32 2147483648, %v5883_v57  ;;  %v425_v45 = vmul.f32 %v5650_v53, %v5223_v31 }
 0x11c   : > { %v553_v10 = vmul.f32 %v5646_v0, %v5509_v50  ;;  %v4566_v13 = vpop.eup %4565  ;;  %v1598_v52 = vsel %vm1597_vm2, %v4558_v25, %v1594_v24  ;;  %v1608_v19 = vmul.f32 %v4562_v5, %v1607_v29  ;;  %v1321_v33 = vmul.f32 %v4564_v30, %v5883_v57  ;;  %vm1612_vm6 = vmor %vm1610_vm13, %vm1611_vm15 }
 0x11d   : > { %v1344_v34 = vand.u32 2147483647, %v5903_v36  ;;  %v1603_v60 = vsel %vm5886_vm10, %v1602_v3, %v1598_v52  ;;  %v5925_v63 = vadd.f32 1.0, %v4566_v13  ;;  %4569 = vpow2.f32 %v4240_v48  ;;  %v5976_v52 = vld [vmem:[%s5210_s10 + $0x10] sm:$0xff] }
 0x11e   : > { %v704_v47 = vadd.f32 %v5588_v28, %v616_v21  ;;  %v2019_v53 = vmul.f32 %v5323_v56, %v1603_v60  ;;  %v1609_v22 = vadd.f32 %v4562_v5, %v1608_v19  ;;  %v1322_v7 = vsub.f32 1.0, %v1321_v33 }
 0x11f   : > { %v617_v0 = vadd.f32 %v553_v10, %v425_v45  ;;  %v4568_v32 = vpop.eup %4567  ;;  %vm5932_vm9 = vcmp.eq.f32.partialorder %v1329_v27, 8.507059e+37  ;;  %v1332_v20 = vor.u32 1.1754944e-38, %v1331_v16  ;;  %vm1340_vm4 = vweird.f32 %v5903_v36 }
 0x120   : > { %4571 = vrcp.f32 %v5925_v63  ;;  %2273 = vmatpush.msrb.mxu2 %v2019_v53  ;;  %v1613_v12 = vsel %vm1612_vm6, %v4562_v5, %v1609_v22  ;;  %v1323_v8 = vmul.f32 %v4564_v30, %v1322_v7  ;;  %vm1326_vm5 = vweird.f32 %v4564_v30 }
 0x121   : > { %v1336_v2 = vmul.f32 %v4568_v32, %v5903_v36  ;;  %v1618_v61 = vsel %vm5907_vm0, %v1617_v26, %v1613_v12  ;;  %vm5941_vm7 = vcmp.eq.f32.partialorder %v1344_v34, 8.507059e+37  ;;  %v1346_v54 = vand.u32 2147483648, %v5903_v36  ;;  %vm1327_vm12 = vmor %vm1325_vm1, %vm1326_vm5 }
 0x122   : > { %v4221_v9 = vmul.f32 -1.442695, %v704_v47  ;;  %v2020_v44 = vmul.f32 %v5323_v56, %v1618_v61  ;;  %v1324_v37 = vadd.f32 %v4564_v30, %v1323_v8  ;;  %v705_v35 = vadd.f32 %v5588_v28, %v617_v0 }
 0x123   : > { %v1337_v11 = vsub.f32 1.0, %v1336_v2  ;;  %v4570_v49 = vpop.eup %4569  ;;  %vm1341_vm8 = vweird.f32 %v4568_v32  ;;  %v426_v41 = vmul.f32 %v5652_v62, %v5223_v31  ;;  %v554_v5 = vmul.f32 %v5648_v42, %v5509_v50 }
 0x124   : > { %4573 = vpow2.f32 %v4221_v9  ;;  %2302 = vmatpush.msrb.mxu3 %v2020_v44  ;;  %v1328_v1 = vsel %vm1327_vm12, %v4564_v30, %v1324_v37  ;;  %v5954_v17 = vadd.f32 1.0, %v4570_v49  ;;  %v4222_v4 = vmul.f32 -1.442695, %v705_v35  ;;  %vm1342_vm10 = vmor %vm1340_vm4, %vm1341_vm8 }
 0x125   : > { %v1338_v3 = vmul.f32 %v4568_v32, %v1337_v11  ;;  %v1333_v6 = vsel %vm5932_vm9, %v1332_v20, %v1328_v1  ;;  %v1347_v57 = vor.u32 1.1754944e-38, %v1346_v54  ;;  %v427_v26 = vmul.f32 %v5677_v23, %v5223_v31 }
 0x126   : > { %v4572_v14 = vpop.eup %4571  ;;  %v555_v62 = vmul.f32 %v5679_v46, %v5509_v50  ;;  %v2001_v27 = vmul.f32 %v5323_v56, %v1333_v6  ;;  %v618_v29 = vadd.f32 %v554_v5, %v426_v41  ;;  %v1359_v48 = vand.u32 2147483647, %v5925_v63 }
 0x127   : > { %v1339_v42 = vadd.f32 %v4568_v32, %v1338_v3  ;;  %v1351_v24 = vmul.f32 %v4572_v14, %v5925_v63  ;;  %vm1356_vm11 = vweird.f32 %v4572_v14  ;;  %v1361_v21 = vand.u32 2147483648, %v5925_v63 }
 0x128   : > { %4575 = vrcp.f32 %v5954_v17  ;;  %2216 = vmatpush.msrb.mxu0 %v2001_v27  ;;  %v706_v30 = vadd.f32 %v5588_v28, %v618_v29  ;;  %v1374_v36 = vand.u32 2147483647, %v5954_v17  ;;  %v1376_v10 = vand.u32 2147483648, %v5954_v17 }
 0x129   : > { %v1343_v23 = vsel %vm1342_vm10, %v4568_v32, %v1339_v42  ;;  %v1352_v46 = vsub.f32 1.0, %v1351_v24  ;;  %4577 = vpow2.f32 %v4222_v4  ;;  %v619_v13 = vadd.f32 %v555_v62, %v427_v26 }
 0x12a   : > { %v4574_v16 = vpop.eup %4573  ;;  %v1348_v45 = vsel %vm5941_vm7, %v1347_v57, %v1343_v23  ;;  %v4223_v60 = vmul.f32 -1.442695, %v706_v30  ;;  %vm1355_vm13 = vweird.f32 %v5925_v63  ;;  %vm5982_vm14 = vcmp.eq.f32.partialorder %v1359_v48, 8.507059e+37 }
 0x12b   : > { %v2002_v19 = vmul.f32 %v5323_v56, %v1348_v45  ;;  %v1353_v33 = vmul.f32 %v4572_v14, %v1352_v46  ;;  %v5979_v34 = vadd.f32 1.0, %v4574_v16  ;;  %v707_v53 = vadd.f32 %v5588_v28, %v619_v13  ;;  %vm1357_vm0 = vmor %vm1355_vm13, %vm1356_vm11 }
 0x12c   : > { %v1362_v7 = vor.u32 1.1754944e-38, %v1361_v21  ;;  %v508_v0 = vperm.slane %v5976_v52, 1  ;;  %vm1370_vm1 = vweird.f32 %v5954_v17  ;;  %v380_v25 = vperm.slane %v5976_v52, 0 }
 0x12d   : > { %2245 = vmatpush.msrb.mxu1 %v2002_v19  ;;  %v1354_v22 = vadd.f32 %v4572_v14, %v1353_v33  ;;  %4579 = vrcp.f32 %v5979_v34  ;;  %v4224_v63 = vmul.f32 -1.442695, %v707_v53  ;;  %vm5993_vm2 = vcmp.eq.f32.partialorder %v1374_v36, 8.507059e+37 }
 0x12e   : > { %v4576_v32 = vpop.eup %4575  ;;  %4581 = vpow2.f32 %v4223_v60  ;;  %v1377_v61 = vor.u32 1.1754944e-38, %v1376_v10  ;;  %v381_v38 = vperm.slane %v5976_v52, 2  ;;  %v1089_v9 = vand.u32 2147483647, %v5979_v34 }
 0x12f   : > { %v4578_v20 = vpop.eup %4577  ;;  %v1358_v12 = vsel %vm1357_vm0, %v4572_v14, %v1354_v22  ;;  %v1366_v8 = vmul.f32 %v4576_v32, %v5954_v17  ;;  %4583 = vpow2.f32 %v4224_v63  ;;  %v1091_v35 = vand.u32 2147483648, %v5979_v34 }
 0x130   : > { %v1363_v54 = vsel %vm5982_vm14, %v1362_v7, %v1358_v12  ;;  %v6001_v44 = vadd.f32 1.0, %v4578_v20  ;;  %v6005_v49 = vperm.slane %v508_v0, 1  ;;  %vm1085_vm15 = vweird.f32 %v5979_v34 }
 0x131   : > { %v2003_v37 = vmul.f32 %v5323_v56, %v1363_v54  ;;  %v1367_v11 = vsub.f32 1.0, %v1366_v8  ;;  %v6010_v5 = vperm.slane %v380_v25, 0  ;;  %vm1371_vm6 = vweird.f32 %v4576_v32 }
 0x132   : > { %4585 = vrcp.f32 %v6001_v44  ;;  %v1106_v41 = vand.u32 2147483648, %v6001_v44  ;;  %v604_v4 = vmul.f32 %v6005_v49, %v5258_v58  ;;  %v509_v14 = vperm.slane %v5976_v52, 3  ;;  %vm1372_vm4 = vmor %vm1370_vm1, %vm1371_vm6 }
 0x133   : > { %v4580_v1 = vpop.eup %4579  ;;  %2274 = vmatpush.msrb.mxu2 %v2003_v37  ;;  %v1368_v3 = vmul.f32 %v4576_v32, %v1367_v11  ;;  %vm6016_vm9 = vcmp.eq.f32.partialorder %v1089_v9, 8.507059e+37  ;;  %v476_v62 = vmul.f32 %v6010_v5, %v5243_v43  ;;  %v6022_v27 = vperm.slane %v381_v38, 0 }
 0x134   : > { %v4582_v6 = vpop.eup %4581  ;;  %v1081_v57 = vmul.f32 %v4580_v1, %v5979_v34  ;;  %v1092_v24 = vor.u32 1.1754944e-38, %v1091_v35  ;;  %v1104_v29 = vand.u32 2147483647, %v6001_v44  ;;  %vm1086_vm5 = vweird.f32 %v4580_v1 }
 0x135   : > { %v1369_v42 = vadd.f32 %v4576_v32, %v1368_v3  ;;  %v6025_v48 = vadd.f32 1.0, %v4582_v6  ;;  %v4584_v21 = vpop.eup %4583  ;;  %v1107_v46 = vor.u32 1.1754944e-38, %v1106_v41  ;;  %v477_v30 = vmul.f32 %v6022_v27, %v5243_v43  ;;  %vm1087_vm8 = vmor %vm1085_vm15, %vm1086_vm5 }
 0x136   : > { %v1082_v23 = vsub.f32 1.0, %v1081_v57  ;;  %vm1100_vm7 = vweird.f32 %v6001_v44  ;;  %v668_v45 = vadd.f32 %v604_v4, %v476_v62  ;;  %v6033_v36 = vperm.slane %v509_v14, 1 }
 0x137   : > { %v1373_v16 = vsel %vm1372_vm4, %v4576_v32, %v1369_v42  ;;  %4587 = vrcp.f32 %v6025_v48  ;;  %v1121_v19 = vand.u32 2147483648, %v6025_v48  ;;  %v6038_v33 = vadd.f32 1.0, %v4584_v21 }
 0x138   : > { %v4586_v10 = vpop.eup %4585  ;;  %v1378_v13 = vsel %vm5993_vm2, %v1377_v61, %v1373_v16  ;;  %v1083_v17 = vmul.f32 %v4580_v1, %v1082_v23  ;;  %vm6042_vm12 = vcmp.eq.f32.partialorder %v1104_v29, 8.507059e+37  ;;  %v382_v22 = vperm.slane %v5976_v52, 4 }
 0x139   : > { %v2004_v60 = vmul.f32 %v5323_v56, %v1378_v13  ;;  %v1096_v47 = vmul.f32 %v4586_v10, %v6001_v44  ;;  %v510_v7 = vperm.slane %v5976_v52, 5  ;;  %v1119_v32 = vand.u32 2147483647, %v6025_v48 }
 0x13a   : > { %v1084_v0 = vadd.f32 %v4580_v1, %v1083_v17  ;;  %4589 = vrcp.f32 %v6038_v33  ;;  %v383_v63 = vperm.slane %v5976_v52, 6  ;;  %vm1101_vm10 = vweird.f32 %v4586_v10 }
 0x13b   : > { %2303 = vmatpush.msrb.mxu3 %v2004_v60  ;;  %v1097_v25 = vsub.f32 1.0, %v1096_v47  ;;  %v1136_v20 = vand.u32 2147483648, %v6038_v33  ;;  %v756_v12 = vadd.f32 %v5284_v15, %v668_v45  ;;  %vm1115_vm11 = vweird.f32 %v6025_v48  ;;  %vm1102_vm1 = vmor %vm1100_vm7, %vm1101_vm10 }
 0x13c   : > { %v1088_v8 = vsel %vm1087_vm8, %v4580_v1, %v1084_v0  ;;  %v1122_v2 = vor.u32 1.1754944e-38, %v1121_v19  ;;  %v1134_v61 = vand.u32 2147483647, %v6038_v33  ;;  %v605_v38 = vmul.f32 %v6033_v36, %v5258_v58 }
 0x13d   : > { %v4588_v54 = vpop.eup %4587  ;;  %v1093_v34 = vsel %vm6016_vm9, %v1092_v24, %v1088_v8  ;;  %v1098_v9 = vmul.f32 %v4586_v10, %v1097_v25  ;;  %v6062_v37 = vperm.slane %v382_v22, 0  ;;  %v6064_v11 = vperm.slane %v510_v7, 1 }
 0x13e   : > { %v1985_v35 = vmul.f32 %v5323_v56, %v1093_v34  ;;  %v1111_v41 = vmul.f32 %v4588_v54, %v6025_v48  ;;  %vm6068_vm13 = vcmp.eq.f32.partialorder %v1119_v32, 8.507059e+37  ;;  %v1137_v3 = vor.u32 1.1754944e-38, %v1136_v20 }
 0x13f   : > { %v4273_v4 = vmul.f32 -1.442695, %v756_v12  ;;  %v1099_v14 = vadd.f32 %v4586_v10, %v1098_v9  ;;  %vm1116_vm14 = vweird.f32 %v4588_v54  ;;  %vm1130_vm0 = vweird.f32 %v6038_v33 }
 0x140   : > { %v669_v6 = vadd.f32 %v605_v38, %v477_v30  ;;  %v606_v57 = vmul.f32 %v6064_v11, %v5258_v58  ;;  %v4590_v26 = vpop.eup %4589  ;;  %2217 = vmatpush.msrb.mxu0 %v1985_v35  ;;  %v1112_v62 = vsub.f32 1.0, %v1111_v41  ;;  %v478_v42 = vmul.f32 %v6062_v37, %v5243_v43  ;;  %vm1117_vm15 = vmor %vm1115_vm11, %vm1116_vm14 }
 0x141   : > { %4591 = vpow2.f32 %v4273_v4  ;;  %v511_v24 = vperm.slane %v5976_v52, 7  ;;  %v1103_v29 = vsel %vm1102_vm1, %v4586_v10, %v1099_v14  ;;  %v1126_v21 = vmul.f32 %v4590_v26, %v6038_v33  ;;  %v6121_v33 = vld [vmem:[%s8370_s6 + $0x8] sm:$0xff] }
 0x142   : > { %v757_v23 = vadd.f32 %v5284_v15, %v669_v6  ;;  %v6083_v30 = vperm.slane %v383_v63, 0  ;;  %v1108_v16 = vsel %vm6042_vm12, %v1107_v46, %v1103_v29  ;;  %v1113_v45 = vmul.f32 %v4588_v54, %v1112_v62  ;;  %4282 = vmatmul.msk.f32.gmra.mxu0 %vm2073_vm3, %v6121_v33  ;;  %4286 = vmatmul.msk.f32.gmra.mxu1 %vm2073_vm3, %v6121_v33 }
 0x143   : > { %vm1131_vm2 = vweird.f32 %v4590_v26  ;;  %v670_v44 = vadd.f32 %v606_v57, %v478_v42  ;;  %v1986_v13 = vmul.f32 %v5323_v56, %v1108_v16  ;;  %v1127_v17 = vsub.f32 1.0, %v1126_v21  ;;  %4290 = vmatmul.msk.f32.gmra.mxu2 %vm2073_vm3, %v6121_v33  ;;  %4294 = vmatmul.msk.f32.gmra.mxu3 %vm2073_vm3, %v6121_v33 }
 0x144   : > { %v4274_v19 = vmul.f32 -1.442695, %v757_v23  ;;  %v6088_v60 = vperm.slane %v511_v24, 1  ;;  %v1114_v52 = vadd.f32 %v4588_v54, %v1113_v45  ;;  %v460_v47 = vmul.f32 %v6010_v5, %v5237_v40  ;;  %vm1132_vm6 = vmor %vm1130_vm0, %vm1131_vm2 }
 0x145   : > { %v758_v10 = vadd.f32 %v5284_v15, %v670_v44  ;;  %v588_v22 = vmul.f32 %v6005_v49, %v5260_v59  ;;  %2246 = vmatpush.msrb.mxu1 %v1986_v13  ;;  %v1128_v46 = vmul.f32 %v4590_v26, %v1127_v17  ;;  %v479_v53 = vmul.f32 %v6083_v30, %v5243_v43 }
 0x146   : > { %4593 = vpow2.f32 %v4274_v19  ;;  %v607_v7 = vmul.f32 %v6088_v60, %v5258_v58  ;;  %v1118_v32 = vsel %vm1117_vm15, %v4588_v54, %v1114_v52  ;;  %v589_v20 = vmul.f32 %v6033_v36, %v5260_v59 }
 0x147   : > { %v4592_v0 = vpop.eup %4591  ;;  %v4275_v63 = vmul.f32 -1.442695, %v758_v10  ;;  %v652_v25 = vadd.f32 %v588_v22, %v460_v47  ;;  %v1123_v12 = vsel %vm6068_vm13, %v1122_v2, %v1118_v32  ;;  %v1129_v48 = vadd.f32 %v4590_v26, %v1128_v46 }
 0x148   : > { %v6106_v8 = vadd.f32 1.0, %v4592_v0  ;;  %v461_v38 = vmul.f32 %v6022_v27, %v5237_v40  ;;  %v1987_v34 = vmul.f32 %v5323_v56, %v1123_v12  ;;  %v671_v54 = vadd.f32 %v607_v7, %v479_v53 }
 0x149   : > { %4595 = vpow2.f32 %v4275_v63  ;;  %v740_v9 = vadd.f32 %v5320_v55, %v652_v25  ;;  %v1133_v35 = vsel %vm1132_vm6, %v4590_v26, %v1129_v48  ;;  %vm1135_vm9 = vcmp.eq.f32.partialorder %v1134_v61, 8.507059e+37 }
 0x14a   : > { %4597 = vrcp.f32 %v6106_v8  ;;  %v653_v2 = vadd.f32 %v589_v20, %v461_v38  ;;  %2275 = vmatpush.msrb.mxu2 %v1987_v34  ;;  %v1138_v41 = vsel %vm1135_vm9, %v1137_v3, %v1133_v35  ;;  %v759_v1 = vadd.f32 %v5284_v15, %v671_v54 }
 0x14b   : > { %v4257_v4 = vmul.f32 -1.442695, %v740_v9  ;;  %v1988_v6 = vmul.f32 %v5323_v56, %v1138_v41  ;;  %v1869_v61 = vand.u32 2147483647, %v6106_v8  ;;  %v1871_v3 = vand.u32 2147483648, %v6106_v8 }
 0x14c   : > { %v4594_v14 = vpop.eup %4593  ;;  %v741_v57 = vadd.f32 %v5320_v55, %v653_v2  ;;  %v4276_v62 = vmul.f32 -1.442695, %v759_v1  ;;  %v590_v42 = vmul.f32 %v6064_v11, %v5260_v59  ;;  %v462_v21 = vmul.f32 %v6062_v37, %v5237_v40 }
 0x14d   : > { %v6125_v26 = vadd.f32 1.0, %v4594_v14  ;;  %4599 = vpow2.f32 %v4257_v4  ;;  %2304 = vmatpush.msrb.mxu3 %v1988_v6  ;;  %v591_v45 = vmul.f32 %v6088_v60, %v5260_v59  ;;  %vm1865_vm4 = vweird.f32 %v6106_v8 }
 0x14e   : > { %v4258_v29 = vmul.f32 -1.442695, %v741_v57  ;;  %vm6147_vm5 = vcmp.eq.f32.partialorder %v1869_v61, 8.507059e+37  ;;  %v654_v17 = vadd.f32 %v590_v42, %v462_v21  ;;  %v1872_v19 = vor.u32 1.1754944e-38, %v1871_v3 }
 0x14f   : > { %v4596_v24 = vpop.eup %4595  ;;  %4601 = vrcp.f32 %v6125_v26  ;;  %v1884_v52 = vand.u32 2147483647, %v6125_v26  ;;  %v463_v10 = vmul.f32 %v6083_v30, %v5237_v40  ;;  %v1886_v46 = vand.u32 2147483648, %v6125_v26 }
 0x150   : > { %v4598_v23 = vpop.eup %4597  ;;  %v6141_v16 = vadd.f32 1.0, %v4596_v24  ;;  %4603 = vpow2.f32 %v4276_v62  ;;  %v742_v53 = vadd.f32 %v5320_v55, %v654_v17  ;;  %vm1880_vm7 = vweird.f32 %v6125_v26 }
 0x151   : > { %v1861_v44 = vmul.f32 %v4598_v23, %v6106_v8  ;;  %v655_v32 = vadd.f32 %v591_v45, %v463_v10  ;;  %vm1866_vm12 = vweird.f32 %v4598_v23  ;;  %vm6163_vm8 = vcmp.eq.f32.partialorder %v1884_v52, 8.507059e+37 }
 0x152   : > { %4605 = vrcp.f32 %v6141_v16  ;;  %v1901_v7 = vand.u32 2147483648, %v6141_v16  ;;  %v1899_v20 = vand.u32 2147483647, %v6141_v16  ;;  %v4259_v12 = vmul.f32 -1.442695, %v742_v53  ;;  %vm1867_vm11 = vmor %vm1865_vm4, %vm1866_vm12 }
 0x153   : > { %v4600_v47 = vpop.eup %4599  ;;  %v1862_v22 = vsub.f32 1.0, %v1861_v44  ;;  %4607 = vpow2.f32 %v4258_v29  ;;  %v743_v54 = vadd.f32 %v5320_v55, %v655_v32  ;;  %v1887_v35 = vor.u32 1.1754944e-38, %v1886_v46 }
 0x154   : > { %v6159_v0 = vadd.f32 1.0, %v4600_v47  ;;  %vm1895_vm10 = vweird.f32 %v6141_v16  ;;  %v1902_v4 = vor.u32 1.1754944e-38, %v1901_v7  ;;  %v444_v14 = vmul.f32 %v6010_v5, %v5205_v18 }
 0x155   : > { %v4602_v63 = vpop.eup %4601  ;;  %v1863_v25 = vmul.f32 %v4598_v23, %v1862_v22  ;;  %vm6177_vm13 = vcmp.eq.f32.partialorder %v1899_v20, 8.507059e+37  ;;  %v572_v8 = vmul.f32 %v6005_v49, %v8429_v51  ;;  %v4260_v24 = vmul.f32 -1.442695, %v743_v54 }
 0x156   : > { %v4604_v48 = vpop.eup %4603  ;;  %v1876_v38 = vmul.f32 %v4602_v63, %v6125_v26  ;;  %4609 = vrcp.f32 %v6159_v0  ;;  %vm1881_vm14 = vweird.f32 %v4602_v63  ;;  %vm1625_vm0 = vweird.f32 %v6159_v0 }
 0x157   : > { %v1864_v9 = vadd.f32 %v4598_v23, %v1863_v25  ;;  %v6170_v2 = vadd.f32 1.0, %v4604_v48  ;;  %4611 = vpow2.f32 %v4259_v12  ;;  %v1631_v52 = vand.u32 2147483648, %v6159_v0  ;;  %vm1882_vm1 = vmor %vm1880_vm7, %vm1881_vm14 }
 0x158   : > { %v4606_v41 = vpop.eup %4605  ;;  %v1877_v1 = vsub.f32 1.0, %v1876_v38  ;;  %v636_v47 = vadd.f32 %v572_v8, %v444_v14  ;;  %v445_v53 = vmul.f32 %v6022_v27, %v5205_v18 }
 0x159   : > { %v4608_v6 = vpop.eup %4607  ;;  %v1868_v57 = vsel %vm1867_vm11, %v4598_v23, %v1864_v9  ;;  %v1891_v61 = vmul.f32 %v4606_v41, %v6141_v16  ;;  %4613 = vrcp.f32 %v6170_v2  ;;  %v1629_v23 = vand.u32 2147483647, %v6159_v0 }
 0x15a   : > { %v1873_v3 = vsel %vm6147_vm5, %v1872_v19, %v1868_v57  ;;  %v1878_v42 = vmul.f32 %v4602_v63, %v1877_v1  ;;  %v1914_v17 = vand.u32 2147483647, %v6170_v2  ;;  %v6191_v10 = vadd.f32 1.0, %v4608_v6 }
 0x15b   : > { %v2037_v29 = vmul.f32 %v5323_v56, %v1873_v3  ;;  %v1892_v21 = vsub.f32 1.0, %v1891_v61  ;;  %vm1896_vm2 = vweird.f32 %v4606_v41  ;;  %vm1910_vm15 = vweird.f32 %v6170_v2 }
 0x15c   : > { %v4610_v45 = vpop.eup %4609  ;;  %v1879_v44 = vadd.f32 %v4602_v63, %v1878_v42  ;;  %4615 = vrcp.f32 %v6191_v10  ;;  %v1916_v25 = vand.u32 2147483648, %v6170_v2  ;;  %vm1897_vm6 = vmor %vm1895_vm10, %vm1896_vm2  ;;  %vm6207_vm9 = vcmp.eq.f32.partialorder %v1914_v17, 8.507059e+37 }
 0x15d   : > { %2330 = vmatpush.msra.mxu0 %v2037_v29  ;;  %v1893_v13 = vmul.f32 %v4606_v41, %v1892_v21  ;;  %v1621_v19 = vmul.f32 %v4610_v45, %v6159_v0  ;;  %v4612_v22 = vpop.eup %4611  ;;  %vm6211_vm4 = vcmp.eq.f32.partialorder %v1629_v23, 8.507059e+37  ;;  %vm1626_vm5 = vweird.f32 %v4610_v45 }
 0x15e   : > { %v1883_v46 = vsel %vm1882_vm1, %v4602_v63, %v1879_v44  ;;  %v6215_v9 = vadd.f32 1.0, %v4612_v22  ;;  %4617 = vpow2.f32 %v4260_v24  ;;  %v724_v1 = vadd.f32 %v8430_v39, %v636_v47  ;;  %vm1627_vm12 = vmor %vm1625_vm0, %vm1626_vm5 }
 0x15f   : > { %v4614_v7 = vpop.eup %4613  ;;  %v1888_v32 = vsel %vm6163_vm8, %v1887_v35, %v1883_v46  ;;  %v1894_v26 = vadd.f32 %v4606_v41, %v1893_v13  ;;  %v1622_v20 = vsub.f32 1.0, %v1621_v19  ;;  %v1632_v57 = vor.u32 1.1754944e-38, %v1631_v52 }
 0x160   : > { %v2038_v12 = vmul.f32 %v5323_v56, %v1888_v32  ;;  %v1906_v63 = vmul.f32 %v4614_v7, %v6170_v2  ;;  %4619 = vrcp.f32 %v6215_v9  ;;  %vm1911_vm7 = vweird.f32 %v4614_v7 }
 0x161   : > { %v1898_v34 = vsel %vm1897_vm6, %v4606_v41, %v1894_v26  ;;  %v1623_v54 = vmul.f32 %v4610_v45, %v1622_v20  ;;  %v1917_v8 = vor.u32 1.1754944e-38, %v1916_v25  ;;  %v4241_v62 = vmul.f32 -1.442695, %v724_v1  ;;  %vm1912_vm10 = vmor %vm1910_vm15, %vm1911_vm7 }
 0x162   : > { %2359 = vmatpush.msra.mxu1 %v2038_v12  ;;  %v1903_v16 = vsel %vm6177_vm13, %v1902_v4, %v1898_v34  ;;  %v1907_v35 = vsub.f32 1.0, %v1906_v63  ;;  %v4616_v61 = vpop.eup %4615  ;;  %vm1640_vm8 = vweird.f32 %v6191_v10  ;;  %v573_v42 = vmul.f32 %v6033_v36, %v8429_v51 }
 0x163   : > { %v2039_v14 = vmul.f32 %v5323_v56, %v1903_v16  ;;  %v1624_v6 = vadd.f32 %v4610_v45, %v1623_v54  ;;  %v1636_v3 = vmul.f32 %v4616_v61, %v6191_v10  ;;  %v1644_v21 = vand.u32 2147483647, %v6191_v10 }
 0x164   : > { %v1908_v41 = vmul.f32 %v4614_v7, %v1907_v35  ;;  %v1646_v23 = vand.u32 2147483648, %v6191_v10  ;;  %4621 = vpow2.f32 %v4241_v62  ;;  %v637_v44 = vadd.f32 %v573_v42, %v445_v53  ;;  %v4618_v17 = vpop.eup %4617 }
 0x165   : > { %2388 = vmatpush.msra.mxu2 %v2039_v14  ;;  %v1628_v4 = vsel %vm1627_vm12, %v4610_v45, %v1624_v6  ;;  %v1637_v45 = vsub.f32 1.0, %v1636_v3  ;;  %vm1641_vm11 = vweird.f32 %v4616_v61  ;;  %v446_v13 = vmul.f32 %v6062_v37, %v5205_v18 }
 0x166   : > { %v1909_v24 = vadd.f32 %v4614_v7, %v1908_v41  ;;  %v1633_v29 = vsel %vm6211_vm4, %v1632_v57, %v1628_v4  ;;  %v574_v19 = vmul.f32 %v6064_v11, %v8429_v51  ;;  %v4620_v47 = vpop.eup %4619  ;;  %v6242_v46 = vadd.f32 1.0, %v4618_v17  ;;  %vm1642_vm14 = vmor %vm1640_vm8, %vm1641_vm11 }
 0x167   : > { %v2021_v0 = vmul.f32 %v5323_v56, %v1633_v29  ;;  %v1638_v2 = vmul.f32 %v4616_v61, %v1637_v45  ;;  %v725_v32 = vadd.f32 %v8430_v39, %v637_v44  ;;  %vm6246_vm13 = vcmp.eq.f32.partialorder %v1644_v21, 8.507059e+37 }
 0x168   : > { %v1913_v52 = vsel %vm1912_vm10, %v4614_v7, %v1909_v24  ;;  %v1651_v26 = vmul.f32 %v4620_v47, %v6215_v9  ;;  %v638_v25 = vadd.f32 %v574_v19, %v446_v13  ;;  %v1647_v12 = vor.u32 1.1754944e-38, %v1646_v23 }
 0x169   : > { %v1918_v22 = vsel %vm6207_vm9, %v1917_v8, %v1913_v52  ;;  %2331 = vmatpush.msra.mxu0 %v2021_v0  ;;  %v1639_v20 = vadd.f32 %v4616_v61, %v1638_v2  ;;  %4623 = vrcp.f32 %v6242_v46  ;;  %v447_v63 = vmul.f32 %v6083_v30, %v5205_v18 }
 0x16a   : > { %v2040_v53 = vmul.f32 %v5323_v56, %v1918_v22  ;;  %v1652_v48 = vsub.f32 1.0, %v1651_v26  ;;  %v1661_v38 = vand.u32 2147483648, %v6215_v9  ;;  %v4242_v34 = vmul.f32 -1.442695, %v725_v32  ;;  %v4622_v16 = vpop.eup %4621 }
 0x16b   : > { %v726_v54 = vadd.f32 %v8430_v39, %v638_v25  ;;  %v1643_v35 = vsel %vm1642_vm14, %v4616_v61, %v1639_v20  ;;  %vm1656_vm0 = vweird.f32 %v4620_v47  ;;  %v1659_v1 = vand.u32 2147483647, %v6215_v9 }
 0x16c   : > { %2417 = vmatpush.msra.mxu3 %v2040_v53  ;;  %v575_v14 = vmul.f32 %v6088_v60, %v8429_v51  ;;  %v1648_v6 = vsel %vm6246_vm13, %v1647_v12, %v1643_v35  ;;  %v1653_v57 = vmul.f32 %v4620_v47, %v1652_v48  ;;  %v6264_v10 = vadd.f32 1.0, %v4622_v16 }
 0x16d   : > { %v428_v41 = vmul.f32 %v6010_v5, %v5223_v31  ;;  %v2022_v8 = vmul.f32 %v5323_v56, %v1648_v6  ;;  %4625 = vpow2.f32 %v4242_v34  ;;  %v4243_v62 = vmul.f32 -1.442695, %v726_v54 }
 0x16e   : > { %v639_v61 = vadd.f32 %v575_v14, %v447_v63  ;;  %v1654_v4 = vadd.f32 %v4620_v47, %v1653_v57  ;;  %vm1655_vm1 = vweird.f32 %v6215_v9  ;;  %v1662_v3 = vor.u32 1.1754944e-38, %v1661_v38 }
 0x16f   : > { %4627 = vrcp.f32 %v6264_v10  ;;  %v4624_v42 = vpop.eup %4623  ;;  %2360 = vmatpush.msra.mxu1 %v2022_v8  ;;  %vm1657_vm2 = vmor %vm1655_vm1, %vm1656_vm0  ;;  %v1674_v24 = vand.u32 2147483647, %v6242_v46  ;;  %v556_v29 = vmul.f32 %v6005_v49, %v5509_v50  ;;  %vm1660_vm15 = vcmp.eq.f32.partialorder %v1659_v1, 8.507059e+37 }
 0x170   : > { %4629 = vpow2.f32 %v4243_v62  ;;  %v727_v5 = vadd.f32 %v8430_v39, %v639_v61  ;;  %v1658_v21 = vsel %vm1657_vm2, %v4620_v47, %v1654_v4  ;;  %v1666_v23 = vmul.f32 %v4624_v42, %v6242_v46 }
 0x171   : > { %vm1670_vm6 = vweird.f32 %v6242_v46  ;;  %v1663_v9 = vsel %vm1660_vm15, %v1662_v3, %v1658_v21  ;;  %v1676_v0 = vand.u32 2147483648, %v6242_v46  ;;  %v620_v44 = vadd.f32 %v556_v29, %v428_v41 }
 0x172   : > { %v4244_v45 = vmul.f32 -1.442695, %v727_v5  ;;  %v2023_v17 = vmul.f32 %v5323_v56, %v1663_v9  ;;  %v1667_v52 = vsub.f32 1.0, %v1666_v23  ;;  %v429_v13 = vmul.f32 %v6022_v27, %v5223_v31 }
 0x173   : > { %v557_v49 = vmul.f32 %v6033_v36, %v5509_v50  ;;  %v4626_v19 = vpop.eup %4625  ;;  %vm1671_vm9 = vweird.f32 %v4624_v42  ;;  %vm6284_vm4 = vcmp.eq.f32.partialorder %v1674_v24, 8.507059e+37  ;;  %v708_v22 = vadd.f32 %v5588_v28, %v620_v44 }
 0x174   : > { %4631 = vpow2.f32 %v4244_v45  ;;  %2389 = vmatpush.msra.mxu2 %v2023_v17  ;;  %v1668_v32 = vmul.f32 %v4624_v42, %v1667_v52  ;;  %v6289_v53 = vadd.f32 1.0, %v4626_v19  ;;  %v430_v27 = vmul.f32 %v6062_v37, %v5223_v31  ;;  %vm1672_vm5 = vmor %vm1670_vm6, %vm1671_vm9  ;;  %v6339_v19 = vld [vmem:[%s5210_s10 + $0x18] sm:$0xff] }
 0x175   : > { %v4628_v2 = vpop.eup %4627  ;;  %v558_v36 = vmul.f32 %v6064_v11, %v5509_v50  ;;  %v1677_v26 = vor.u32 1.1754944e-38, %v1676_v0  ;;  %v1389_v20 = vand.u32 2147483647, %v6264_v10  ;;  %v4225_v12 = vmul.f32 -1.442695, %v708_v22 }
 0x176   : > { %v4630_v7 = vpop.eup %4629  ;;  %v1381_v25 = vmul.f32 %v4628_v2, %v6264_v10  ;;  %v1669_v63 = vadd.f32 %v4624_v42, %v1668_v32  ;;  %v1391_v48 = vand.u32 2147483648, %v6264_v10  ;;  %4633 = vrcp.f32 %v6289_v53 }
 0x177   : > { %v621_v38 = vadd.f32 %v557_v49, %v429_v13  ;;  %vm1386_vm7 = vweird.f32 %v4628_v2  ;;  %v6302_v11 = vadd.f32 1.0, %v4630_v7  ;;  %4635 = vpow2.f32 %v4225_v12 }
 0x178   : > { %v1382_v37 = vsub.f32 1.0, %v1381_v25  ;;  %v1673_v34 = vsel %vm1672_vm5, %v4624_v42, %v1669_v63  ;;  %v1404_v54 = vand.u32 2147483647, %v6289_v53  ;;  %v622_v35 = vadd.f32 %v558_v36, %v430_v27 }
 0x179   : > { %v709_v16 = vadd.f32 %v5588_v28, %v621_v38  ;;  %v1678_v14 = vsel %vm6284_vm4, %v1677_v26, %v1673_v34  ;;  %v1406_v57 = vand.u32 2147483648, %v6289_v53  ;;  %4637 = vrcp.f32 %v6302_v11 }
 0x17a   : > { %v4632_v1 = vpop.eup %4631  ;;  %v1383_v6 = vmul.f32 %v4628_v2, %v1382_v37  ;;  %v2024_v46 = vmul.f32 %v5323_v56, %v1678_v14  ;;  %vm1385_vm12 = vweird.f32 %v6264_v10  ;;  %v710_v41 = vadd.f32 %v5588_v28, %v622_v35 }
 0x17b   : > { %vm6313_vm8 = vcmp.eq.f32.partialorder %v1389_v20, 8.507059e+37  ;;  %v6317_v61 = vadd.f32 1.0, %v4632_v1  ;;  %v4226_v4 = vmul.f32 -1.442695, %v709_v16  ;;  %vm1387_vm10 = vmor %vm1385_vm12, %vm1386_vm7  ;;  %v1392_v42 = vor.u32 1.1754944e-38, %v1391_v48 }
 0x17c   : > { %v1384_v8 = vadd.f32 %v4628_v2, %v1383_v6  ;;  %v4634_v3 = vpop.eup %4633  ;;  %2418 = vmatpush.msra.mxu3 %v2024_v46  ;;  %vm1400_vm11 = vweird.f32 %v6289_v53  ;;  %v1419_v24 = vand.u32 2147483647, %v6302_v11  ;;  %v431_v10 = vmul.f32 %v6083_v30, %v5223_v31 }
 0x17d   : > { %v4636_v5 = vpop.eup %4635  ;;  %v1396_v21 = vmul.f32 %v4634_v3, %v6289_v53  ;;  %vm6325_vm13 = vcmp.eq.f32.partialorder %v1404_v54, 8.507059e+37  ;;  %v1407_v9 = vor.u32 1.1754944e-38, %v1406_v57  ;;  %4639 = vrcp.f32 %v6317_v61 }
 0x17e   : > { %v1388_v29 = vsel %vm1387_vm10, %v4628_v2, %v1384_v8  ;;  %v1421_v45 = vand.u32 2147483648, %v6302_v11  ;;  %v4227_v44 = vmul.f32 -1.442695, %v710_v41  ;;  %v559_v30 = vmul.f32 %v6088_v60, %v5509_v50  ;;  %v6373_v8 = vld [vmem:[%s8370_s6 + $0x10] sm:$0xff] }
 0x17f   : > { %v1393_v0 = vsel %vm6313_vm8, %v1392_v42, %v1388_v29  ;;  %v4638_v17 = vpop.eup %4637  ;;  %v1397_v13 = vsub.f32 1.0, %v1396_v21  ;;  %v6336_v49 = vadd.f32 1.0, %v4636_v5  ;;  %4641 = vpow2.f32 %v4226_v4  ;;  %4283 = vmatmul.msk.f32.gmra.mxu0 %vm2073_vm3, %v6373_v8  ;;  %4287 = vmatmul.msk.f32.gmra.mxu1 %vm2073_vm3, %v6373_v8 }
 0x180   : > { %v2005_v52 = vmul.f32 %v5323_v56, %v1393_v0  ;;  %v1411_v47 = vmul.f32 %v4638_v17, %v6302_v11  ;;  %vm1415_vm14 = vweird.f32 %v6302_v11  ;;  %vm6343_vm0 = vcmp.eq.f32.partialorder %v1419_v24, 8.507059e+37  ;;  %4291 = vmatmul.msk.f32.gmra.mxu2 %vm2073_vm3, %v6373_v8  ;;  %4295 = vmatmul.msk.f32.gmra.mxu3 %vm2073_vm3, %v6373_v8 }
 0x181   : > { %v1434_v2 = vand.u32 2147483647, %v6317_v61  ;;  %v1398_v60 = vmul.f32 %v4634_v3, %v1397_v13  ;;  %vm1401_vm1 = vweird.f32 %v4634_v3  ;;  %v1436_v32 = vand.u32 2147483648, %v6317_v61 }
 0x182   : > { %2332 = vmatpush.msra.mxu0 %v2005_v52  ;;  %4643 = vrcp.f32 %v6336_v49  ;;  %v1412_v27 = vsub.f32 1.0, %v1411_v47  ;;  %v1422_v36 = vor.u32 1.1754944e-38, %v1421_v45  ;;  %v384_v7 = vperm.slane %v6339_v19, 0  ;;  %vm1402_vm15 = vmor %vm1400_vm11, %vm1401_vm1 }
 0x183   : > { %4645 = vpow2.f32 %v4227_v44  ;;  %v4640_v26 = vpop.eup %4639  ;;  %v1399_v25 = vadd.f32 %v4634_v3, %v1398_v60  ;;  %vm1430_vm2 = vweird.f32 %v6317_v61  ;;  %v623_v20 = vadd.f32 %v559_v30, %v431_v10 }
 0x184   : > { %v512_v12 = vperm.slane %v6339_v19, 1  ;;  %v1413_v63 = vmul.f32 %v4638_v17, %v1412_v27  ;;  %vm1416_vm6 = vweird.f32 %v4638_v17  ;;  %v1426_v48 = vmul.f32 %v4640_v26, %v6317_v61  ;;  %v6410_v61 = vld [vmem:[%s8370_s6 + $0x18] sm:$0xff] }
 0x185   : > { %vm6356_vm9 = vcmp.eq.f32.partialorder %v1434_v2, 8.507059e+37  ;;  %v4642_v37 = vpop.eup %4641  ;;  %v1403_v34 = vsel %vm1402_vm15, %v4634_v3, %v1399_v25  ;;  %v1437_v54 = vor.u32 1.1754944e-38, %v1436_v32  ;;  %v711_v16 = vadd.f32 %v5588_v28, %v623_v20  ;;  %vm1417_vm4 = vmor %vm1415_vm14, %vm1416_vm6 }
 0x186   : > { %v6361_v35 = vperm.slane %v512_v12, 1  ;;  %v1408_v1 = vsel %vm6325_vm13, %v1407_v9, %v1403_v34  ;;  %v1414_v53 = vadd.f32 %v4638_v17, %v1413_v63  ;;  %v1427_v14 = vsub.f32 1.0, %v1426_v48 }
 0x187   : > { %v6365_v6 = vadd.f32 1.0, %v4642_v37  ;;  %v2006_v46 = vmul.f32 %v5323_v56, %v1408_v1  ;;  %v4228_v41 = vmul.f32 -1.442695, %v711_v16  ;;  %v6375_v62 = vperm.slane %v384_v7, 0  ;;  %4284 = vmatmul.msk.f32.gmra.mxu0 %vm2073_vm3, %v6410_v61  ;;  %4288 = vmatmul.msk.f32.gmra.mxu1 %vm2073_vm3, %v6410_v61 }
 0x188   : > { %v4644_v57 = vpop.eup %4643  ;;  %v608_v4 = vmul.f32 %v6361_v35, %v5258_v58  ;;  %v1418_v42 = vsel %vm1417_vm4, %v4638_v17, %v1414_v53  ;;  %v1428_v24 = vmul.f32 %v4640_v26, %v1427_v14  ;;  %vm1431_vm5 = vweird.f32 %v4640_v26  ;;  %4292 = vmatmul.msk.f32.gmra.mxu2 %vm2073_vm3, %v6410_v61  ;;  %4296 = vmatmul.msk.f32.gmra.mxu3 %vm2073_vm3, %v6410_v61 }
 0x189   : > { %v4646_v3 = vpop.eup %4645  ;;  %v1141_v10 = vmul.f32 %v4644_v57, %v6336_v49  ;;  %2361 = vmatpush.msra.mxu1 %v2006_v46  ;;  %v1423_v11 = vsel %vm6343_vm0, %v1422_v36, %v1418_v42  ;;  %v1149_v5 = vand.u32 2147483647, %v6336_v49  ;;  %v1151_v29 = vand.u32 2147483648, %v6336_v49  ;;  %vm1432_vm7 = vmor %vm1430_vm2, %vm1431_vm5 }
 0x18a   : > { %4647 = vrcp.f32 %v6365_v6  ;;  %v2007_v21 = vmul.f32 %v5323_v56, %v1423_v11  ;;  %v1429_v23 = vadd.f32 %v4640_v26, %v1428_v24  ;;  %v480_v0 = vmul.f32 %v6375_v62, %v5243_v43 }
 0x18b   : > { %v1142_v9 = vsub.f32 1.0, %v1141_v10  ;;  %vm1146_vm12 = vweird.f32 %v4644_v57  ;;  %v6399_v45 = vadd.f32 1.0, %v4646_v3  ;;  %4649 = vpow2.f32 %v4228_v41 }
 0x18c   : > { %v385_v44 = vperm.slane %v6339_v19, 2  ;;  %2390 = vmatpush.msra.mxu2 %v2007_v21  ;;  %v1433_v30 = vsel %vm1432_vm7, %v4640_v26, %v1429_v23  ;;  %v1164_v52 = vand.u32 2147483647, %v6365_v6  ;;  %v672_v13 = vadd.f32 %v608_v4, %v480_v0 }
 0x18d   : > { %v1143_v17 = vmul.f32 %v4644_v57, %v1142_v9  ;;  %v1438_v47 = vsel %vm6356_vm9, %v1437_v54, %v1433_v30  ;;  %vm1145_vm8 = vweird.f32 %v6336_v49  ;;  %4651 = vrcp.f32 %v6399_v45 }
 0x18e   : > { %v2008_v22 = vmul.f32 %v5323_v56, %v1438_v47  ;;  %vm6413_vm10 = vcmp.eq.f32.partialorder %v1149_v5, 8.507059e+37  ;;  %v760_v32 = vadd.f32 %v5284_v15, %v672_v13  ;;  %vm1147_vm11 = vmor %vm1145_vm8, %vm1146_vm12  ;;  %v1152_v49 = vor.u32 1.1754944e-38, %v1151_v29  ;;  %v6471_v13 = vld [vmem:[%s8370_s6] sm:$0xff] }
 0x18f   : > { %v1144_v2 = vadd.f32 %v4644_v57, %v1143_v17  ;;  %vm1160_vm13 = vweird.f32 %v6365_v6  ;;  %v1166_v36 = vand.u32 2147483648, %v6365_v6  ;;  %v513_v7 = vperm.slane %v6339_v19, 3  ;;  %4297 = vmatmul.msk.f32.vlgmr.msrb.gmra.mxu0 %vm2073_vm3, %v6471_v13  ;;  %4301 = vmatmul.msk.f32.vlgmr.msrb.gmra.mxu1 %vm2073_vm3, %v6471_v13 }
 0x190   : > { %v4648_v27 = vpop.eup %4647  ;;  %2419 = vmatpush.msra.mxu3 %v2008_v22  ;;  %vm6423_vm14 = vcmp.eq.f32.partialorder %v1164_v52, 8.507059e+37  ;;  %v1179_v12 = vand.u32 2147483647, %v6399_v45  ;;  %v6430_v63 = vperm.slane %v385_v44, 0  ;;  %v1181_v37 = vand.u32 2147483648, %v6399_v45  ;;  %4305 = vmatmul.msk.f32.vlgmr.msrb.gmra.mxu2 %vm2073_vm3, %v6471_v13 }
 0x191   : > { %v1148_v26 = vsel %vm1147_vm11, %v4644_v57, %v1144_v2  ;;  %v1156_v25 = vmul.f32 %v4648_v27, %v6365_v6  ;;  %v4650_v48 = vpop.eup %4649  ;;  %v4277_v34 = vmul.f32 -1.442695, %v760_v32  ;;  %v6439_v54 = vperm.slane %v513_v7, 1  ;;  %4309 = vmatmul.msk.f32.vlgmr.msrb.gmra.mxu3 %vm2073_vm3, %v6471_v13 }
 0x192   : > { %v1153_v38 = vsel %vm6413_vm10, %v1152_v49, %v1148_v26  ;;  %v6442_v53 = vadd.f32 1.0, %v4650_v48  ;;  %v514_v14 = vperm.slane %v6339_v19, 5  ;;  %v481_v46 = vmul.f32 %v6430_v63, %v5243_v43 }
 0x193   : > { %v1989_v16 = vmul.f32 %v5323_v56, %v1153_v38  ;;  %v1157_v1 = vsub.f32 1.0, %v1156_v25  ;;  %v4652_v57 = vpop.eup %4651  ;;  %4653 = vpow2.f32 %v4277_v34  ;;  %v609_v41 = vmul.f32 %v6439_v54, %v5258_v58 }
 0x194   : > { %v386_v4 = vperm.slane %v6339_v19, 4  ;;  %vm1161_vm0 = vweird.f32 %v4648_v27  ;;  %v1171_v42 = vmul.f32 %v4652_v57, %v6399_v45  ;;  %4655 = vrcp.f32 %v6442_v53 }
 0x195   : > { %2333 = vmatpush.msra.mxu0 %v1989_v16  ;;  %v1158_v3 = vmul.f32 %v4648_v27, %v1157_v1  ;;  %v1167_v24 = vor.u32 1.1754944e-38, %v1166_v36  ;;  %vm1175_vm1 = vweird.f32 %v6399_v45  ;;  %vm6455_vm2 = vcmp.eq.f32.partialorder %v1179_v12, 8.507059e+37  ;;  %vm1162_vm15 = vmor %vm1160_vm13, %vm1161_vm0 }
 0x196   : > { %v673_v11 = vadd.f32 %v609_v41, %v481_v46  ;;  %v1172_v29 = vsub.f32 1.0, %v1171_v42  ;;  %v6459_v21 = vperm.slane %v514_v14, 1  ;;  %v387_v23 = vperm.slane %v6339_v19, 6 }
 0x197   : > { %v1159_v5 = vadd.f32 %v4648_v27, %v1158_v3  ;;  %v1182_v9 = vor.u32 1.1754944e-38, %v1181_v37  ;;  %v6465_v44 = vperm.slane %v386_v4, 0  ;;  %v515_v30 = vperm.slane %v6339_v19, 7  ;;  %4298 = vmatmul.msk.f32.gmra.mxu0 %vm2073_vm3, %v6121_v33  ;;  %4302 = vmatmul.msk.f32.gmra.mxu1 %vm2073_vm3, %v6121_v33 }
 0x198   : > { %v761_v0 = vadd.f32 %v5284_v15, %v673_v11  ;;  %v1173_v52 = vmul.f32 %v4652_v57, %v1172_v29  ;;  %vm1176_vm6 = vweird.f32 %v4652_v57  ;;  %v610_v6 = vmul.f32 %v6459_v21, %v5258_v58  ;;  %4306 = vmatmul.msk.f32.gmra.mxu2 %vm2073_vm3, %v6121_v33 }
 0x199   : > { %v1163_v17 = vsel %vm1162_vm15, %v4648_v27, %v1159_v5  ;;  %v4654_v47 = vpop.eup %4653  ;;  %v482_v2 = vmul.f32 %v6465_v44, %v5243_v43  ;;  %v6485_v60 = vperm.slane %v515_v30, 1  ;;  %v6492_v7 = vperm.slane %v387_v23, 0  ;;  %vm1177_vm9 = vmor %vm1175_vm1, %vm1176_vm6  ;;  %4310 = vmatmul.msk.f32.gmra.mxu3 %vm2073_vm3, %v6121_v33 }
 0x19a   : > { %v1168_v22 = vsel %vm6423_vm14, %v1167_v24, %v1163_v17  ;;  %v4278_v19 = vmul.f32 -1.442695, %v761_v0  ;;  %v4656_v32 = vpop.eup %4655  ;;  %v1174_v49 = vadd.f32 %v4652_v57, %v1173_v52  ;;  %v6490_v36 = vadd.f32 1.0, %v4654_v47 }
 0x19b   : > { %v1990_v27 = vmul.f32 %v5323_v56, %v1168_v22  ;;  %v1186_v26 = vmul.f32 %v4656_v32, %v6442_v53  ;;  %v674_v25 = vadd.f32 %v610_v6, %v482_v2  ;;  %v611_v20 = vmul.f32 %v6485_v60, %v5258_v58 }
 0x19c   : > { %4657 = vpow2.f32 %v4278_v19  ;;  %v1178_v12 = vsel %vm1177_vm9, %v4652_v57, %v1174_v49  ;;  %v1196_v48 = vand.u32 2147483648, %v6442_v53  ;;  %v483_v38 = vmul.f32 %v6492_v7, %v5243_v43 }
 0x19d   : > { %2362 = vmatpush.msra.mxu1 %v1990_v27  ;;  %4659 = vrcp.f32 %v6490_v36  ;;  %v1183_v45 = vsel %vm6455_vm2, %v1182_v9, %v1178_v12  ;;  %v1187_v37 = vsub.f32 1.0, %v1186_v26  ;;  %vm1190_vm4 = vweird.f32 %v6442_v53 }
 0x19e   : > { %v762_v34 = vadd.f32 %v5284_v15, %v674_v25  ;;  %v1991_v16 = vmul.f32 %v5323_v56, %v1183_v45  ;;  %v675_v58 = vadd.f32 %v611_v20, %v483_v38  ;;  %v464_v1 = vmul.f32 %v6375_v62, %v5237_v40 }
 0x19f   : > { %v592_v14 = vmul.f32 %v6361_v35, %v5260_v59  ;;  %v1188_v57 = vmul.f32 %v4656_v32, %v1187_v37  ;;  %vm1191_vm5 = vweird.f32 %v4656_v32  ;;  %v1194_v43 = vand.u32 2147483647, %v6442_v53  ;;  %4299 = vmatmul.msk.f32.gmra.mxu0 %vm2073_vm3, %v6373_v8  ;;  %4303 = vmatmul.msk.f32.gmra.mxu1 %vm2073_vm3, %v6373_v8 }
 0x1a0   : > { %v4279_v46 = vmul.f32 -1.442695, %v762_v34  ;;  %2391 = vmatpush.msra.mxu2 %v1991_v16  ;;  %v1197_v41 = vor.u32 1.1754944e-38, %v1196_v48  ;;  %v763_v4 = vadd.f32 %v5284_v15, %v675_v58  ;;  %v593_v42 = vmul.f32 %v6439_v54, %v5260_v59  ;;  %vm1192_vm7 = vmor %vm1190_vm4, %vm1191_vm5 }
 0x1a1   : > { %v656_v3 = vadd.f32 %v592_v14, %v464_v1  ;;  %v1189_v10 = vadd.f32 %v4656_v32, %v1188_v57  ;;  %v465_v11 = vmul.f32 %v6430_v63, %v5237_v40  ;;  %v594_v5 = vmul.f32 %v6459_v21, %v5260_v59  ;;  %4307 = vmatmul.msk.f32.gmra.mxu2 %vm2073_vm3, %v6373_v8 }
 0x1a2   : > { %v4658_v24 = vpop.eup %4657  ;;  %4661 = vpow2.f32 %v4279_v46  ;;  %v4280_v23 = vmul.f32 -1.442695, %v763_v4  ;;  %v466_v0 = vmul.f32 %v6465_v44, %v5237_v40  ;;  %vm1195_vm12 = vcmp.eq.f32.partialorder %v1194_v43, 8.507059e+37  ;;  %4311 = vmatmul.msk.f32.gmra.mxu3 %vm2073_vm3, %v6373_v8 }
 0x1a3   : > { %v4660_v15 = vpop.eup %4659  ;;  %v6528_v29 = vadd.f32 1.0, %v4658_v24  ;;  %v744_v9 = vadd.f32 %v5320_v55, %v656_v3  ;;  %v1193_v30 = vsel %vm1192_vm7, %v4656_v32, %v1189_v10  ;;  %v657_v52 = vadd.f32 %v593_v42, %v465_v11 }
 0x1a4   : > { %v1921_v17 = vmul.f32 %v4660_v15, %v6490_v36  ;;  %v1198_v53 = vsel %vm1195_vm12, %v1197_v41, %v1193_v30  ;;  %v658_v6 = vadd.f32 %v594_v5, %v466_v0  ;;  %v1929_v19 = vand.u32 2147483647, %v6490_v36 }
 0x1a5   : > { %4663 = vrcp.f32 %v6528_v29  ;;  %v1992_v47 = vmul.f32 %v5323_v56, %v1198_v53  ;;  %v1931_v2 = vand.u32 2147483648, %v6490_v36  ;;  %v4261_v27 = vmul.f32 -1.442695, %v744_v9 }
 0x1a6   : > { %v1922_v22 = vsub.f32 1.0, %v1921_v17  ;;  %4665 = vpow2.f32 %v4280_v23  ;;  %v745_v33 = vadd.f32 %v5320_v55, %v657_v52  ;;  %v746_v32 = vadd.f32 %v5320_v55, %v658_v6 }
 0x1a7   : > { %2420 = vmatpush.msra.mxu3 %v1992_v47  ;;  %vm1926_vm8 = vweird.f32 %v4660_v15  ;;  %v595_v25 = vmul.f32 %v6485_v60, %v5260_v59  ;;  %vm1925_vm10 = vweird.f32 %v6490_v36  ;;  %4667 = vpow2.f32 %v4261_v27  ;;  %4300 = vmatmul.msk.f32.gmra.mxu0 %vm2073_vm3, %v6410_v61 }
 0x1a8   : > { %v4662_v49 = vpop.eup %4661  ;;  %v1923_v26 = vmul.f32 %v4660_v15, %v1922_v22  ;;  %v4262_v12 = vmul.f32 -1.442695, %v745_v33  ;;  %vm6549_vm11 = vcmp.eq.f32.partialorder %v1929_v19, 8.507059e+37  ;;  %v4263_v45 = vmul.f32 -1.442695, %v746_v32  ;;  %vm1927_vm13 = vmor %vm1925_vm10, %vm1926_vm8  ;;  %4304 = vmatmul.msk.f32.gmra.mxu1 %vm2073_vm3, %v6410_v61 }
 0x1a9   : > { %v6547_v20 = vadd.f32 1.0, %v4662_v49  ;;  %v467_v37 = vmul.f32 %v6492_v7, %v5237_v40  ;;  %v1932_v59 = vor.u32 1.1754944e-38, %v1931_v2  ;;  %v1944_v36 = vand.u32 2147483647, %v6528_v29  ;;  %4308 = vmatmul.msk.f32.gmra.mxu2 %vm2073_vm3, %v6410_v61 }
 0x1aa   : > { %v1924_v48 = vadd.f32 %v4660_v15, %v1923_v26  ;;  %v1946_v16 = vand.u32 2147483648, %v6528_v29  ;;  %v448_v46 = vmul.f32 %v6375_v62, %v5205_v18  ;;  %v576_v41 = vmul.f32 %v6361_v35, %v8429_v51  ;;  %4312 = vmatmul.msk.f32.gmra.mxu3 %vm2073_vm3, %v6410_v61 }
 0x1ab   : > { %v4664_v34 = vpop.eup %4663  ;;  %4669 = vrcp.f32 %v6547_v20  ;;  %v659_v14 = vadd.f32 %v595_v25, %v467_v37  ;;  %vm1940_vm14 = vweird.f32 %v6528_v29  ;;  %v1959_v10 = vand.u32 2147483647, %v6547_v20 }
 0x1ac   : > { %v4666_v58 = vpop.eup %4665  ;;  %v1928_v40 = vsel %vm1927_vm13, %v4660_v15, %v1924_v48  ;;  %v1936_v1 = vmul.f32 %v4664_v34, %v6528_v29  ;;  %4671 = vpow2.f32 %v4262_v12  ;;  %v1961_v11 = vand.u32 2147483648, %v6547_v20 }
 0x1ad   : > { %v1933_v57 = vsel %vm6549_vm11, %v1932_v59, %v1928_v40  ;;  %v6569_v43 = vadd.f32 1.0, %v4666_v58  ;;  %4673 = vpow2.f32 %v4263_v45  ;;  %v747_v42 = vadd.f32 %v5320_v55, %v659_v14  ;;  %v4668_v24 = vpop.eup %4667 }
 0x1ae   : > { %v2041_v4 = vmul.f32 %v5323_v56, %v1933_v57  ;;  %v1937_v3 = vsub.f32 1.0, %v1936_v1  ;;  %vm1941_vm0 = vweird.f32 %v4664_v34  ;;  %v6581_v15 = vadd.f32 1.0, %v4668_v24 }
 0x1af   : > { %4675 = vrcp.f32 %v6569_v43  ;;  %v4264_v23 = vmul.f32 -1.442695, %v747_v42  ;;  %vm6583_vm1 = vcmp.eq.f32.partialorder %v1944_v36, 8.507059e+37  ;;  %v1947_v55 = vor.u32 1.1754944e-38, %v1946_v16  ;;  %vm6596_vm15 = vmor %vm1940_vm14, %vm1941_vm0  ;;  %4313 = vmatmul.msk.f32.vlgmr.msra.gmra.mxu0 %vm2073_vm3, %v6471_v13 }
 0x1b0   : > { %2446 = vmatpush.msrb.mxu0 %v2041_v4  ;;  %v1938_v5 = vmul.f32 %v4664_v34, %v1937_v3  ;;  %v640_v30 = vadd.f32 %v576_v41, %v448_v46  ;;  %v449_v17 = vmul.f32 %v6430_v63, %v5205_v18  ;;  %vm1955_vm2 = vweird.f32 %v6547_v20  ;;  %4317 = vmatmul.msk.f32.vlgmr.msra.gmra.mxu1 %vm2073_vm3, %v6471_v13 }
 0x1b1   : > { %v4670_v9 = vpop.eup %4669  ;;  %4677 = vrcp.f32 %v6581_v15  ;;  %vm6600_vm6 = vcmp.eq.f32.partialorder %v1959_v10, 8.507059e+37  ;;  %v1962_v19 = vor.u32 1.1754944e-38, %v1961_v11  ;;  %v1974_v2 = vand.u32 2147483647, %v6569_v43  ;;  %4321 = vmatmul.msk.f32.vlgmr.msra.gmra.mxu2 %vm2073_vm3, %v6471_v13 }
 0x1b2   : > { %v4672_v53 = vpop.eup %4671  ;;  %v1939_v52 = vadd.f32 %v4664_v34, %v1938_v5  ;;  %v1951_v6 = vmul.f32 %v4670_v9, %v6547_v20  ;;  %vm1970_vm9 = vweird.f32 %v6569_v43  ;;  %v1976_v49 = vand.u32 2147483648, %v6569_v43  ;;  %4325 = vmatmul.msk.f32.vlgmr.msra.gmra.mxu3 %vm2073_vm3, %v6471_v13 }
 0x1b3   : > { %v6605_v27 = vadd.f32 1.0, %v4672_v53  ;;  %v4674_v29 = vpop.eup %4673  ;;  %4679 = vpow2.f32 %v4264_v23  ;;  %v728_v12 = vadd.f32 %v8430_v39, %v640_v30  ;;  %v577_v48 = vmul.f32 %v6439_v54, %v8429_v51 }
 0x1b4   : > { %v1943_v33 = vsel %vm6596_vm15, %v4664_v34, %v1939_v52  ;;  %v1952_v32 = vsub.f32 1.0, %v1951_v6  ;;  %vm1956_vm4 = vweird.f32 %v4670_v9  ;;  %vm6625_vm5 = vcmp.eq.f32.partialorder %v1974_v2, 8.507059e+37 }
 0x1b5   : > { %v4676_v26 = vpop.eup %4675  ;;  %v1948_v25 = vsel %vm6583_vm1, %v1947_v55, %v1943_v33  ;;  %4681 = vrcp.f32 %v6605_v27  ;;  %v1689_v59 = vand.u32 2147483647, %v6581_v15  ;;  %v1691_v36 = vand.u32 2147483648, %v6581_v15  ;;  %vm1957_vm7 = vmor %vm1955_vm2, %vm1956_vm4 }
 0x1b6   : > { %v2042_v38 = vmul.f32 %v5323_v56, %v1948_v25  ;;  %v1953_v45 = vmul.f32 %v4670_v9, %v1952_v32  ;;  %v1966_v37 = vmul.f32 %v4676_v26, %v6569_v43  ;;  %v6631_v16 = vadd.f32 1.0, %v4674_v29 }
 0x1b7   : > { %v4678_v58 = vpop.eup %4677  ;;  %v1977_v14 = vor.u32 1.1754944e-38, %v1976_v49  ;;  %v6635_v57 = vmul.f32 %v6465_v44, %v5205_v18  ;;  %vm1971_vm12 = vweird.f32 %v4676_v26  ;;  %vm1685_vm8 = vweird.f32 %v6581_v15 }
 0x1b8   : > { %2475 = vmatpush.msrb.mxu1 %v2042_v38  ;;  %v1954_v40 = vadd.f32 %v4670_v9, %v1953_v45  ;;  %v1967_v1 = vsub.f32 1.0, %v1966_v37  ;;  %v1681_v46 = vmul.f32 %v4678_v58, %v6581_v15  ;;  %v4245_v41 = vmul.f32 -1.442695, %v728_v12  ;;  %vm1972_vm11 = vmor %vm1970_vm9, %vm1971_vm12  ;;  %v6685_v37 = vld [vmem:[%s8370_s6 + $0x8] sm:$0xff] }
 0x1b9   : > { %v4680_v4 = vpop.eup %4679  ;;  %4683 = vrcp.f32 %v6631_v16  ;;  %v641_v24 = vadd.f32 %v577_v48, %v449_v17  ;;  %vm6646_vm10 = vcmp.eq.f32.partialorder %v1689_v59, 8.507059e+37  ;;  %v1692_v23 = vor.u32 1.1754944e-38, %v1691_v36  ;;  %4314 = vmatmul.msk.f32.gmra.mxu0 %vm2073_vm3, %v6685_v37  ;;  %4318 = vmatmul.msk.f32.gmra.mxu1 %vm2073_vm3, %v6685_v37 }
 0x1ba   : > { %v1958_v3 = vsel %vm1957_vm7, %v4670_v9, %v1954_v40  ;;  %v1968_v42 = vmul.f32 %v4676_v26, %v1967_v1  ;;  %v1682_v11 = vsub.f32 1.0, %v1681_v46  ;;  %v1704_v30 = vand.u32 2147483647, %v6605_v27  ;;  %4322 = vmatmul.msk.f32.gmra.mxu2 %vm2073_vm3, %v6685_v37  ;;  %4326 = vmatmul.msk.f32.gmra.mxu3 %vm2073_vm3, %v6685_v37 }
 0x1bb   : > { %v4682_v10 = vpop.eup %4681  ;;  %v1963_v20 = vsel %vm6600_vm6, %v1962_v19, %v1958_v3  ;;  %vm1686_vm13 = vweird.f32 %v4678_v58  ;;  %v1706_v53 = vand.u32 2147483648, %v6605_v27  ;;  %v6663_v52 = vadd.f32 1.0, %v4680_v4 }
 0x1bc   : > { %v2043_v9 = vmul.f32 %v5323_v56, %v1963_v20  ;;  %v1969_v0 = vadd.f32 %v4676_v26, %v1968_v42  ;;  %v1696_v55 = vmul.f32 %v4682_v10, %v6605_v27  ;;  %v1683_v17 = vmul.f32 %v4678_v58, %v1682_v11  ;;  %vm1687_vm0 = vmor %vm1685_vm8, %vm1686_vm13 }
 0x1bd   : > { %4685 = vpow2.f32 %v4245_v41  ;;  %v729_v22 = vadd.f32 %v8430_v39, %v641_v24  ;;  %vm1700_vm14 = vweird.f32 %v6605_v27  ;;  %vm1701_vm1 = vweird.f32 %v4682_v10 }
 0x1be   : > { %2504 = vmatpush.msrb.mxu2 %v2043_v9  ;;  %v1973_v6 = vsel %vm1972_vm11, %v4676_v26, %v1969_v0  ;;  %v1697_v47 = vsub.f32 1.0, %v1696_v55  ;;  %v1684_v2 = vadd.f32 %v4678_v58, %v1683_v17  ;;  %4687 = vrcp.f32 %v6663_v52  ;;  %vm1702_vm15 = vmor %vm1700_vm14, %vm1701_vm1 }
 0x1bf   : > { %v1978_v19 = vsel %vm6625_vm5, %v1977_v14, %v1973_v6  ;;  %v4684_v43 = vpop.eup %4683  ;;  %vm6673_vm2 = vcmp.eq.f32.partialorder %v1704_v30, 8.507059e+37  ;;  %v1707_v26 = vor.u32 1.1754944e-38, %v1706_v53  ;;  %v4246_v12 = vmul.f32 -1.442695, %v729_v22 }
 0x1c0   : > { %v2044_v29 = vmul.f32 %v5323_v56, %v1978_v19  ;;  %v1698_v33 = vmul.f32 %v4682_v10, %v1697_v47  ;;  %v1688_v49 = vsel %vm1687_vm0, %v4678_v58, %v1684_v2  ;;  %v1711_v25 = vmul.f32 %v4684_v43, %v6631_v16 }
 0x1c1   : > { %v1693_v48 = vsel %vm6646_vm10, %v1692_v23, %v1688_v49  ;;  %v1719_v45 = vand.u32 2147483647, %v6631_v16  ;;  %v1721_v15 = vand.u32 2147483648, %v6631_v16  ;;  %4689 = vpow2.f32 %v4246_v12  ;;  %4315 = vmatmul.msk.f32.gmra.mxu0 %vm2073_vm3, %v6373_v8  ;;  %4319 = vmatmul.msk.f32.gmra.mxu1 %vm2073_vm3, %v6373_v8 }
 0x1c2   : > { %2533 = vmatpush.msrb.mxu3 %v2044_v29  ;;  %v1699_v38 = vadd.f32 %v4682_v10, %v1698_v33  ;;  %v2025_v34 = vmul.f32 %v5323_v56, %v1693_v48  ;;  %v1712_v59 = vsub.f32 1.0, %v1711_v25  ;;  %v578_v36 = vmul.f32 %v6459_v21, %v8429_v51  ;;  %4323 = vmatmul.msk.f32.gmra.mxu2 %vm2073_vm3, %v6373_v8 }
 0x1c3   : > { %v4686_v58 = vpop.eup %4685  ;;  %vm1716_vm6 = vweird.f32 %v4684_v43  ;;  %v451_v1 = vmul.f32 %v6492_v7, %v5205_v18  ;;  %v579_v27 = vmul.f32 %v6485_v60, %v8429_v51  ;;  %vm1715_vm9 = vweird.f32 %v6631_v16  ;;  %4327 = vmatmul.msk.f32.gmra.mxu3 %vm2073_vm3, %v6373_v8 }
 0x1c4   : > { %v1703_v40 = vsel %vm1702_vm15, %v4682_v10, %v1699_v38  ;;  %v4688_v14 = vpop.eup %4687  ;;  %2447 = vmatpush.msrb.mxu0 %v2025_v34  ;;  %v1713_v41 = vmul.f32 %v4684_v43, %v1712_v59  ;;  %v6706_v4 = vadd.f32 1.0, %v4686_v58  ;;  %v642_v3 = vadd.f32 %v578_v36, %v6635_v57  ;;  %vm1717_vm5 = vmor %vm1715_vm9, %vm1716_vm6 }
 0x1c5   : > { %v1708_v46 = vsel %vm6673_vm2, %v1707_v26, %v1703_v40  ;;  %v1726_v18 = vmul.f32 %v4688_v14, %v6663_v52  ;;  %v643_v51 = vadd.f32 %v579_v27, %v451_v1  ;;  %vm1720_vm4 = vcmp.eq.f32.partialorder %v1719_v45, 8.507059e+37 }
 0x1c6   : > { %v2026_v42 = vmul.f32 %v5323_v56, %v1708_v46  ;;  %v1714_v24 = vadd.f32 %v4684_v43, %v1713_v41  ;;  %4691 = vrcp.f32 %v6706_v4  ;;  %v432_v10 = vmul.f32 %v6375_v62, %v5223_v31 }
 0x1c7   : > { %v1722_v20 = vor.u32 1.1754944e-38, %v1721_v15  ;;  %v1727_v11 = vsub.f32 1.0, %v1726_v18  ;;  %v730_v57 = vadd.f32 %v8430_v39, %v642_v3  ;;  %v731_v5 = vadd.f32 %v8430_v39, %v643_v51  ;;  %v4690_v16 = vpop.eup %4689 }
 0x1c8   : > { %2476 = vmatpush.msrb.mxu1 %v2026_v42  ;;  %v1718_v23 = vsel %vm1717_vm5, %v4684_v43, %v1714_v24  ;;  %v1734_v9 = vand.u32 2147483647, %v6663_v52  ;;  %v1736_v0 = vand.u32 2147483648, %v6663_v52  ;;  %v560_v55 = vmul.f32 %v6361_v35, %v5509_v50 }
 0x1c9   : > { %v1723_v30 = vsel %vm1720_vm4, %v1722_v20, %v1718_v23  ;;  %v1728_v62 = vmul.f32 %v4688_v14, %v1727_v11  ;;  %vm1731_vm7 = vweird.f32 %v4688_v14  ;;  %v6722_v17 = vadd.f32 1.0, %v4690_v16  ;;  %4316 = vmatmul.msk.f32.gmra.mxu0 %vm2073_vm3, %v6410_v61  ;;  %4320 = vmatmul.msk.f32.gmra.mxu1 %vm2073_vm3, %v6410_v61 }
 0x1ca   : > { %v2027_v53 = vmul.f32 %v5323_v56, %v1723_v30  ;;  %v4247_v39 = vmul.f32 -1.442695, %v730_v57  ;;  %v4248_v6 = vmul.f32 -1.442695, %v731_v5  ;;  %v624_v47 = vadd.f32 %v560_v55, %v432_v10  ;;  %4324 = vmatmul.msk.f32.gmra.mxu2 %vm2073_vm3, %v6410_v61 }
 0x1cb   : > { %v1729_v35 = vadd.f32 %v4688_v14, %v1728_v62  ;;  %vm1730_vm12 = vweird.f32 %v6663_v52  ;;  %4693 = vrcp.f32 %v6722_v17  ;;  %v433_v22 = vmul.f32 %v6430_v63, %v5223_v31  ;;  %4328 = vmatmul.msk.f32.gmra.mxu3 %vm2073_vm3, %v6410_v61 }
 0x1cc   : > { %v4692_v19 = vpop.eup %4691  ;;  %2505 = vmatpush.msrb.mxu2 %v2027_v53  ;;  %vm1732_vm8 = vmor %vm1730_vm12, %vm1731_vm7  ;;  %v1737_v2 = vor.u32 1.1754944e-38, %v1736_v0  ;;  %4695 = vpow2.f32 %v4247_v39  ;;  %v712_v43 = vadd.f32 %v5588_v28, %v624_v47  ;;  %v561_v29 = vmul.f32 %v6439_v54, %v5509_v50 }
 0x1cd   : > { %v1733_v52 = vsel %vm1732_vm8, %v4688_v14, %v1729_v35  ;;  %vm1735_vm10 = vcmp.eq.f32.partialorder %v1734_v9, 8.507059e+37  ;;  %v1441_v33 = vmul.f32 %v4692_v19, %v6706_v4  ;;  %v1449_v63 = vand.u32 2147483647, %v6706_v4 }
 0x1ce   : > { %v1738_v32 = vsel %vm1735_vm10, %v1737_v2, %v1733_v52  ;;  %4697 = vpow2.f32 %v4248_v6  ;;  %v4229_v8 = vmul.f32 -1.442695, %v712_v43  ;;  %v1451_v25 = vand.u32 2147483648, %v6706_v4 }
 0x1cf   : > { %v2028_v49 = vmul.f32 %v5323_v56, %v1738_v32  ;;  %v1442_v26 = vsub.f32 1.0, %v1441_v33  ;;  %v625_v12 = vadd.f32 %v561_v29, %v433_v22  ;;  %v434_v48 = vmul.f32 %v6465_v44, %v5223_v31 }
 0x1d0   : > { %4699 = vpow2.f32 %v4229_v8  ;;  %v562_v54 = vmul.f32 %v6459_v21, %v5509_v50  ;;  %v435_v38 = vmul.f32 %v6492_v7, %v5223_v31  ;;  %vm1446_vm11 = vweird.f32 %v4692_v19 }
 0x1d1   : > { %v4694_v45 = vpop.eup %4693  ;;  %2534 = vmatpush.msrb.mxu3 %v2028_v49  ;;  %v1443_v15 = vmul.f32 %v4692_v19, %v1442_v26  ;;  %v713_v34 = vadd.f32 %v5588_v28, %v625_v12  ;;  %v563_v59 = vmul.f32 %v6485_v60, %v5509_v50  ;;  %vm1445_vm13 = vweird.f32 %v6706_v4 }
 0x1d2   : > { %v4696_v36 = vpop.eup %4695  ;;  %vm6757_vm14 = vcmp.eq.f32.partialorder %v1449_v63, 8.507059e+37  ;;  %v1456_v31 = vmul.f32 %v4694_v45, %v6722_v17  ;;  %v1452_v50 = vor.u32 1.1754944e-38, %v1451_v25  ;;  %vm1447_vm0 = vmor %vm1445_vm13, %vm1446_vm11  ;;  %v1464_v1 = vand.u32 2147483647, %v6722_v17 }
 0x1d3   : > { %v1444_v44 = vadd.f32 %v4692_v19, %v1443_v15  ;;  %v986_v60 = vadd.f32 1.0, %v4696_v36  ;;  %v4230_v7 = vmul.f32 -1.442695, %v713_v34  ;;  %v1466_v27 = vand.u32 2147483648, %v6722_v17 }
 0x1d4   : > { %v4698_v58 = vpop.eup %4697  ;;  %v1457_v40 = vsub.f32 1.0, %v1456_v31  ;;  %v626_v14 = vadd.f32 %v562_v54, %v434_v48  ;;  %vm1461_vm1 = vweird.f32 %v4694_v45  ;;  %v627_v41 = vadd.f32 %v563_v59, %v435_v38 }
 0x1d5   : > { %v1448_v46 = vsel %vm1447_vm0, %v4692_v19, %v1444_v44  ;;  %4701 = vrcp.f32 %v986_v60  ;;  %v6773_v18 = vadd.f32 1.0, %v4698_v58  ;;  %vm1460_vm2 = vweird.f32 %v6722_v17 }
 0x1d6   : > { %v4700_v4 = vpop.eup %4699  ;;  %v1453_v3 = vsel %vm6757_vm14, %v1452_v50, %v1448_v46  ;;  %v1458_v42 = vmul.f32 %v4694_v45, %v1457_v40  ;;  %v714_v61 = vadd.f32 %v5588_v28, %v626_v14  ;;  %4703 = vpow2.f32 %v4230_v7  ;;  %vm1462_vm15 = vmor %vm1460_vm2, %vm1461_vm1 }
 0x1d7   : > { %v2009_v51 = vmul.f32 %v5323_v56, %v1453_v3  ;;  %v6777_v24 = vadd.f32 1.0, %v4700_v4  ;;  %v715_v10 = vadd.f32 %v5588_v28, %v627_v41  ;;  %4705 = vrcp.f32 %v6773_v18 }
 0x1d8   : > { %v1459_v20 = vadd.f32 %v4694_v45, %v1458_v42  ;;  %v1467_v11 = vor.u32 1.1754944e-38, %v1466_v27  ;;  %vm1465_vm6 = vcmp.eq.f32.partialorder %v1464_v1, 8.507059e+37  ;;  %v4231_v5 = vmul.f32 -1.442695, %v714_v61 }
 0x1d9   : > { %2448 = vmatpush.msrb.mxu0 %v2009_v51  ;;  %4707 = vrcp.f32 %v6777_v24  ;;  %v4232_v9 = vmul.f32 -1.442695, %v715_v10  ;;  %v1479_v30 = vand.u32 2147483647, %v986_v60  ;;  %v1481_v62 = vand.u32 2147483648, %v986_v60 }
 0x1da   : > { %v1463_v57 = vsel %vm1462_vm15, %v4694_v45, %v1459_v20  ;;  %4709 = vpow2.f32 %v4231_v5  ;;  %vm1475_vm9 = vweird.f32 %v986_v60  ;;  %vm1490_vm7 = vweird.f32 %v6773_v18 }
 0x1db   : > { %v4702_v16 = vpop.eup %4701  ;;  %v1468_v23 = vsel %vm1465_vm6, %v1467_v11, %v1463_v57  ;;  %4711 = vpow2.f32 %v4232_v9  ;;  %vm6790_vm5 = vcmp.eq.f32.partialorder %v1479_v30, 8.507059e+37  ;;  %v1482_v2 = vor.u32 1.1754944e-38, %v1481_v62  ;;  %v6821_v30 = vpop.permute.xlu1 %2055 }
 0x1dc   : > { %v2010_v0 = vmul.f32 %v5323_v56, %v1468_v23  ;;  %v1471_v28 = vmul.f32 %v4702_v16, %v986_v60  ;;  %v4704_v55 = vpop.eup %4703  ;;  %vm1476_vm4 = vweird.f32 %v4702_v16  ;;  %v1494_v52 = vand.u32 2147483647, %v6773_v18 }
 0x1dd   : > { %v4706_v17 = vpop.eup %4705  ;;  %v6785_v39 = vadd.f32 1.0, %v4704_v55  ;;  %v1496_v33 = vand.u32 2147483648, %v6773_v18  ;;  %vm1477_vm12 = vmor %vm1475_vm9, %vm1476_vm4  ;;  %v1209_v49 = vand.u32 2147483647, %v6777_v24  ;;  %v1211_v26 = vand.u32 2147483648, %v6777_v24 }
 0x1de   : > { %2477 = vmatpush.msrb.mxu1 %v2010_v0  ;;  %v1472_v53 = vsub.f32 1.0, %v1471_v28  ;;  %v1486_v47 = vmul.f32 %v4706_v17, %v6773_v18  ;;  %vm1491_vm8 = vweird.f32 %v4706_v17  ;;  %vm1205_vm11 = vweird.f32 %v6777_v24 }
 0x1df   : > { %v4708_v6 = vpop.eup %4707  ;;  %4713 = vrcp.f32 %v6785_v39  ;;  %vm1492_vm13 = vmor %vm1490_vm7, %vm1491_vm8  ;;  %v1497_v36 = vor.u32 1.1754944e-38, %v1496_v33  ;;  %vm1495_vm14 = vcmp.eq.f32.partialorder %v1494_v52, 8.507059e+37  ;;  %v1212_v44 = vor.u32 1.1754944e-38, %v1211_v26  ;;  %v2190_v26 = vpop.f32.mrf.mxu3 }
 0x1e0   : > { %v1473_v35 = vmul.f32 %v4702_v16, %v1472_v53  ;;  %v1201_v22 = vmul.f32 %v4708_v6, %v6777_v24  ;;  %v1487_v43 = vsub.f32 1.0, %v1486_v47  ;;  %v4710_v63 = vpop.eup %4709  ;;  %vm1206_vm10 = vweird.f32 %v4708_v6  ;;  %v2132_v47 = vpop.f32.mrf.mxu1 }
 0x1e1   : > { %v4712_v25 = vpop.eup %4711  ;;  %v970_v54 = vadd.f32 1.0, %v4710_v63  ;;  %vm1207_vm0 = vmor %vm1205_vm11, %vm1206_vm10  ;;  %vm1210_vm1 = vcmp.eq.f32.partialorder %v1209_v49, 8.507059e+37  ;;  %v1226_v14 = vand.u32 2147483648, %v6785_v39  ;;  %v1224_v41 = vand.u32 2147483647, %v6785_v39 }
 0x1e2   : > { %v1474_v29 = vadd.f32 %v4702_v16, %v1473_v35  ;;  %v1202_v32 = vsub.f32 1.0, %v1201_v22  ;;  %v1488_v8 = vmul.f32 %v4706_v17, %v1487_v43  ;;  %v6803_v15 = vadd.f32 1.0, %v4712_v25 }
 0x1e3   : > { %4715 = vrcp.f32 %v970_v54  ;;  %vm1220_vm15 = vweird.f32 %v6785_v39  ;;  %v1227_v61 = vor.u32 1.1754944e-38, %v1226_v14  ;;  %vm1225_vm9 = vcmp.eq.f32.partialorder %v1224_v41, 8.507059e+37 }
 0x1e4   : > { %v1478_v12 = vsel %vm1477_vm12, %v4702_v16, %v1474_v29  ;;  %v1203_v48 = vmul.f32 %v4708_v6, %v1202_v32  ;;  %v1489_v45 = vadd.f32 %v4706_v17, %v1488_v8  ;;  %4717 = vrcp.f32 %v6803_v15 }
 0x1e5   : > { %v1483_v38 = vsel %vm6790_vm5, %v1482_v2, %v1478_v12  ;;  %v4714_v34 = vpop.eup %4713  ;;  %v1239_v11 = vand.u32 2147483647, %v970_v54  ;;  %v1241_v57 = vand.u32 2147483648, %v970_v54  ;;  %v1254_v9 = vand.u32 2147483647, %v6803_v15  ;;  %v2161_v2 = vpop.f32.mrf.mxu2 }
 0x1e6   : > { %v2011_v59 = vmul.f32 %v5323_v56, %v1483_v38  ;;  %v1204_v21 = vadd.f32 %v4708_v6, %v1203_v48  ;;  %v1493_v31 = vsel %vm1492_vm13, %v4706_v17, %v1489_v45  ;;  %v1216_v50 = vmul.f32 %v4714_v34, %v6785_v39  ;;  %v2103_v17 = vpop.f32.mrf.mxu0  ;;  %v6836_v12 = vpop.permute.xlu2 %2060 }
 0x1e7   : > { %v1498_v60 = vsel %vm1495_vm14, %v1497_v36, %v1493_v31  ;;  %vm1221_vm2 = vweird.f32 %v4714_v34  ;;  %v1256_v0 = vand.u32 2147483648, %v6803_v15  ;;  %vm1235_vm5 = vweird.f32 %v970_v54 }
 0x1e8   : > { %2506 = vmatpush.msrb.mxu2 %v2011_v59  ;;  %v1208_v7 = vsel %vm1207_vm0, %v4708_v6, %v1204_v21  ;;  %v2012_v58 = vmul.f32 %v5323_v56, %v1498_v60  ;;  %v1217_v1 = vsub.f32 1.0, %v1216_v50  ;;  %vm1222_vm6 = vmor %vm1220_vm15, %vm1221_vm2  ;;  %vm1240_vm8 = vcmp.eq.f32.partialorder %v1239_v11, 8.507059e+37 }
 0x1e9   : > { %v1213_v40 = vsel %vm1210_vm1, %v1212_v44, %v1208_v7  ;;  %v4716_v4 = vpop.eup %4715  ;;  %v1242_v62 = vor.u32 1.1754944e-38, %v1241_v57  ;;  %vm1250_vm10 = vweird.f32 %v6803_v15  ;;  %v2104_v6 = vadd.f32 %v2103_v17, %v6821_v30  ;;  %v4978_v7 = vld [vmem:[%s8370_s6 + $0x18] sm:$0xff] }
 0x1ea   : > { %v1993_v27 = vmul.f32 %v5323_v56, %v1213_v40  ;;  %2535 = vmatpush.msrb.mxu3 %v2012_v58  ;;  %v1218_v46 = vmul.f32 %v4714_v34, %v1217_v1  ;;  %v1231_v42 = vmul.f32 %v4716_v4, %v970_v54  ;;  %v4718_v18 = vpop.eup %4717  ;;  %vm1236_vm4 = vweird.f32 %v4716_v4  ;;  %v4977_v54 = vld [vmem:[%s8370_s6 + $0x10] sm:$0xff] }
 0x1eb   : > { %v1246_v10 = vmul.f32 %v4718_v18, %v6803_v15  ;;  %vm1251_vm7 = vweird.f32 %v4718_v18  ;;  %vm1237_vm12 = vmor %vm1235_vm5, %vm1236_vm4  ;;  %vm1255_vm13 = vcmp.eq.f32.partialorder %v1254_v9, 8.507059e+37  ;;  %v1257_v22 = vor.u32 1.1754944e-38, %v1256_v0 }
 0x1ec   : > { %2449 = vmatpush.msrb.mxu0 %v1993_v27  ;;  %v1219_v3 = vadd.f32 %v4714_v34, %v1218_v46  ;;  %v1232_v24 = vsub.f32 1.0, %v1231_v42  ;;  %vm1252_vm11 = vmor %vm1250_vm10, %vm1251_vm7  ;;  %v2133_v19 = vadd.f32 %v2132_v47, %v6821_v30  ;;  %v4345_v52 = vmul.f32 -1.442695, %v2104_v6 }
 0x1ed   : > { %4329 = vmatmul.msk.f32.vlgmr.msrb.gmra.mxu0 %vm2073_vm3, %v6471_v13  ;;  %v1247_v23 = vsub.f32 1.0, %v1246_v10  ;;  %v2162_v33 = vadd.f32 %v2161_v2, %v6821_v30  ;;  %v2191_v25 = vadd.f32 %v2190_v26, %v6821_v30  ;;  %v2164_v10 = vpop.f32.mrf.mxu2 }
 0x1ee   : > { %v1223_v51 = vsel %vm1222_vm6, %v4714_v34, %v1219_v3  ;;  %v1233_v16 = vmul.f32 %v4716_v4, %v1232_v24  ;;  %v4346_v63 = vmul.f32 -1.442695, %v2133_v19  ;;  %4719 = vpow2.f32 %v4345_v52  ;;  %v2106_v48 = vpop.f32.mrf.mxu0  ;;  %v2135_v34 = vpop.f32.mrf.mxu1 }
 0x1ef   : > { %v1228_v20 = vsel %vm1225_vm9, %v1227_v61, %v1223_v51  ;;  %v1248_v55 = vmul.f32 %v4718_v18, %v1247_v23  ;;  %v4347_v49 = vmul.f32 -1.442695, %v2162_v33  ;;  %v2107_v38 = vadd.f32 %v2106_v48, %v6836_v12 }
 0x1f0   : > { %v1994_v5 = vmul.f32 %v5323_v56, %v1228_v20  ;;  %v1234_v28 = vadd.f32 %v4716_v4, %v1233_v16  ;;  %4721 = vpow2.f32 %v4346_v63  ;;  %v6886_v23 = vstv %s338_s12 }
 0x1f1   : > { %v1249_v39 = vadd.f32 %v4718_v18, %v1248_v55  ;;  %4723 = vpow2.f32 %v4347_v49  ;;  %v4361_v15 = vmul.f32 -1.442695, %v2107_v38 }
 0x1f2   : > { %2478 = vmatpush.msrb.mxu1 %v1994_v5  ;;  %v1238_v53 = vsel %vm1237_vm12, %v4716_v4, %v1234_v28 }
 0x1f3   : > { %4333 = vmatmul.msk.f32.vlgmr.msrb.gmra.mxu1 %vm2073_vm3, %v6471_v13  ;;  %v1243_v35 = vsel %vm1240_vm8, %v1242_v62, %v1238_v53  ;;  %v1253_v29 = vsel %vm1252_vm11, %v4718_v18, %v1249_v39  ;;  %v2165_v62 = vadd.f32 %v2164_v10, %v6836_v12 }
 0x1f4   : > { %v1995_v43 = vmul.f32 %v5323_v56, %v1243_v35  ;;  %v1258_v32 = vsel %vm1255_vm13, %v1257_v22, %v1253_v29  ;;  %v4720_v45 = vpop.eup %4719  ;;  %v6903_v35 = vpop.permute.xlu1 %2065 }
 0x1f5   : > { %4330 = vmatmul.msk.f32.gmra.mxu0 %vm2073_vm3, %v6685_v37  ;;  %v1996_v8 = vmul.f32 %v5323_v56, %v1258_v32  ;;  %v4348_v56 = vmul.f32 -1.442695, %v2191_v25  ;;  %v2742_v36 = vadd.f32 1.0, %v4720_v45  ;;  %v2193_v45 = vpop.f32.mrf.mxu3 }
 0x1f6   : > { %2507 = vmatpush.msrb.mxu2 %v1995_v43  ;;  %v4722_v59 = vpop.eup %4721 }
 0x1f7   : > { %4337 = vmatmul.msk.f32.vlgmr.msrb.gmra.mxu2 %vm2073_vm3, %v6471_v13  ;;  %2536 = vmatpush.msrb.mxu3 %v1996_v8  ;;  %4725 = vpow2.f32 %v4348_v56  ;;  %v4724_v21 = vpop.eup %4723  ;;  %v6848_v31 = vadd.f32 1.0, %v4722_v59  ;;  %v2815_v3 = vand.u32 2147483647, %v2742_v36  ;;  %v2817_v51 = vand.u32 2147483648, %v2742_v36 }
 0x1f8   : > { %4341 = vmatmul.msk.f32.vlgmr.msrb.gmra.mxu3 %vm2073_vm3, %v6471_v13  ;;  %v2136_v13 = vadd.f32 %v2135_v34, %v6836_v12  ;;  %4727 = vpow2.f32 %v4361_v15  ;;  %v6856_v50 = vadd.f32 1.0, %v4724_v21  ;;  %vm2811_vm0 = vweird.f32 %v2742_v36 }
 0x1f9   : > { %4729 = vrcp.f32 %v2742_v36  ;;  %v2832_v24 = vand.u32 2147483648, %v6848_v31  ;;  %v2830_v11 = vand.u32 2147483647, %v6848_v31  ;;  %vm6890_vm1 = vcmp.eq.f32.partialorder %v2815_v3, 8.507059e+37 }
 0x1fa   : > { %4731 = vrcp.f32 %v6848_v31  ;;  %v4362_v60 = vmul.f32 -1.442695, %v2136_v13  ;;  %vm2826_vm2 = vweird.f32 %v6848_v31  ;;  %v2818_v53 = vor.u32 1.1754944e-38, %v2817_v51 }
 0x1fb   : > { %4334 = vmatmul.msk.f32.gmra.mxu1 %vm2073_vm3, %v6685_v37  ;;  %4733 = vrcp.f32 %v6856_v50  ;;  %v2833_v39 = vor.u32 1.1754944e-38, %v2832_v24  ;;  %v2847_v6 = vand.u32 2147483648, %v6856_v50  ;;  %vm6908_vm6 = vcmp.eq.f32.partialorder %v2830_v11, 8.507059e+37 }
 0x1fc   : > { %vm2841_vm9 = vweird.f32 %v6856_v50  ;;  %v2845_v29 = vand.u32 2147483647, %v6856_v50  ;;  %v4363_v8 = vmul.f32 -1.442695, %v2165_v62  ;;  %v6959_v24 = vpop.permute.xlu1 %3842  ;;  %v2138_v28 = vpop.f32.mrf.mxu1 }
 0x1fd   : > { %4331 = vmatmul.msk.f32.gmra.mxu0 %vm2073_vm3, %v4977_v54  ;;  %v4726_v44 = vpop.eup %4725  ;;  %v2848_v48 = vor.u32 1.1754944e-38, %v2847_v6 }
 0x1fe   : > { %v6862_v58 = vadd.f32 1.0, %v4726_v44  ;;  %v4728_v40 = vpop.eup %4727  ;;  %vm6939_vm10 = vcmp.eq.f32.partialorder %v2845_v29, 8.507059e+37 }
 0x1ff   : > { %4338 = vmatmul.msk.f32.gmra.mxu2 %vm2073_vm3, %v6685_v37  ;;  %v6866_v1 = vadd.f32 1.0, %v4728_v40 }
 0x200   : > { %4342 = vmatmul.msk.f32.gmra.mxu3 %vm2073_vm3, %v6685_v37  ;;  %4735 = vrcp.f32 %v6862_v58  ;;  %v4730_v37 = vpop.eup %4729  ;;  %vm2856_vm5 = vweird.f32 %v6862_v58  ;;  %v2860_v63 = vand.u32 2147483647, %v6862_v58  ;;  %v2862_v38 = vand.u32 2147483648, %v6862_v58 }
 0x201   : > { %4737 = vpow2.f32 %v4362_v60  ;;  %v6868_v27 = vpop.eup %4731  ;;  %v2807_v14 = vmul.f32 %v4730_v37, %v2742_v36  ;;  %vm2812_vm14 = vweird.f32 %v4730_v37  ;;  %v3057_v33 = vand.u32 2147483648, %v6866_v1 }
 0x202   : > { %v2822_v46 = vmul.f32 %v6868_v27, %v6848_v31  ;;  %4739 = vrcp.f32 %v6866_v1  ;;  %v6874_v4 = vpop.eup %4733  ;;  %vm6897_vm15 = vmor %vm2811_vm0, %vm2812_vm14  ;;  %vm2827_vm4 = vweird.f32 %v6868_v27  ;;  %v3055_v25 = vand.u32 2147483647, %v6866_v1 }
 0x203   : > { %4335 = vmatmul.msk.f32.gmra.mxu1 %vm2073_vm3, %v4977_v54  ;;  %v2808_v41 = vsub.f32 1.0, %v2807_v14  ;;  %v2837_v57 = vmul.f32 %v6874_v4, %v6856_v50  ;;  %vm2842_vm12 = vweird.f32 %v6874_v4  ;;  %vm3051_vm8 = vweird.f32 %v6866_v1 }
 0x204   : > { %v2823_v42 = vsub.f32 1.0, %v2822_v46  ;;  %v3058_v59 = vor.u32 1.1754944e-38, %v3057_v33  ;;  %v2194_v31 = vadd.f32 %v2193_v45, %v6836_v12  ;;  %vm6946_vm14 = vcmp.eq.f32.partialorder %v2860_v63, 8.507059e+37  ;;  %v2109_v46 = vpop.f32.mrf.mxu0 }
 0x205   : > { %4332 = vmatmul.msk.f32.gmra.mxu0 %vm2073_vm3, %v4978_v7  ;;  %v2809_v61 = vmul.f32 %v4730_v37, %v2808_v41  ;;  %v2838_v2 = vsub.f32 1.0, %v2837_v57  ;;  %vm3056_vm0 = vcmp.eq.f32.partialorder %v3055_v25, 8.507059e+37  ;;  %v6953_v41 = vpop.permute.xlu0 %3837  ;;  %v2110_v51 = vadd.f32 %v2109_v46, %v6903_v35 }
 0x206   : > { %v6878_v18 = vpop.eup %4735  ;;  %v2824_v55 = vmul.f32 %v6868_v27, %v2823_v42  ;;  %v4364_v14 = vmul.f32 -1.442695, %v2194_v31 }
 0x207   : > { %4339 = vmatmul.msk.f32.gmra.mxu2 %vm2073_vm3, %v4977_v54  ;;  %v4738_v20 = vpop.eup %4737  ;;  %v2852_v5 = vmul.f32 %v6878_v18, %v6862_v58  ;;  %v2810_v16 = vadd.f32 %v4730_v37, %v2809_v61  ;;  %v2839_v56 = vmul.f32 %v6874_v4, %v2838_v2  ;;  %vm2857_vm13 = vweird.f32 %v6878_v18  ;;  %v2167_v2 = vpop.f32.mrf.mxu2 }
 0x208   : > { %4343 = vmatmul.msk.f32.gmra.mxu3 %vm2073_vm3, %v4977_v54  ;;  %v6888_v9 = vadd.f32 1.0, %v4738_v20  ;;  %v4740_v0 = vpop.eup %4739  ;;  %v2825_v32 = vadd.f32 %v6868_v27, %v2824_v55  ;;  %v2139_v58 = vadd.f32 %v2138_v28, %v6903_v35  ;;  %v2168_v33 = vadd.f32 %v2167_v2, %v6903_v35 }
 0x209   : > { %v3047_v47 = vmul.f32 %v4740_v0, %v6866_v1  ;;  %v2814_v22 = vsel %vm6897_vm15, %v4730_v37, %v2810_v16  ;;  %v2853_v43 = vsub.f32 1.0, %v2852_v5  ;;  %vm3052_vm7 = vweird.f32 %v4740_v0 }
 0x20a   : > { %4741 = vrcp.f32 %v6888_v9  ;;  %v2819_v49 = vsel %vm6890_vm1, %v2818_v53, %v2814_v22  ;;  %vm3053_vm11 = vmor %vm3051_vm8, %vm3052_vm7  ;;  %v2840_v37 = vadd.f32 %v6874_v4, %v2839_v56  ;;  %v3070_v11 = vand.u32 2147483647, %v6888_v9 }
 0x20b   : > { %4336 = vmatmul.msk.f32.gmra.mxu1 %vm2073_vm3, %v4978_v7  ;;  %v3048_v52 = vsub.f32 1.0, %v3047_v47  ;;  %v2854_v54 = vmul.f32 %v6878_v18, %v2853_v43  ;;  %v3767_v13 = vmul.f32 %v6886_v23, %v2819_v49  ;;  %4743 = vpow2.f32 %v4363_v8  ;;  %vm6966_vm1 = vmor %vm2841_vm9, %vm2842_vm12 }
 0x20c   : > { %v3072_v57 = vand.u32 2147483648, %v6888_v9  ;;  %4745 = vpow2.f32 %v4364_v14  ;;  %v2844_v62 = vsel %vm6966_vm1, %v6874_v4, %v2840_v37  ;;  %v2863_v22 = vor.u32 1.1754944e-38, %v2862_v38 }
 0x20d   : > { %v3049_v26 = vmul.f32 %v4740_v0, %v3048_v52  ;;  %v2855_v1 = vadd.f32 %v6878_v18, %v2854_v54  ;;  %v3855_v10 = vmul.f32 %v6953_v41, %v3767_v13  ;;  %v4378_v4 = vmul.f32 -1.442695, %v2139_v58 }
 0x20e   : > { %v3073_v19 = vor.u32 1.1754944e-38, %v3072_v57  ;;  %v4379_v49 = vmul.f32 -1.442695, %v2168_v33 }
 0x20f   : > { %4340 = vmatmul.msk.f32.gmra.mxu2 %vm2073_vm3, %v4978_v7  ;;  %v3050_v34 = vadd.f32 %v4740_v0, %v3049_v26  ;;  %v2196_v26 = vpop.f32.mrf.mxu3 }
 0x210   : > { %4344 = vmatmul.msk.f32.gmra.mxu3 %vm2073_vm3, %v4978_v7  ;;  %vm6929_vm3 = vmor %vm2826_vm2, %vm2827_vm4  ;;  %v4742_v36 = vpop.eup %4741  ;;  %vm3071_vm4 = vcmp.eq.f32.partialorder %v3070_v11, 8.507059e+37  ;;  %v2197_v15 = vadd.f32 %v2196_v26, %v6903_v35  ;;  %v2112_v11 = vpop.f32.mrf.mxu0 }
 0x211   : > { %v2829_v21 = vsel %vm6929_vm3, %v6868_v27, %v2825_v32  ;;  %v3054_v7 = vsel %vm3053_vm11, %v4740_v0, %v3050_v34  ;;  %v3062_v40 = vmul.f32 %v4742_v36, %v6888_v9  ;;  %vm6976_vm2 = vmor %vm2856_vm5, %vm2857_vm13  ;;  %vm3067_vm15 = vweird.f32 %v4742_v36  ;;  %v4744_v55 = vpop.eup %4743 }
 0x212   : > { %v3059_v27 = vsel %vm3056_vm0, %v3058_v59, %v3054_v7  ;;  %v2834_v3 = vsel %vm6908_vm6, %v2833_v39, %v2829_v21  ;;  %v4377_v0 = vmul.f32 -1.442695, %v2110_v51  ;;  %v2859_v17 = vsel %vm6976_vm2, %v6878_v18, %v2855_v1 }
 0x213   : > { %v3783_v42 = vmul.f32 %v6886_v23, %v3059_v27  ;;  %v3063_v61 = vsub.f32 1.0, %v3062_v40  ;;  %vm3066_vm6 = vweird.f32 %v6888_v9  ;;  %v6991_v6 = vadd.f32 1.0, %v4744_v55  ;;  %v4746_v9 = vpop.eup %4745 }
 0x214   : > { %4747 = vpow2.f32 %v4377_v0  ;;  %v3768_v47 = vmul.f32 %v6886_v23, %v2834_v3  ;;  %vm3068_vm9 = vmor %vm3066_vm6, %vm3067_vm15  ;;  %v2849_v18 = vsel %vm6939_vm10, %v2848_v48, %v2844_v62  ;;  %v2864_v29 = vsel %vm6946_vm14, %v2863_v22, %v2859_v17 }
 0x215   : > { %v3871_v16 = vmul.f32 %v6959_v24, %v3783_v42  ;;  %v3064_v50 = vmul.f32 %v4742_v36, %v3063_v61  ;;  %4749 = vrcp.f32 %v6991_v6  ;;  %v7001_v63 = vadd.f32 1.0, %v4746_v9  ;;  %v7035_v61 = vpop.permute.xlu2 %2070 }
 0x216   : > { %4751 = vpow2.f32 %v4378_v4  ;;  %v3769_v8 = vmul.f32 %v6886_v23, %v2849_v18  ;;  %v3856_v56 = vmul.f32 %v6953_v41, %v3768_v47  ;;  %v3770_v48 = vmul.f32 %v6886_v23, %v2864_v29 }
 0x217   : > { %v6989_v53 = vadd.f32 %v3871_v16, %v3855_v10  ;;  %v3065_v39 = vadd.f32 %v4742_v36, %v3064_v50  ;;  %4753 = vrcp.f32 %v7001_v63  ;;  %v3085_v38 = vand.u32 2147483647, %v6991_v6 }
 0x218   : > { %4755 = vpow2.f32 %v4379_v49  ;;  %v7016_v21 = vmul.f32 %v6953_v41, %v3769_v8  ;;  %v7021_v31 = vmul.f32 %v6953_v41, %v3770_v48  ;;  %vm3081_vm5 = vweird.f32 %v6991_v6 }
 0x219   : > { %v3069_v43 = vsel %vm3068_vm9, %v4742_v36, %v3065_v39  ;;  %v3087_v36 = vand.u32 2147483648, %v6991_v6  ;;  %v3100_v60 = vand.u32 2147483647, %v7001_v63  ;;  %vm7027_vm7 = vcmp.eq.f32.partialorder %v3085_v38, 8.507059e+37 }
 0x21a   : > { %v3074_v52 = vsel %vm3071_vm4, %v3073_v19, %v3069_v43  ;;  %v4748_v25 = vpop.eup %4747  ;;  %v3102_v1 = vand.u32 2147483648, %v7001_v63  ;;  %v4380_v27 = vmul.f32 -1.442695, %v2197_v15  ;;  %vm3096_vm3 = vweird.f32 %v7001_v63 }
 0x21b   : > { %v3784_v32 = vmul.f32 %v6886_v23, %v3074_v52  ;;  %v7009_v45 = vadd.f32 1.0, %v4748_v25  ;;  %v4750_v34 = vpop.eup %4749  ;;  %v3088_v46 = vor.u32 1.1754944e-38, %v3087_v36  ;;  %vm7039_vm8 = vcmp.eq.f32.partialorder %v3100_v60, 8.507059e+37  ;;  %v2141_v52 = vpop.f32.mrf.mxu1 }
 0x21c   : > { %v4752_v13 = vpop.eup %4751  ;;  %v3077_v44 = vmul.f32 %v4750_v34, %v6991_v6  ;;  %vm3082_vm12 = vweird.f32 %v4750_v34  ;;  %v2113_v16 = vadd.f32 %v2112_v11, %v7035_v61  ;;  %v3103_v55 = vor.u32 1.1754944e-38, %v3102_v1 }
 0x21d   : > { %v3872_v54 = vmul.f32 %v6959_v24, %v3784_v32  ;;  %4757 = vrcp.f32 %v7009_v45  ;;  %v7025_v7 = vadd.f32 1.0, %v4752_v13  ;;  %v4754_v14 = vpop.eup %4753  ;;  %v3295_v3 = vand.u32 2147483647, %v7009_v45  ;;  %vm3083_vm11 = vmor %vm3081_vm5, %vm3082_vm12 }
 0x21e   : > { %v3078_v40 = vsub.f32 1.0, %v3077_v44  ;;  %v4756_v42 = vpop.eup %4755  ;;  %v3092_v10 = vmul.f32 %v4754_v14, %v7001_v63  ;;  %v3297_v20 = vand.u32 2147483648, %v7009_v45  ;;  %vm3291_vm10 = vweird.f32 %v7009_v45 }
 0x21f   : > { %v7012_v59 = vadd.f32 %v3872_v54, %v3856_v56  ;;  %4759 = vrcp.f32 %v7025_v7  ;;  %v7043_v5 = vadd.f32 1.0, %v4756_v42  ;;  %vm7050_vm13 = vcmp.eq.f32.partialorder %v3295_v3, 8.507059e+37  ;;  %v7089_v42 = vpop.permute.xlu2 %3847 }
 0x220   : > { %v3079_v51 = vmul.f32 %v4750_v34, %v3078_v40  ;;  %4761 = vpow2.f32 %v4380_v27  ;;  %v3093_v28 = vsub.f32 1.0, %v3092_v10  ;;  %v3310_v58 = vand.u32 2147483647, %v7025_v7 }
 0x221   : > { %4763 = vrcp.f32 %v7043_v5  ;;  %vm3097_vm14 = vweird.f32 %v4754_v14  ;;  %v3298_v22 = vor.u32 1.1754944e-38, %v3297_v20  ;;  %vm3306_vm0 = vweird.f32 %v7025_v7 }
 0x222   : > { %v3080_v0 = vadd.f32 %v4750_v34, %v3079_v51  ;;  %v3094_v47 = vmul.f32 %v4754_v14, %v3093_v28  ;;  %v4393_v2 = vmul.f32 -1.442695, %v2113_v16  ;;  %v3312_v29 = vand.u32 2147483648, %v7025_v7  ;;  %vm3098_vm1 = vmor %vm3096_vm3, %vm3097_vm14 }
 0x223   : > { %v4758_v50 = vpop.eup %4757  ;;  %vm7064_vm15 = vcmp.eq.f32.partialorder %v3310_v58, 8.507059e+37  ;;  %v2142_v63 = vadd.f32 %v2141_v52, %v7035_v61  ;;  %v3325_v40 = vand.u32 2147483647, %v7043_v5 }
 0x224   : > { %v3287_v62 = vmul.f32 %v4758_v50, %v7009_v45  ;;  %v3084_v39 = vsel %vm3083_vm11, %v4750_v34, %v3080_v0  ;;  %v3095_v43 = vadd.f32 %v4754_v14, %v3094_v47  ;;  %vm3292_vm2 = vweird.f32 %v4758_v50  ;;  %v2170_v0 = vpop.f32.mrf.mxu2 }
 0x225   : > { %v4760_v19 = vpop.eup %4759  ;;  %v3089_v4 = vsel %vm7027_vm7, %v3088_v46, %v3084_v39  ;;  %4765 = vpow2.f32 %v4393_v2  ;;  %vm3293_vm9 = vmor %vm3291_vm10, %vm3292_vm2  ;;  %v3313_v60 = vor.u32 1.1754944e-38, %v3312_v29  ;;  %v3327_v46 = vand.u32 2147483648, %v7043_v5  ;;  %v2199_v2 = vpop.f32.mrf.mxu3 }
 0x226   : > { %v3288_v6 = vsub.f32 1.0, %v3287_v62  ;;  %v3785_v18 = vmul.f32 %v6886_v23, %v3089_v4  ;;  %v3302_v9 = vmul.f32 %v4760_v19, %v7025_v7  ;;  %v4762_v33 = vpop.eup %4761  ;;  %v3099_v26 = vsel %vm3098_vm1, %v4754_v14, %v3095_v43 }
 0x227   : > { %v7069_v56 = vadd.f32 1.0, %v4762_v33  ;;  %v4764_v48 = vpop.eup %4763  ;;  %v3104_v54 = vsel %vm7039_vm8, %v3103_v55, %v3099_v26  ;;  %vm3307_vm6 = vweird.f32 %v4760_v19  ;;  %v4394_v3 = vmul.f32 -1.442695, %v2142_v63 }
 0x228   : > { %v3289_v32 = vmul.f32 %v4758_v50, %v3288_v6  ;;  %v3873_v49 = vmul.f32 %v6959_v24, %v3785_v18  ;;  %v3303_v25 = vsub.f32 1.0, %v3302_v9  ;;  %v3786_v34 = vmul.f32 %v6886_v23, %v3104_v54  ;;  %vm3308_vm4 = vmor %vm3306_vm0, %vm3307_vm6 }
 0x229   : > { %v3317_v13 = vmul.f32 %v4764_v48, %v7043_v5  ;;  %4767 = vrcp.f32 %v7069_v56  ;;  %vm3322_vm5 = vweird.f32 %v4764_v48  ;;  %vm3321_vm7 = vweird.f32 %v7043_v5 }
 0x22a   : > { %v3290_v38 = vadd.f32 %v4758_v50, %v3289_v32  ;;  %v3937_v15 = vadd.f32 %v3873_v49, %v7016_v21  ;;  %v3304_v36 = vmul.f32 %v4760_v19, %v3303_v25  ;;  %v3874_v37 = vmul.f32 %v6959_v24, %v3786_v34  ;;  %vm3323_vm3 = vmor %vm3321_vm7, %vm3322_vm5 }
 0x22b   : > { %v3318_v27 = vsub.f32 1.0, %v3317_v13  ;;  %v4766_v14 = vpop.eup %4765  ;;  %v3328_v55 = vor.u32 1.1754944e-38, %v3327_v46  ;;  %vm3326_vm12 = vcmp.eq.f32.partialorder %v3325_v40, 8.507059e+37  ;;  %v2171_v5 = vadd.f32 %v2170_v0, %v7035_v61 }
 0x22c   : > { %v3294_v44 = vsel %vm3293_vm9, %v4758_v50, %v3290_v38  ;;  %v3305_v21 = vadd.f32 %v4760_v19, %v3304_v36  ;;  %v7092_v51 = vadd.f32 %v3874_v37, %v7021_v31  ;;  %v7094_v11 = vadd.f32 1.0, %v4766_v14 }
 0x22d   : > { %v3299_v1 = vsel %vm7050_vm13, %v3298_v22, %v3294_v44  ;;  %v3319_v20 = vmul.f32 %v4764_v48, %v3318_v27  ;;  %v3342_v4 = vand.u32 2147483648, %v7069_v56  ;;  %v4395_v6 = vmul.f32 -1.442695, %v2171_v5  ;;  %v2248_v27 = vpop.f32.mrf.mxu1 }
 0x22e   : > { %v3799_v45 = vmul.f32 %v6886_v23, %v3299_v1  ;;  %v3309_v10 = vsel %vm3308_vm4, %v4760_v19, %v3305_v21  ;;  %4769 = vrcp.f32 %v7094_v11  ;;  %v3340_v19 = vand.u32 2147483647, %v7069_v56 }
 0x22f   : > { %v3314_v16 = vsel %vm7064_vm15, %v3313_v60, %v3309_v10  ;;  %v3320_v50 = vadd.f32 %v4764_v48, %v3319_v20  ;;  %v4768_v28 = vpop.eup %4767  ;;  %4771 = vpow2.f32 %v4394_v3  ;;  %v2200_v29 = vadd.f32 %v2199_v2, %v7035_v61 }
 0x230   : > { %v3887_v57 = vmul.f32 %v7089_v42, %v3799_v45  ;;  %v3800_v7 = vmul.f32 %v6886_v23, %v3314_v16  ;;  %v3332_v58 = vmul.f32 %v4768_v28, %v7069_v56  ;;  %vm3337_vm8 = vweird.f32 %v4768_v28 }
 0x231   : > { %v3324_v17 = vsel %vm3323_vm3, %v4764_v48, %v3320_v50  ;;  %vm3336_vm10 = vweird.f32 %v7069_v56  ;;  %4773 = vpow2.f32 %v4395_v6  ;;  %v4396_v49 = vmul.f32 -1.442695, %v2200_v29  ;;  %v2219_v48 = vpop.f32.mrf.mxu0 }
 0x232   : > { %v7103_v31 = vadd.f32 %v6989_v53, %v3887_v57  ;;  %v3888_v62 = vmul.f32 %v7089_v42, %v3800_v7  ;;  %v3329_v39 = vsel %vm3326_vm12, %v3328_v55, %v3324_v17  ;;  %v3333_v53 = vsub.f32 1.0, %v3332_v58  ;;  %vm3338_vm11 = vmor %vm3336_vm10, %vm3337_vm8 }
 0x233   : > { %v3801_v22 = vmul.f32 %v6886_v23, %v3329_v39  ;;  %vm3341_vm13 = vcmp.eq.f32.partialorder %v3340_v19, 8.507059e+37  ;;  %v3343_v26 = vor.u32 1.1754944e-38, %v3342_v4  ;;  %v3535_v38 = vand.u32 2147483647, %v7094_v11  ;;  %v2306_v4 = vpop.f32.mrf.mxu3 }
 0x234   : > { %v7110_v47 = vadd.f32 %v7012_v59, %v3888_v62  ;;  %v4770_v18 = vpop.eup %4769  ;;  %v3334_v9 = vmul.f32 %v4768_v28, %v3333_v53  ;;  %v3537_v63 = vand.u32 2147483648, %v7094_v11  ;;  %v2220_v36 = vadd.f32 %v2219_v48, %v6821_v30 }
 0x235   : > { %v3889_v43 = vmul.f32 %v7089_v42, %v3801_v22  ;;  %v4772_v52 = vpop.eup %4771  ;;  %v3527_v59 = vmul.f32 %v4770_v18, %v7094_v11  ;;  %vm3532_vm14 = vweird.f32 %v4770_v18  ;;  %vm3531_vm0 = vweird.f32 %v7094_v11  ;;  %v7135_v11 = vpop.permute.xlu0 %3852 }
 0x236   : > { %v3335_v32 = vadd.f32 %v4768_v28, %v3334_v9  ;;  %v7121_v8 = vadd.f32 1.0, %v4772_v52  ;;  %vm3533_vm1 = vmor %vm3531_vm0, %vm3532_vm14  ;;  %v3538_v40 = vor.u32 1.1754944e-38, %v3537_v63  ;;  %v4349_v1 = vmul.f32 -1.442695, %v2220_v36 }
 0x237   : > { %v7119_v33 = vadd.f32 %v3937_v15, %v3889_v43  ;;  %v3528_v25 = vsub.f32 1.0, %v3527_v59  ;;  %v4774_v13 = vpop.eup %4773  ;;  %vm3536_vm2 = vcmp.eq.f32.partialorder %v3535_v38, 8.507059e+37  ;;  %v2249_v16 = vadd.f32 %v2248_v27, %v6821_v30 }
 0x238   : > { %v3339_v54 = vsel %vm3338_vm11, %v4768_v28, %v3335_v32  ;;  %4775 = vrcp.f32 %v7121_v8  ;;  %v2792_v37 = vadd.f32 1.0, %v4774_v13  ;;  %v3550_v0 = vand.u32 2147483647, %v7121_v8  ;;  %v2277_v28 = vpop.f32.mrf.mxu2 }
 0x239   : > { %v3344_v56 = vsel %vm3341_vm13, %v3343_v26, %v3339_v54  ;;  %v3529_v34 = vmul.f32 %v4770_v18, %v3528_v25  ;;  %4777 = vpow2.f32 %v4396_v49  ;;  %v4350_v17 = vmul.f32 -1.442695, %v2249_v16  ;;  %v2222_v54 = vpop.f32.mrf.mxu0 }
 0x23a   : > { %v3802_v15 = vmul.f32 %v6886_v23, %v3344_v56  ;;  %4779 = vrcp.f32 %v2792_v37  ;;  %vm3546_vm6 = vweird.f32 %v7121_v8  ;;  %v2278_v39 = vadd.f32 %v2277_v28, %v6821_v30 }
 0x23b   : > { %v3530_v44 = vadd.f32 %v4770_v18, %v3529_v34  ;;  %4781 = vpow2.f32 %v4349_v1  ;;  %v3565_v19 = vand.u32 2147483647, %v2792_v37  ;;  %v3567_v2 = vand.u32 2147483648, %v2792_v37 }
 0x23c   : > { %v3890_v60 = vmul.f32 %v7089_v42, %v3802_v15  ;;  %vm3551_vm4 = vcmp.eq.f32.partialorder %v3550_v0, 8.507059e+37  ;;  %vm3561_vm7 = vweird.f32 %v2792_v37  ;;  %v2223_v13 = vadd.f32 %v2222_v54, %v6836_v12 }
 0x23d   : > { %v3534_v21 = vsel %vm3533_vm1, %v4770_v18, %v3530_v44  ;;  %v4351_v18 = vmul.f32 -1.442695, %v2278_v39  ;;  %vm7154_vm3 = vcmp.eq.f32.partialorder %v3565_v19, 8.507059e+37  ;;  %v3568_v48 = vor.u32 1.1754944e-38, %v3567_v2 }
 0x23e   : > { %v4776_v14 = vpop.eup %4775  ;;  %v7131_v45 = vadd.f32 %v7092_v51, %v3890_v60  ;;  %v3539_v46 = vsel %vm3536_vm2, %v3538_v40, %v3534_v21  ;;  %v3552_v51 = vand.u32 2147483648, %v7121_v8  ;;  %v4365_v27 = vmul.f32 -1.442695, %v2223_v13 }
 0x23f   : > { %v4778_v3 = vpop.eup %4777  ;;  %v3815_v10 = vmul.f32 %v6886_v23, %v3539_v46  ;;  %v3542_v20 = vmul.f32 %v4776_v14, %v7121_v8  ;;  %vm3547_vm15 = vweird.f32 %v4776_v14 }
 0x240   : > { %v7137_v57 = vadd.f32 1.0, %v4778_v3  ;;  %v4780_v58 = vpop.eup %4779  ;;  %v3553_v22 = vor.u32 1.1754944e-38, %v3552_v51  ;;  %vm3548_vm9 = vmor %vm3546_vm6, %vm3547_vm15 }
 0x241   : > { %v3903_v7 = vmul.f32 %v7135_v11, %v3815_v10  ;;  %v3543_v50 = vsub.f32 1.0, %v3542_v20  ;;  %v3557_v53 = vmul.f32 %v4780_v58, %v2792_v37  ;;  %v4782_v6 = vpop.eup %4781  ;;  %vm3562_vm5 = vweird.f32 %v4780_v58 }
 0x242   : > { %4783 = vrcp.f32 %v7137_v57  ;;  %v7150_v29 = vadd.f32 1.0, %v4782_v6  ;;  %v3580_v34 = vand.u32 2147483647, %v7137_v57  ;;  %vm3563_vm12 = vmor %vm3561_vm7, %vm3562_vm5  ;;  %v3582_v36 = vand.u32 2147483648, %v7137_v57 }
 0x243   : > { %v7145_v55 = vadd.f32 %v7103_v31, %v3903_v7  ;;  %v3544_v62 = vmul.f32 %v4776_v14, %v3543_v50  ;;  %4785 = vpow2.f32 %v4350_v17  ;;  %v2307_v31 = vadd.f32 %v2306_v4, %v6821_v30 }
 0x244   : > { %v3558_v9 = vsub.f32 1.0, %v3557_v53  ;;  %4787 = vpow2.f32 %v4351_v18  ;;  %vm3576_vm10 = vweird.f32 %v7137_v57  ;;  %vm3581_vm13 = vcmp.eq.f32.partialorder %v3580_v34, 8.507059e+37  ;;  %v2280_v18 = vpop.f32.mrf.mxu2 }
 0x245   : > { %v3545_v5 = vadd.f32 %v4776_v14, %v3544_v62  ;;  %v4352_v32 = vmul.f32 -1.442695, %v2307_v31  ;;  %4789 = vrcp.f32 %v7150_v29  ;;  %vm2871_vm0 = vweird.f32 %v7150_v29 }
 0x246   : > { %v3559_v49 = vmul.f32 %v4780_v58, %v3558_v9 }
 0x247   : > { %v3549_v43 = vsel %vm3548_vm9, %v4776_v14, %v3545_v5  ;;  %4791 = vpow2.f32 %v4352_v32 }
 0x248   : > { %v4784_v52 = vpop.eup %4783  ;;  %v3554_v59 = vsel %vm3551_vm4, %v3553_v22, %v3549_v43  ;;  %v3560_v63 = vadd.f32 %v4780_v58, %v3559_v49  ;;  %v2875_v43 = vand.u32 2147483647, %v7150_v29 }
 0x249   : > { %v3816_v8 = vmul.f32 %v6886_v23, %v3554_v59  ;;  %v3572_v26 = vmul.f32 %v4784_v52, %v7137_v57  ;;  %v4786_v15 = vpop.eup %4785  ;;  %vm3577_vm8 = vweird.f32 %v4784_v52  ;;  %v2251_v57 = vpop.f32.mrf.mxu1  ;;  %v2281_v59 = vadd.f32 %v2280_v18, %v6836_v12 }
 0x24a   : > { %v3564_v60 = vsel %vm3563_vm12, %v4780_v58, %v3560_v63  ;;  %v7166_v37 = vadd.f32 1.0, %v4786_v15  ;;  %v4788_v1 = vpop.eup %4787  ;;  %vm3578_vm11 = vmor %vm3576_vm10, %vm3577_vm8  ;;  %v2252_v5 = vadd.f32 %v2251_v57, %v6836_v12  ;;  %vm7221_vm2 = vcmp.eq.f32.partialorder %v2875_v43, 8.507059e+37 }
 0x24b   : > { %v3904_v38 = vmul.f32 %v7135_v11, %v3816_v8  ;;  %v3573_v56 = vsub.f32 1.0, %v3572_v26  ;;  %v3569_v21 = vsel %vm7154_vm3, %v3568_v48, %v3564_v60  ;;  %v7173_v3 = vpop.eup %4789  ;;  %v7176_v10 = vadd.f32 1.0, %v4788_v1  ;;  %v2309_v48 = vpop.f32.mrf.mxu3 }
 0x24c   : > { %v3817_v14 = vmul.f32 %v6886_v23, %v3569_v21  ;;  %4793 = vrcp.f32 %v7166_v37  ;;  %v2867_v7 = vmul.f32 %v7173_v3, %v7150_v29  ;;  %v4366_v6 = vmul.f32 -1.442695, %v2252_v5 }
 0x24d   : > { %v7164_v44 = vadd.f32 %v7110_v47, %v3904_v38  ;;  %v3574_v40 = vmul.f32 %v4784_v52, %v3573_v56  ;;  %v3583_v47 = vor.u32 1.1754944e-38, %v3582_v36  ;;  %4795 = vpow2.f32 %v4365_v27  ;;  %v4792_v50 = vpop.eup %4791 }
 0x24e   : > { %v3905_v20 = vmul.f32 %v7135_v11, %v3817_v14  ;;  %4797 = vrcp.f32 %v7176_v10  ;;  %v2868_v58 = vsub.f32 1.0, %v2867_v7  ;;  %v7189_v39 = vadd.f32 1.0, %v4792_v50  ;;  %v2225_v7 = vpop.f32.mrf.mxu0 }
 0x24f   : > { %v3575_v46 = vadd.f32 %v4784_v52, %v3574_v40  ;;  %vm2872_vm14 = vweird.f32 %v7173_v3  ;;  %v2890_v32 = vand.u32 2147483647, %v7166_v37  ;;  %v2892_v8 = vand.u32 2147483648, %v7166_v37 }
 0x250   : > { %v7182_v0 = vadd.f32 %v7119_v33, %v3905_v20  ;;  %v2869_v4 = vmul.f32 %v7173_v3, %v2868_v58  ;;  %4799 = vrcp.f32 %v7189_v39  ;;  %v4367_v25 = vmul.f32 -1.442695, %v2281_v59  ;;  %vm7217_vm1 = vmor %vm2871_vm0, %vm2872_vm14 }
 0x251   : > { %v3579_v16 = vsel %vm3578_vm11, %v4784_v52, %v3575_v46  ;;  %v2907_v56 = vand.u32 2147483648, %v7176_v10  ;;  %v2310_v34 = vadd.f32 %v2309_v48, %v6836_v12  ;;  %vm2886_vm15 = vweird.f32 %v7166_v37 }
 0x252   : > { %v3584_v51 = vsel %vm3581_vm13, %v3583_v47, %v3579_v16  ;;  %v7186_v62 = vpop.eup %4793  ;;  %v2870_v9 = vadd.f32 %v7173_v3, %v2869_v4  ;;  %vm7231_vm6 = vcmp.eq.f32.partialorder %v2890_v32, 8.507059e+37  ;;  %v2893_v40 = vor.u32 1.1754944e-38, %v2892_v8 }
 0x253   : > { %v3818_v28 = vmul.f32 %v6886_v23, %v3584_v51  ;;  %v4796_v22 = vpop.eup %4795  ;;  %v2882_v33 = vmul.f32 %v7186_v62, %v7166_v37  ;;  %vm2887_vm9 = vweird.f32 %v7186_v62  ;;  %vm2901_vm4 = vweird.f32 %v7176_v10 }
 0x254   : > { %v7197_v19 = vadd.f32 1.0, %v4796_v22  ;;  %v7201_v2 = vpop.eup %4797  ;;  %v4368_v46 = vmul.f32 -1.442695, %v2310_v34  ;;  %v2905_v47 = vand.u32 2147483647, %v7176_v10  ;;  %v7246_v20 = vor.u32 1.1754944e-38, %v2907_v56  ;;  %vm7254_vm5 = vmor %vm2886_vm15, %vm2887_vm9 }
 0x255   : > { %v3906_v17 = vmul.f32 %v7135_v11, %v3818_v28  ;;  %v2883_v31 = vsub.f32 1.0, %v2882_v33  ;;  %v2897_v52 = vmul.f32 %v7201_v2, %v7176_v10  ;;  %vm2902_vm3 = vweird.f32 %v7201_v2 }
 0x256   : > { %4801 = vrcp.f32 %v7197_v19  ;;  %v7213_v49 = vpop.eup %4799  ;;  %v3115_v51 = vand.u32 2147483647, %v7197_v19  ;;  %v3117_v57 = vand.u32 2147483648, %v7197_v19  ;;  %v2920_v33 = vand.u32 2147483647, %v7189_v39  ;;  %vm7284_vm14 = vmor %vm2901_vm4, %vm2902_vm3  ;;  %v2228_v28 = vpop.f32.mrf.mxu0 }
 0x257   : > { %v7193_v53 = vadd.f32 %v7131_v45, %v3906_v17  ;;  %v2877_v45 = vand.u32 2147483648, %v7150_v29  ;;  %4803 = vpow2.f32 %v4366_v6  ;;  %v2884_v26 = vmul.f32 %v7186_v62, %v2883_v31 }
 0x258   : > { %v2874_v29 = vsel %vm7217_vm1, %v7173_v3, %v2870_v9  ;;  %v2898_v36 = vsub.f32 1.0, %v2897_v52  ;;  %4805 = vpow2.f32 %v4367_v25  ;;  %v2912_v1 = vmul.f32 %v7213_v49, %v7189_v39  ;;  %v2254_v9 = vpop.f32.mrf.mxu1 }
 0x259   : > { %v2878_v63 = vor.u32 1.1754944e-38, %v2877_v45  ;;  %v2885_v27 = vadd.f32 %v7186_v62, %v2884_v26  ;;  %v2226_v4 = vadd.f32 %v2225_v7, %v6903_v35  ;;  %vm7265_vm12 = vcmp.eq.f32.partialorder %v2905_v47, 8.507059e+37 }
 0x25a   : > { %v2899_v50 = vmul.f32 %v7201_v2, %v2898_v36  ;;  %v2913_v17 = vsub.f32 1.0, %v2912_v1  ;;  %vm3111_vm8 = vweird.f32 %v7197_v19  ;;  %vm3116_vm11 = vcmp.eq.f32.partialorder %v3115_v51, 8.507059e+37  ;;  %v2283_v1 = vpop.f32.mrf.mxu2 }
 0x25b   : > { %v2879_v3 = vsel %vm7221_vm2, %v2878_v63, %v2874_v29  ;;  %v2889_v22 = vsel %vm7254_vm5, %v7186_v62, %v2885_v27  ;;  %v3118_v62 = vor.u32 1.1754944e-38, %v3117_v57  ;;  %v4381_v45 = vmul.f32 -1.442695, %v2226_v4 }
 0x25c   : > { %v4802_v15 = vpop.eup %4801  ;;  %v3771_v37 = vmul.f32 %v6886_v23, %v2879_v3  ;;  %v2900_v43 = vadd.f32 %v7201_v2, %v2899_v50  ;;  %v2894_v52 = vsel %vm7231_vm6, %v2893_v40, %v2889_v22  ;;  %v2914_v59 = vmul.f32 %v7213_v49, %v2913_v17 }
 0x25d   : > { %v4804_v13 = vpop.eup %4803  ;;  %v3107_v21 = vmul.f32 %v4802_v15, %v7197_v19  ;;  %vm3112_vm7 = vweird.f32 %v4802_v15  ;;  %vm2916_vm13 = vweird.f32 %v7189_v39  ;;  %v2922_v19 = vand.u32 2147483648, %v7189_v39 }
 0x25e   : > { %v7241_v14 = vadd.f32 1.0, %v4804_v13  ;;  %v4806_v5 = vpop.eup %4805  ;;  %vm3113_vm10 = vmor %vm3111_vm8, %vm3112_vm7  ;;  %v3859_v48 = vmul.f32 %v6953_v41, %v3771_v37  ;;  %v2255_v56 = vadd.f32 %v2254_v9, %v6903_v35  ;;  %v3772_v34 = vmul.f32 %v6886_v23, %v2894_v52  ;;  %v2312_v52 = vpop.f32.mrf.mxu3 }
 0x25f   : > { %v3108_v16 = vsub.f32 1.0, %v3107_v21  ;;  %v7270_v31 = vadd.f32 1.0, %v4806_v5  ;;  %vm2917_vm0 = vweird.f32 %v7213_v49  ;;  %vm7296_vm1 = vcmp.eq.f32.partialorder %v2920_v33, 8.507059e+37 }
 0x260   : > { %4807 = vrcp.f32 %v7241_v14  ;;  %v2915_v36 = vadd.f32 %v7213_v49, %v2914_v59  ;;  %v4382_v40 = vmul.f32 -1.442695, %v2255_v56  ;;  %v3130_v21 = vand.u32 2147483647, %v7241_v14  ;;  %vm7319_vm15 = vmor %vm2916_vm13, %vm2917_vm0 }
 0x261   : > { %v3109_v58 = vmul.f32 %v4802_v15, %v3108_v16  ;;  %4809 = vpow2.f32 %v4368_v46  ;;  %v2284_v47 = vadd.f32 %v2283_v1, %v6903_v35  ;;  %v3860_v7 = vmul.f32 %v6953_v41, %v3772_v34 }
 0x262   : > { %4811 = vrcp.f32 %v7270_v31  ;;  %v2923_v51 = vor.u32 1.1754944e-38, %v2922_v19  ;;  %vm3126_vm6 = vweird.f32 %v7241_v14  ;;  %v3145_v39 = vand.u32 2147483647, %v7270_v31 }
 0x263   : > { %v3110_v18 = vadd.f32 %v4802_v15, %v3109_v58  ;;  %4813 = vpow2.f32 %v4381_v45  ;;  %v4383_v5 = vmul.f32 -1.442695, %v2284_v47  ;;  %vm3131_vm4 = vcmp.eq.f32.partialorder %v3130_v21, 8.507059e+37 }
 0x264   : > { %v3147_v37 = vand.u32 2147483648, %v7270_v31  ;;  %vm3141_vm7 = vweird.f32 %v7270_v31  ;;  %vm3146_vm3 = vcmp.eq.f32.partialorder %v3145_v39, 8.507059e+37  ;;  %v2229_v39 = vadd.f32 %v2228_v28, %v7035_v61 }
 0x265   : > { %v3114_v32 = vsel %vm3113_vm10, %v4802_v15, %v3110_v18  ;;  %v2904_v15 = vsel %vm7284_vm14, %v7201_v2, %v2900_v43  ;;  %v3132_v2 = vand.u32 2147483648, %v7241_v14 }
 0x266   : > { %v4808_v8 = vpop.eup %4807  ;;  %v3119_v26 = vsel %vm3116_vm11, %v3118_v62, %v3114_v32  ;;  %v2909_v50 = vsel %vm7265_vm12, %v7246_v20, %v2904_v15  ;;  %v2919_v20 = vsel %vm7319_vm15, %v7213_v49, %v2915_v36  ;;  %v3148_v19 = vor.u32 1.1754944e-38, %v3147_v37 }
 0x267   : > { %v4810_v25 = vpop.eup %4809  ;;  %v3787_v38 = vmul.f32 %v6886_v23, %v3119_v26  ;;  %v3122_v63 = vmul.f32 %v4808_v8, %v7241_v14  ;;  %vm3127_vm2 = vweird.f32 %v4808_v8  ;;  %v3133_v22 = vor.u32 1.1754944e-38, %v3132_v2 }
 0x268   : > { %v7300_v29 = vadd.f32 1.0, %v4810_v25  ;;  %v4812_v27 = vpop.eup %4811  ;;  %vm3128_vm9 = vmor %vm3126_vm6, %vm3127_vm2  ;;  %v3773_v49 = vmul.f32 %v6886_v23, %v2909_v50  ;;  %v2924_v62 = vsel %vm7296_vm1, %v2923_v51, %v2919_v20 }
 0x269   : > { %v3875_v13 = vmul.f32 %v6959_v24, %v3787_v38  ;;  %v3123_v60 = vsub.f32 1.0, %v3122_v63  ;;  %v4814_v16 = vpop.eup %4813  ;;  %v3137_v57 = vmul.f32 %v4812_v27, %v7270_v31  ;;  %vm3142_vm5 = vweird.f32 %v4812_v27 }
 0x26a   : > { %4815 = vrcp.f32 %v7300_v29  ;;  %v7324_v58 = vadd.f32 1.0, %v4814_v16  ;;  %vm3143_vm12 = vmor %vm3141_vm7, %vm3142_vm5  ;;  %v3162_v25 = vand.u32 2147483648, %v7300_v29  ;;  %v3160_v54 = vand.u32 2147483647, %v7300_v29 }
 0x26b   : > { %v7307_v46 = vadd.f32 %v3875_v13, %v3859_v48  ;;  %v3124_v3 = vmul.f32 %v4808_v8, %v3123_v60  ;;  %4817 = vpow2.f32 %v4382_v40  ;;  %v3138_v33 = vsub.f32 1.0, %v3137_v57 }
 0x26c   : > { %4819 = vrcp.f32 %v7324_v58  ;;  %v2313_v38 = vadd.f32 %v2312_v52, %v6903_v35  ;;  %v3861_v10 = vmul.f32 %v6953_v41, %v3773_v49  ;;  %v3774_v36 = vmul.f32 %v6886_v23, %v2924_v62 }
 0x26d   : > { %v3125_v17 = vadd.f32 %v4808_v8, %v3124_v3  ;;  %v3139_v18 = vmul.f32 %v4812_v27, %v3138_v33  ;;  %4821 = vpow2.f32 %v4383_v5  ;;  %vm3156_vm10 = vweird.f32 %v7300_v29 }
 0x26e   : > { %v3163_v1 = vor.u32 1.1754944e-38, %v3162_v25  ;;  %v3357_v3 = vand.u32 2147483648, %v7324_v58  ;;  %v4384_v47 = vmul.f32 -1.442695, %v2313_v38  ;;  %vm3161_vm13 = vcmp.eq.f32.partialorder %v3160_v54, 8.507059e+37 }
 0x26f   : > { %v3129_v4 = vsel %vm3128_vm9, %v4808_v8, %v3125_v17  ;;  %v3140_v59 = vadd.f32 %v4812_v27, %v3139_v18  ;;  %v3862_v17 = vmul.f32 %v6953_v41, %v3774_v36  ;;  %vm3351_vm0 = vweird.f32 %v7324_v58 }
 0x270   : > { %v4816_v14 = vpop.eup %4815  ;;  %v3134_v6 = vsel %vm3131_vm4, %v3133_v22, %v3129_v4  ;;  %v3358_v33 = vor.u32 1.1754944e-38, %v3357_v3  ;;  %v2315_v3 = vpop.f32.mrf.mxu3 }
 0x271   : > { %v4818_v43 = vpop.eup %4817  ;;  %v3788_v45 = vmul.f32 %v6886_v23, %v3134_v6  ;;  %v3152_v9 = vmul.f32 %v4816_v14, %v7300_v29  ;;  %v3144_v48 = vsel %vm3143_vm12, %v4812_v27, %v3140_v59  ;;  %vm3157_vm8 = vweird.f32 %v4816_v14 }
 0x272   : > { %v7339_v32 = vadd.f32 1.0, %v4818_v43  ;;  %v4820_v63 = vpop.eup %4819  ;;  %v3149_v31 = vsel %vm3146_vm3, %v3148_v19, %v3144_v48  ;;  %vm3158_vm11 = vmor %vm3156_vm10, %vm3157_vm8  ;;  %v4397_v43 = vmul.f32 -1.442695, %v2229_v39  ;;  %v2335_v39 = vpop.f32.mrf.mxu0 }
 0x273   : > { %v3876_v8 = vmul.f32 %v6959_v24, %v3788_v45  ;;  %v3153_v26 = vsub.f32 1.0, %v3152_v9  ;;  %v4822_v15 = vpop.eup %4821  ;;  %v3789_v13 = vmul.f32 %v6886_v23, %v3149_v31  ;;  %v3347_v60 = vmul.f32 %v4820_v63, %v7324_v58 }
 0x274   : > { %4823 = vrcp.f32 %v7339_v32  ;;  %v7353_v21 = vadd.f32 1.0, %v4822_v15  ;;  %vm3352_vm14 = vweird.f32 %v4820_v63  ;;  %v3372_v6 = vand.u32 2147483648, %v7339_v32 }
 0x275   : > { %v7346_v56 = vadd.f32 %v3876_v8, %v3860_v7  ;;  %v3154_v34 = vmul.f32 %v4816_v14, %v3153_v26  ;;  %v3877_v2 = vmul.f32 %v6959_v24, %v3789_v13  ;;  %v3348_v27 = vsub.f32 1.0, %v3347_v60  ;;  %vm3353_vm1 = vmor %vm3351_vm0, %vm3352_vm14 }
 0x276   : > { %v3355_v7 = vand.u32 2147483647, %v7324_v58  ;;  %4825 = vrcp.f32 %v7353_v21  ;;  %v2257_v58 = vpop.f32.mrf.mxu1  ;;  %vm3366_vm6 = vweird.f32 %v7339_v32  ;;  %v3373_v26 = vor.u32 1.1754944e-38, %v3372_v6 }
 0x277   : > { %v3155_v40 = vadd.f32 %v4816_v14, %v3154_v34  ;;  %v7359_v51 = vadd.f32 %v3877_v2, %v3861_v10  ;;  %v3349_v57 = vmul.f32 %v4820_v63, %v3348_v27  ;;  %4827 = vpow2.f32 %v4384_v47  ;;  %v2286_v34 = vpop.f32.mrf.mxu2 }
 0x278   : > { %vm3356_vm2 = vcmp.eq.f32.partialorder %v3355_v7, 8.507059e+37  ;;  %v2258_v52 = vadd.f32 %v2257_v58, %v7035_v61  ;;  %4829 = vpow2.f32 %v4397_v43  ;;  %v3387_v31 = vand.u32 2147483648, %v7353_v21 }
 0x279   : > { %v3159_v16 = vsel %vm3158_vm11, %v4816_v14, %v3155_v40  ;;  %v3350_v22 = vadd.f32 %v4820_v63, %v3349_v57  ;;  %v3370_v14 = vand.u32 2147483647, %v7339_v32  ;;  %v2287_v10 = vadd.f32 %v2286_v34, %v7035_v61 }
 0x27a   : > { %v4824_v50 = vpop.eup %4823  ;;  %v3164_v29 = vsel %vm3161_vm13, %v3163_v1, %v3159_v16  ;;  %v4398_v25 = vmul.f32 -1.442695, %v2258_v52  ;;  %vm3381_vm7 = vweird.f32 %v7353_v21  ;;  %v3388_v16 = vor.u32 1.1754944e-38, %v3387_v31 }
 0x27b   : > { %v3790_v5 = vmul.f32 %v6886_v23, %v3164_v29  ;;  %v3362_v20 = vmul.f32 %v4824_v50, %v7339_v32  ;;  %v3354_v18 = vsel %vm3353_vm1, %v4820_v63, %v3350_v22  ;;  %vm3367_vm15 = vweird.f32 %v4824_v50 }
 0x27c   : > { %v4826_v49 = vpop.eup %4825  ;;  %v3359_v45 = vsel %vm3356_vm2, %v3358_v33, %v3354_v18  ;;  %vm3371_vm9 = vcmp.eq.f32.partialorder %v3370_v14, 8.507059e+37  ;;  %vm3368_vm4 = vmor %vm3366_vm6, %vm3367_vm15  ;;  %v3385_v63 = vand.u32 2147483647, %v7353_v21  ;;  %4831 = vpow2.f32 %v4398_v25 }
 0x27d   : > { %v3878_v4 = vmul.f32 %v6959_v24, %v3790_v5  ;;  %v3363_v37 = vsub.f32 1.0, %v3362_v20  ;;  %v3803_v59 = vmul.f32 %v6886_v23, %v3359_v45  ;;  %v3377_v8 = vmul.f32 %v4826_v49, %v7353_v21  ;;  %v4828_v48 = vpop.eup %4827 }
 0x27e   : > { %v2781_v32 = vadd.f32 1.0, %v4828_v48  ;;  %vm3382_vm5 = vweird.f32 %v4826_v49  ;;  %v4830_v1 = vpop.eup %4829  ;;  %v4399_v27 = vmul.f32 -1.442695, %v2287_v10  ;;  %vm3386_vm12 = vcmp.eq.f32.partialorder %v3385_v63, 8.507059e+37 }
 0x27f   : > { %v7369_v62 = vadd.f32 %v3878_v4, %v3862_v17  ;;  %v3364_v9 = vmul.f32 %v4824_v50, %v3363_v37  ;;  %v3891_v54 = vmul.f32 %v7089_v42, %v3803_v59  ;;  %v3378_v38 = vsub.f32 1.0, %v3377_v8  ;;  %vm3383_vm3 = vmor %vm3381_vm7, %vm3382_vm5 }
 0x280   : > { %4833 = vrcp.f32 %v2781_v32  ;;  %v2794_v7 = vadd.f32 1.0, %v4830_v1  ;;  %v3400_v4 = vand.u32 2147483647, %v2781_v32  ;;  %v3402_v18 = vand.u32 2147483648, %v2781_v32 }
 0x281   : > { %v3365_v19 = vadd.f32 %v4824_v50, %v3364_v9  ;;  %v7381_v36 = vadd.f32 %v7307_v46, %v3891_v54  ;;  %v3379_v60 = vmul.f32 %v4826_v49, %v3378_v38  ;;  %v2316_v46 = vadd.f32 %v2315_v3, %v7035_v61 }
 0x282   : > { %4835 = vpow2.f32 %v4399_v27  ;;  %v4832_v29 = vpop.eup %4831  ;;  %v3595_v43 = vand.u32 2147483647, %v2794_v7  ;;  %vm3396_vm10 = vweird.f32 %v2781_v32  ;;  %vm7401_vm11 = vcmp.eq.f32.partialorder %v3400_v4, 8.507059e+37 }
 0x283   : > { %v3369_v15 = vsel %vm3368_vm4, %v4824_v50, %v3365_v19  ;;  %v3380_v2 = vadd.f32 %v4826_v49, %v3379_v60  ;;  %4837 = vrcp.f32 %v2794_v7  ;;  %v7391_v17 = vadd.f32 1.0, %v4832_v29 }
 0x284   : > { %v3374_v13 = vsel %vm3371_vm9, %v3373_v26, %v3369_v15  ;;  %v4400_v20 = vmul.f32 -1.442695, %v2316_v46  ;;  %v3597_v8 = vand.u32 2147483648, %v2794_v7  ;;  %v2364_v26 = vpop.f32.mrf.mxu1  ;;  %v3403_v48 = vor.u32 1.1754944e-38, %v3402_v18 }
 0x285   : > { %v3804_v40 = vmul.f32 %v6886_v23, %v3374_v13  ;;  %v3384_v50 = vsel %vm3383_vm3, %v4826_v49, %v3380_v2  ;;  %4839 = vrcp.f32 %v7391_v17  ;;  %v2336_v49 = vadd.f32 %v2335_v39, %v6821_v30 }
 0x286   : > { %v3389_v28 = vsel %vm3386_vm12, %v3388_v16, %v3384_v50  ;;  %v4834_v5 = vpop.eup %4833  ;;  %4841 = vpow2.f32 %v4400_v20  ;;  %vm3591_vm14 = vweird.f32 %v2794_v7  ;;  %vm7406_vm0 = vcmp.eq.f32.partialorder %v3595_v43, 8.507059e+37 }
 0x287   : > { %v3892_v47 = vmul.f32 %v7089_v42, %v3804_v40  ;;  %v3805_v21 = vmul.f32 %v6886_v23, %v3389_v28  ;;  %v3392_v33 = vmul.f32 %v4834_v5, %v2781_v32  ;;  %vm3397_vm8 = vweird.f32 %v4834_v5  ;;  %v2393_v28 = vpop.f32.mrf.mxu2 }
 0x288   : > { %v4836_v37 = vpop.eup %4835  ;;  %v4353_v19 = vmul.f32 -1.442695, %v2336_v49  ;;  %vm3398_vm13 = vmor %vm3396_vm10, %vm3397_vm8  ;;  %v2365_v38 = vadd.f32 %v2364_v26, %v6821_v30  ;;  %v3612_v10 = vand.u32 2147483648, %v7391_v17  ;;  %v3598_v1 = vor.u32 1.1754944e-38, %v3597_v8 }
 0x289   : > { %v7388_v57 = vadd.f32 %v7346_v56, %v3892_v47  ;;  %v3893_v22 = vmul.f32 %v7089_v42, %v3805_v21  ;;  %v3393_v56 = vsub.f32 1.0, %v3392_v33  ;;  %v4838_v6 = vpop.eup %4837  ;;  %v7398_v58 = vadd.f32 1.0, %v4836_v37 }
 0x28a   : > { %v3587_v9 = vmul.f32 %v4838_v6, %v2794_v7  ;;  %vm3592_vm1 = vweird.f32 %v4838_v6  ;;  %vm3606_vm15 = vweird.f32 %v7391_v17  ;;  %v4354_v47 = vmul.f32 -1.442695, %v2365_v38  ;;  %v2422_v7 = vpop.f32.mrf.mxu3 }
 0x28b   : > { %v7396_v14 = vadd.f32 %v7359_v51, %v3893_v22  ;;  %v3394_v45 = vmul.f32 %v4834_v5, %v3393_v56  ;;  %4843 = vrcp.f32 %v7398_v58  ;;  %v4840_v25 = vpop.eup %4839  ;;  %vm7419_vm2 = vmor %vm3591_vm14, %vm3592_vm1  ;;  %v3610_v21 = vand.u32 2147483647, %v7391_v17  ;;  %v2338_v56 = vpop.f32.mrf.mxu0 }
 0x28c   : > { %v3588_v59 = vsub.f32 1.0, %v3587_v9  ;;  %v4842_v63 = vpop.eup %4841  ;;  %v3602_v15 = vmul.f32 %v4840_v25, %v7391_v17  ;;  %4845 = vpow2.f32 %v4353_v19  ;;  %vm3607_vm6 = vweird.f32 %v4840_v25  ;;  %v2367_v19 = vpop.f32.mrf.mxu1 }
 0x28d   : > { %v3395_v51 = vadd.f32 %v4834_v5, %v3394_v45  ;;  %v7415_v13 = vadd.f32 1.0, %v4842_v63  ;;  %v3625_v20 = vand.u32 2147483647, %v7398_v58  ;;  %v3627_v22 = vand.u32 2147483648, %v7398_v58  ;;  %vm3608_vm9 = vmor %vm3606_vm15, %vm3607_vm6 }
 0x28e   : > { %v3589_v34 = vmul.f32 %v4838_v6, %v3588_v59  ;;  %v3603_v2 = vsub.f32 1.0, %v3602_v15  ;;  %v2394_v18 = vadd.f32 %v2393_v28, %v6821_v30  ;;  %v2423_v43 = vadd.f32 %v2422_v7, %v6821_v30 }
 0x28f   : > { %v3399_v31 = vsel %vm3398_vm13, %v4834_v5, %v3395_v51  ;;  %4847 = vrcp.f32 %v7415_v13  ;;  %v3613_v5 = vor.u32 1.1754944e-38, %v3612_v10  ;;  %v2339_v9 = vadd.f32 %v2338_v56, %v6836_v12 }
 0x290   : > { %v3404_v32 = vsel %vm7401_vm11, %v3403_v48, %v3399_v31  ;;  %v3590_v40 = vadd.f32 %v4838_v6, %v3589_v34  ;;  %v3604_v50 = vmul.f32 %v4840_v25, %v3603_v2  ;;  %4849 = vpow2.f32 %v4354_v47  ;;  %v2396_v2 = vpop.f32.mrf.mxu2 }
 0x291   : > { %v3806_v60 = vmul.f32 %v6886_v23, %v3404_v32  ;;  %v4844_v27 = vpop.eup %4843  ;;  %vm3611_vm5 = vcmp.eq.f32.partialorder %v3610_v21, 8.507059e+37  ;;  %vm3621_vm7 = vweird.f32 %v7398_v58  ;;  %v4355_v51 = vmul.f32 -1.442695, %v2394_v18 }
 0x292   : > { %v3594_v46 = vsel %vm7419_vm2, %v4838_v6, %v3590_v40  ;;  %v3617_v29 = vmul.f32 %v4844_v27, %v7398_v58  ;;  %v3605_v4 = vadd.f32 %v4840_v25, %v3604_v50  ;;  %v4846_v6 = vpop.eup %4845  ;;  %vm3622_vm4 = vweird.f32 %v4844_v27 }
 0x293   : > { %v3894_v16 = vmul.f32 %v7089_v42, %v3806_v60  ;;  %v3599_v39 = vsel %vm7406_vm0, %v3598_v1, %v3594_v46  ;;  %v7442_v45 = vadd.f32 1.0, %v4846_v6  ;;  %vm3626_vm3 = vcmp.eq.f32.partialorder %v3625_v20, 8.507059e+37  ;;  %vm3623_vm12 = vmor %vm3621_vm7, %vm3622_vm4 }
 0x294   : > { %v3618_v37 = vsub.f32 1.0, %v3617_v29  ;;  %v3609_v49 = vsel %vm3608_vm9, %v4840_v25, %v3605_v4  ;;  %v3819_v26 = vmul.f32 %v6886_v23, %v3599_v39  ;;  %v3628_v25 = vor.u32 1.1754944e-38, %v3627_v22 }
 0x295   : > { %v7433_v33 = vadd.f32 %v7369_v62, %v3894_v16  ;;  %v4848_v52 = vpop.eup %4847  ;;  %v3614_v59 = vsel %vm3611_vm5, %v3613_v5, %v3609_v49  ;;  %4851 = vrcp.f32 %v7442_v45  ;;  %v4356_v48 = vmul.f32 -1.442695, %v2423_v43 }
 0x296   : > { %v3619_v62 = vmul.f32 %v4844_v27, %v3618_v37  ;;  %v3632_v8 = vmul.f32 %v4848_v52, %v7415_v13  ;;  %v3642_v63 = vand.u32 2147483648, %v7415_v13  ;;  %v4369_v58 = vmul.f32 -1.442695, %v2339_v9  ;;  %v4850_v31 = vpop.eup %4849  ;;  %v2425_v37 = vpop.f32.mrf.mxu3 }
 0x297   : > { %v3820_v34 = vmul.f32 %v6886_v23, %v3614_v59  ;;  %4853 = vpow2.f32 %v4355_v51  ;;  %v2368_v32 = vadd.f32 %v2367_v19, %v6836_v12  ;;  %vm3637_vm8 = vweird.f32 %v4848_v52 }
 0x298   : > { %v3620_v17 = vadd.f32 %v4844_v27, %v3619_v62  ;;  %v3633_v38 = vsub.f32 1.0, %v3632_v8  ;;  %v3640_v60 = vand.u32 2147483647, %v7415_v13  ;;  %v3907_v40 = vmul.f32 %v7135_v11, %v3819_v26 }
 0x299   : > { %v7455_v1 = vadd.f32 1.0, %v4850_v31  ;;  %4855 = vpow2.f32 %v4356_v48  ;;  %vm3636_vm10 = vweird.f32 %v7415_v13  ;;  %v3908_v16 = vmul.f32 %v7135_v11, %v3820_v34 }
 0x29a   : > { %v3624_v54 = vsel %vm3623_vm12, %v4844_v27, %v3620_v17  ;;  %v3634_v10 = vmul.f32 %v4848_v52, %v3633_v38  ;;  %4857 = vpow2.f32 %v4369_v58  ;;  %vm3638_vm11 = vmor %vm3636_vm10, %vm3637_vm8  ;;  %v3643_v46 = vor.u32 1.1754944e-38, %v3642_v63  ;;  %v2370_v38 = vpop.f32.mrf.mxu1  ;;  %v2399_v63 = vpop.f32.mrf.mxu2 }
 0x29b   : > { %v3629_v15 = vsel %vm3626_vm3, %v3628_v25, %v3624_v54  ;;  %v7459_v47 = vpop.eup %4851  ;;  %4859 = vrcp.f32 %v7455_v1  ;;  %v4370_v50 = vmul.f32 -1.442695, %v2368_v32  ;;  %vm3641_vm13 = vcmp.eq.f32.partialorder %v3640_v60, 8.507059e+37  ;;  %v2341_v25 = vpop.f32.mrf.mxu0 }
 0x29c   : > { %v3821_v27 = vmul.f32 %v6886_v23, %v3629_v15  ;;  %v3635_v3 = vadd.f32 %v4848_v52, %v3634_v10  ;;  %v2927_v28 = vmul.f32 %v7459_v47, %v7442_v45  ;;  %v7466_v21 = vadd.f32 %v7381_v36, %v3907_v40 }
 0x29d   : > { %v4854_v7 = vpop.eup %4853  ;;  %v2935_v5 = vand.u32 2147483647, %v7442_v45  ;;  %v2937_v39 = vand.u32 2147483648, %v7442_v45  ;;  %v7474_v6 = vadd.f32 %v7388_v57, %v3908_v16  ;;  %vm2931_vm14 = vweird.f32 %v7442_v45 }
 0x29e   : > { %v3639_v29 = vsel %vm3638_vm11, %v4848_v52, %v3635_v3  ;;  %v3909_v20 = vmul.f32 %v7135_v11, %v3821_v27  ;;  %v2928_v22 = vsub.f32 1.0, %v2927_v28  ;;  %v7471_v4 = vadd.f32 1.0, %v4854_v7 }
 0x29f   : > { %v3644_v13 = vsel %vm3641_vm13, %v3643_v46, %v3639_v29  ;;  %v4856_v56 = vpop.eup %4855  ;;  %4861 = vpow2.f32 %v4370_v50  ;;  %v2952_v49 = vand.u32 2147483648, %v7455_v1  ;;  %v2397_v62 = vadd.f32 %v2396_v2, %v6836_v12 }
 0x2a0   : > { %v3822_v18 = vmul.f32 %v6886_v23, %v3644_v13  ;;  %v4858_v36 = vpop.eup %4857  ;;  %v2929_v43 = vmul.f32 %v7459_v47, %v2928_v22  ;;  %4863 = vrcp.f32 %v7471_v4  ;;  %vm7484_vm0 = vcmp.eq.f32.partialorder %v2935_v5, 8.507059e+37 }
 0x2a1   : > { %v7482_v9 = vpop.eup %4859  ;;  %v2950_v57 = vand.u32 2147483647, %v7455_v1  ;;  %v7489_v51 = vadd.f32 1.0, %v4856_v56  ;;  %v7491_v59 = vadd.f32 1.0, %v4858_v36  ;;  %v2426_v17 = vadd.f32 %v2425_v37, %v6836_v12 }
 0x2a2   : > { %v7495_v8 = vadd.f32 %v7396_v14, %v3909_v20  ;;  %v2938_v19 = vor.u32 1.1754944e-38, %v2937_v39  ;;  %v2942_v26 = vmul.f32 %v7482_v9, %v7455_v1  ;;  %vm2946_vm1 = vweird.f32 %v7455_v1 }
 0x2a3   : > { %v3910_v48 = vmul.f32 %v7135_v11, %v3822_v18  ;;  %v2930_v54 = vadd.f32 %v7459_v47, %v2929_v43  ;;  %vm2932_vm2 = vweird.f32 %v7459_v47  ;;  %4865 = vrcp.f32 %v7489_v51 }
 0x2a4   : > { %v2943_v58 = vsub.f32 1.0, %v2942_v26  ;;  %v2953_v14 = vor.u32 1.1754944e-38, %v2952_v49  ;;  %v2967_v31 = vand.u32 2147483648, %v7471_v4  ;;  %v4371_v34 = vmul.f32 -1.442695, %v2397_v62  ;;  %vm7516_vm6 = vmor %vm2931_vm14, %vm2932_vm2 }
 0x2a5   : > { %v4862_v15 = vpop.eup %4861  ;;  %vm7505_vm15 = vcmp.eq.f32.partialorder %v2950_v57, 8.507059e+37  ;;  %v2965_v10 = vand.u32 2147483647, %v7471_v4  ;;  %4867 = vrcp.f32 %v7491_v59  ;;  %v4372_v60 = vmul.f32 -1.442695, %v2426_v17 }
 0x2a6   : > { %v2342_v40 = vadd.f32 %v2341_v25, %v6903_v35  ;;  %v4864_v2 = vpop.eup %4863  ;;  %v2944_v3 = vmul.f32 %v7482_v9, %v2943_v58  ;;  %vm2961_vm9 = vweird.f32 %v7471_v4  ;;  %v2371_v16 = vadd.f32 %v2370_v38, %v6903_v35 }
 0x2a7   : > { %v7524_v46 = vadd.f32 %v2399_v63, %v6903_v35  ;;  %v7527_v50 = vadd.f32 %v7433_v33, %v3910_v48  ;;  %v2934_v45 = vsel %vm7516_vm6, %v7459_v47, %v2930_v54  ;;  %vm2947_vm4 = vweird.f32 %v7482_v9 }
 0x2a8   : > { %v2957_v29 = vmul.f32 %v4864_v2, %v7471_v4  ;;  %v2945_v28 = vadd.f32 %v7482_v9, %v2944_v3  ;;  %v2968_v7 = vor.u32 1.1754944e-38, %v2967_v31  ;;  %v7535_v13 = vadd.f32 1.0, %v4862_v15  ;;  %vm7549_vm7 = vmor %vm2946_vm1, %vm2947_vm4 }
 0x2a9   : > { %4869 = vpow2.f32 %v4371_v34  ;;  %v7537_v5 = vpop.eup %4865  ;;  %vm7539_vm5 = vcmp.eq.f32.partialorder %v2965_v10, 8.507059e+37  ;;  %v2980_v22 = vand.u32 2147483647, %v7489_v51  ;;  %v2982_v47 = vand.u32 2147483648, %v7489_v51 }
 0x2aa   : > { %v2958_v20 = vsub.f32 1.0, %v2957_v29  ;;  %4871 = vpow2.f32 %v4372_v60  ;;  %v2939_v39 = vsel %vm7484_vm0, %v2938_v19, %v2934_v45  ;;  %v2972_v56 = vmul.f32 %v7537_v5, %v7489_v51 }
 0x2ab   : > { %4873 = vrcp.f32 %v7535_v13  ;;  %v4385_v18 = vmul.f32 -1.442695, %v2342_v40  ;;  %v7556_v36 = vpop.eup %4867  ;;  %v2949_v43 = vsel %vm7549_vm7, %v7482_v9, %v2945_v28  ;;  %vm2962_vm3 = vweird.f32 %v4864_v2 }
 0x2ac   : > { %v2959_v49 = vmul.f32 %v4864_v2, %v2958_v20  ;;  %vm2976_vm12 = vweird.f32 %v7489_v51  ;;  %v2973_v1 = vsub.f32 1.0, %v2972_v56  ;;  %v3167_v62 = vmul.f32 %v7556_v36, %v7491_v59  ;;  %vm7575_vm11 = vmor %vm2961_vm9, %vm2962_vm3  ;;  %v2428_v56 = vpop.f32.mrf.mxu3 }
 0x2ad   : > { %vm3171_vm8 = vweird.f32 %v7491_v59  ;;  %v3175_v52 = vand.u32 2147483647, %v7491_v59  ;;  %v3775_v57 = vmul.f32 %v6886_v23, %v2939_v39  ;;  %vm7567_vm10 = vcmp.eq.f32.partialorder %v2980_v22, 8.507059e+37 }
 0x2ae   : > { %v2960_v17 = vadd.f32 %v4864_v2, %v2959_v49  ;;  %v2983_v9 = vor.u32 1.1754944e-38, %v2982_v47  ;;  %v2954_v25 = vsel %vm7505_vm15, %v2953_v14, %v2949_v43  ;;  %v2974_v54 = vmul.f32 %v7537_v5, %v2973_v1 }
 0x2af   : > { %v4870_v26 = vpop.eup %4869  ;;  %v3168_v38 = vsub.f32 1.0, %v3167_v62  ;;  %4875 = vpow2.f32 %v4385_v18  ;;  %vm2977_vm13 = vweird.f32 %v7537_v5  ;;  %v3177_v31 = vand.u32 2147483648, %v7491_v59 }
 0x2b0   : > { %v4872_v63 = vpop.eup %4871  ;;  %v2964_v58 = vsel %vm7575_vm11, %v4864_v2, %v2960_v17  ;;  %v7584_v34 = vadd.f32 1.0, %v4870_v26  ;;  %v2975_v4 = vadd.f32 %v7537_v5, %v2974_v54  ;;  %v3190_v32 = vand.u32 2147483647, %v7535_v13  ;;  %vm7605_vm0 = vmor %vm2976_vm12, %vm2977_vm13 }
 0x2b1   : > { %v7586_v14 = vpop.eup %4873  ;;  %v3169_v15 = vmul.f32 %v7556_v36, %v3168_v38  ;;  %v7591_v10 = vadd.f32 1.0, %v4872_v63  ;;  %v3776_v60 = vmul.f32 %v6886_v23, %v2954_v25  ;;  %vm3172_vm14 = vweird.f32 %v7556_v36 }
 0x2b2   : > { %v3182_v40 = vmul.f32 %v7586_v14, %v7535_v13  ;;  %4877 = vrcp.f32 %v7584_v34  ;;  %v7599_v2 = vmul.f32 %v6953_v41, %v3775_v57  ;;  %v2969_v27 = vsel %vm7539_vm5, %v2968_v7, %v2964_v58  ;;  %vm7620_vm2 = vmor %vm3171_vm8, %vm3172_vm14 }
 0x2b3   : > { %v3170_v45 = vadd.f32 %v7556_v36, %v3169_v15  ;;  %vm7610_vm1 = vcmp.eq.f32.partialorder %v3175_v52, 8.507059e+37  ;;  %v2979_v28 = vsel %vm7605_vm0, %v7537_v5, %v2975_v4  ;;  %v3192_v33 = vand.u32 2147483648, %v7535_v13 }
 0x2b4   : > { %v3183_v20 = vsub.f32 1.0, %v3182_v40  ;;  %v4386_v7 = vmul.f32 -1.442695, %v2371_v16  ;;  %v3178_v47 = vor.u32 1.1754944e-38, %v3177_v31  ;;  %vm3186_vm15 = vweird.f32 %v7535_v13  ;;  %v2344_v13 = vpop.f32.mrf.mxu0 }
 0x2b5   : > { %v4876_v22 = vpop.eup %4875  ;;  %vm7625_vm6 = vcmp.eq.f32.partialorder %v3190_v32, 8.507059e+37  ;;  %4879 = vrcp.f32 %v7591_v10  ;;  %v7631_v5 = vmul.f32 %v6953_v41, %v3776_v60  ;;  %v3777_v16 = vmul.f32 %v6886_v23, %v2969_v27 }
 0x2b6   : > { %v3174_v59 = vsel %vm7620_vm2, %v7556_v36, %v3170_v45  ;;  %v3184_v37 = vmul.f32 %v7586_v14, %v3183_v20  ;;  %v2984_v18 = vsel %vm7567_vm10, %v2983_v9, %v2979_v28  ;;  %vm3187_vm9 = vweird.f32 %v7586_v14 }
 0x2b7   : > { %v3205_v43 = vand.u32 2147483647, %v7584_v34  ;;  %v3207_v49 = vand.u32 2147483648, %v7584_v34  ;;  %v3193_v52 = vor.u32 1.1754944e-38, %v3192_v33  ;;  %v7644_v57 = vadd.f32 1.0, %v4876_v22  ;;  %vm7657_vm4 = vmor %vm3186_vm15, %vm3187_vm9 }
 0x2b8   : > { %v4878_v1 = vpop.eup %4877  ;;  %v3185_v62 = vadd.f32 %v7586_v14, %v3184_v37  ;;  %4881 = vpow2.f32 %v4386_v7  ;;  %v3179_v36 = vsel %vm7610_vm1, %v3178_v47, %v3174_v59  ;;  %v4387_v19 = vmul.f32 -1.442695, %v7524_v46  ;;  %v2373_v47 = vpop.f32.mrf.mxu1 }
 0x2b9   : > { %v3197_v17 = vmul.f32 %v4878_v1, %v7584_v34  ;;  %v2429_v9 = vadd.f32 %v2428_v56, %v6903_v35  ;;  %v7652_v26 = vmul.f32 %v6953_v41, %v3777_v16  ;;  %v3778_v25 = vmul.f32 %v6886_v23, %v2984_v18 }
 0x2ba   : > { %vm3201_vm5 = vweird.f32 %v7584_v34  ;;  %4883 = vrcp.f32 %v7644_v57  ;;  %v3189_v46 = vsel %vm7657_vm4, %v7586_v14, %v3185_v62  ;;  %vm7666_vm7 = vcmp.eq.f32.partialorder %v3205_v43, 8.507059e+37 }
 0x2bb   : > { %v4880_v54 = vpop.eup %4879  ;;  %v3198_v38 = vsub.f32 1.0, %v3197_v17  ;;  %v3208_v58 = vor.u32 1.1754944e-38, %v3207_v49  ;;  %v3791_v31 = vmul.f32 %v6886_v23, %v3179_v36  ;;  %vm3216_vm3 = vweird.f32 %v7591_v10 }
 0x2bc   : > { %v3212_v4 = vmul.f32 %v4880_v54, %v7591_v10  ;;  %v3220_v15 = vand.u32 2147483647, %v7591_v10  ;;  %vm3202_vm12 = vweird.f32 %v4878_v1  ;;  %4885 = vpow2.f32 %v4387_v19 }
 0x2bd   : > { %v3199_v32 = vmul.f32 %v4878_v1, %v3198_v38  ;;  %v4388_v60 = vmul.f32 -1.442695, %v2429_v9  ;;  %v3194_v40 = vsel %vm7625_vm6, %v3193_v52, %v3189_v46  ;;  %v3222_v3 = vand.u32 2147483648, %v7591_v10  ;;  %vm3203_vm8 = vmor %vm3201_vm5, %vm3202_vm12  ;;  %v2402_v38 = vpop.f32.mrf.mxu2 }
 0x2be   : > { %v4882_v14 = vpop.eup %4881  ;;  %v3213_v27 = vsub.f32 1.0, %v3212_v4  ;;  %v2345_v45 = vadd.f32 %v2344_v13, %v7035_v61  ;;  %v7679_v29 = vmul.f32 %v6953_v41, %v3778_v25  ;;  %v3879_v7 = vmul.f32 %v6959_v24, %v3791_v31 }
 0x2bf   : > { %v3200_v28 = vadd.f32 %v4878_v1, %v3199_v32  ;;  %v7681_v20 = vadd.f32 1.0, %v4882_v14  ;;  %4887 = vpow2.f32 %v4388_v60  ;;  %vm3217_vm10 = vweird.f32 %v4880_v54 }
 0x2c0   : > { %v7683_v33 = vpop.eup %4883  ;;  %v3214_v22 = vmul.f32 %v4880_v54, %v3213_v27  ;;  %v4401_v51 = vmul.f32 -1.442695, %v2345_v45  ;;  %v3792_v39 = vmul.f32 %v6886_v23, %v3194_v40  ;;  %vm7692_vm11 = vcmp.eq.f32.partialorder %v3220_v15, 8.507059e+37  ;;  %vm7701_vm14 = vmor %vm3216_vm3, %vm3217_vm10 }
 0x2c1   : > { %v3204_v16 = vsel %vm3203_vm8, %v4878_v1, %v3200_v28  ;;  %v3407_v59 = vmul.f32 %v7683_v33, %v7644_v57  ;;  %4889 = vrcp.f32 %v7681_v20  ;;  %v3223_v18 = vor.u32 1.1754944e-38, %v3222_v3 }
 0x2c2   : > { %v3215_v37 = vadd.f32 %v4880_v54, %v3214_v22  ;;  %vm3411_vm13 = vweird.f32 %v7644_v57  ;;  %v4886_v34 = vpop.eup %4885  ;;  %v3209_v43 = vsel %vm7666_vm7, %v3208_v58, %v3204_v16  ;;  %4891 = vpow2.f32 %v4401_v51  ;;  %v2431_v22 = vpop.f32.mrf.mxu3 }
 0x2c3   : > { %v3408_v1 = vsub.f32 1.0, %v3407_v59  ;;  %v2374_v62 = vadd.f32 %v2373_v47, %v7035_v61  ;;  %v3415_v36 = vand.u32 2147483647, %v7644_v57  ;;  %v3417_v17 = vand.u32 2147483648, %v7644_v57 }
 0x2c4   : > { %v3219_v52 = vsel %vm7701_vm14, %v4880_v54, %v3215_v37  ;;  %v7710_v19 = vadd.f32 1.0, %v4886_v34  ;;  %v7713_v10 = vadd.f32 %v3879_v7, %v7599_v2  ;;  %v3880_v25 = vmul.f32 %v6959_v24, %v3792_v39 }
 0x2c5   : > { %v4888_v9 = vpop.eup %4887  ;;  %v3409_v48 = vmul.f32 %v7683_v33, %v3408_v1  ;;  %v3430_v46 = vand.u32 2147483647, %v7681_v20  ;;  %v3793_v63 = vmul.f32 %v6886_v23, %v3209_v43  ;;  %vm3412_vm0 = vweird.f32 %v7683_v33 }
 0x2c6   : > { %v3432_v54 = vand.u32 2147483648, %v7681_v20  ;;  %4893 = vrcp.f32 %v7710_v19  ;;  %v3224_v2 = vsel %vm7692_vm11, %v3223_v18, %v3219_v52  ;;  %v7725_v31 = vadd.f32 1.0, %v4888_v9  ;;  %vm7738_vm2 = vmor %vm3411_vm13, %vm3412_vm0 }
 0x2c7   : > { %v4890_v58 = vpop.eup %4889  ;;  %v3410_v13 = vadd.f32 %v7683_v33, %v3409_v48  ;;  %v4402_v4 = vmul.f32 -1.442695, %v2374_v62  ;;  %vm7727_vm1 = vcmp.eq.f32.partialorder %v3415_v36, 8.507059e+37  ;;  %v3418_v32 = vor.u32 1.1754944e-38, %v3417_v17 }
 0x2c8   : > { %v3422_v60 = vmul.f32 %v4890_v58, %v7681_v20  ;;  %v2403_v14 = vadd.f32 %v2402_v38, %v7035_v61  ;;  %v4892_v40 = vpop.eup %4891  ;;  %v7734_v27 = vadd.f32 %v3880_v25, %v7631_v5  ;;  %vm3426_vm15 = vweird.f32 %v7681_v20 }
 0x2c9   : > { %vm7743_vm6 = vcmp.eq.f32.partialorder %v3430_v46, 8.507059e+37  ;;  %4895 = vrcp.f32 %v7725_v31  ;;  %v3881_v28 = vmul.f32 %v6959_v24, %v3793_v63  ;;  %v3794_v7 = vmul.f32 %v6886_v23, %v3224_v2 }
 0x2ca   : > { %v3414_v5 = vsel %vm7738_vm2, %v7683_v33, %v3410_v13  ;;  %v3423_v57 = vsub.f32 1.0, %v3422_v60  ;;  %v3433_v51 = vor.u32 1.1754944e-38, %v3432_v54  ;;  %v3445_v47 = vand.u32 2147483647, %v7710_v19 }
 0x2cb   : > { %v7754_v39 = vadd.f32 1.0, %v4892_v40  ;;  %4897 = vpow2.f32 %v4402_v4  ;;  %vm3427_vm9 = vweird.f32 %v4890_v58  ;;  %v3447_v37 = vand.u32 2147483648, %v7710_v19  ;;  %v2451_v4 = vpop.f32.mrf.mxu0 }
 0x2cc   : > { %v4894_v16 = vpop.eup %4893  ;;  %v3424_v59 = vmul.f32 %v4890_v58, %v3423_v57  ;;  %v4403_v56 = vmul.f32 -1.442695, %v2403_v14  ;;  %v3419_v18 = vsel %vm7727_vm1, %v3418_v32, %v3414_v5  ;;  %vm3441_vm4 = vweird.f32 %v7710_v19  ;;  %vm3428_vm5 = vmor %vm3426_vm15, %vm3427_vm9  ;;  %v2480_v5 = vpop.f32.mrf.mxu1 }
 0x2cd   : > { %v3437_v34 = vmul.f32 %v4894_v16, %v7710_v19  ;;  %v2432_v33 = vadd.f32 %v2431_v22, %v7035_v61  ;;  %v7763_v43 = vadd.f32 %v3881_v28, %v7652_v26  ;;  %v3882_v49 = vmul.f32 %v6959_v24, %v3794_v7 }
 0x2ce   : > { %v3425_v1 = vadd.f32 %v4890_v58, %v3424_v59  ;;  %4899 = vrcp.f32 %v7754_v39  ;;  %vm7771_vm7 = vcmp.eq.f32.partialorder %v3445_v47, 8.507059e+37  ;;  %v3460_v17 = vand.u32 2147483647, %v7725_v31 }
 0x2cf   : > { %v7767_v62 = vpop.eup %4895  ;;  %v3438_v52 = vsub.f32 1.0, %v3437_v34  ;;  %4901 = vpow2.f32 %v4403_v56  ;;  %v3807_v26 = vmul.f32 %v6886_v23, %v3419_v18  ;;  %v3448_v25 = vor.u32 1.1754944e-38, %v3447_v37  ;;  %v2509_v37 = vpop.f32.mrf.mxu2 }
 0x2d0   : > { %v3429_v9 = vsel %vm3428_vm5, %v4890_v58, %v3425_v1  ;;  %v3452_v48 = vmul.f32 %v7767_v62, %v7725_v31  ;;  %vm3442_vm3 = vweird.f32 %v4894_v16  ;;  %v4404_v63 = vmul.f32 -1.442695, %v2432_v33 }
 0x2d1   : > { %v4898_v46 = vpop.eup %4897  ;;  %v3434_v20 = vsel %vm7743_vm6, %v3433_v51, %v3429_v9  ;;  %v3439_v38 = vmul.f32 %v4894_v16, %v3438_v52  ;;  %vm3456_vm12 = vweird.f32 %v7725_v31  ;;  %v3462_v2 = vand.u32 2147483648, %v7725_v31  ;;  %vm3443_vm10 = vmor %vm3441_vm4, %vm3442_vm3 }
 0x2d2   : > { %v3453_v54 = vsub.f32 1.0, %v3452_v48  ;;  %v7783_v13 = vadd.f32 1.0, %v4898_v46  ;;  %v7786_v58 = vadd.f32 %v3882_v49, %v7679_v29  ;;  %vm7788_vm8 = vcmp.eq.f32.partialorder %v3460_v17, 8.507059e+37 }
 0x2d3   : > { %v3440_v15 = vadd.f32 %v4894_v16, %v3439_v38  ;;  %4903 = vpow2.f32 %v4404_v63  ;;  %v3895_v14 = vmul.f32 %v7089_v42, %v3807_v26  ;;  %v3808_v40 = vmul.f32 %v6886_v23, %v3434_v20 }
 0x2d4   : > { %v7792_v60 = vpop.eup %4899  ;;  %v3454_v3 = vmul.f32 %v7767_v62, %v3453_v54  ;;  %4905 = vrcp.f32 %v7783_v13  ;;  %vm3457_vm11 = vweird.f32 %v7767_v62  ;;  %v2452_v7 = vadd.f32 %v2451_v4, %v6821_v30 }
 0x2d5   : > { %v4902_v29 = vpop.eup %4901  ;;  %v3444_v45 = vsel %vm3443_vm10, %v4894_v16, %v3440_v15  ;;  %v3647_v28 = vmul.f32 %v7792_v60, %v7754_v39  ;;  %v3463_v22 = vor.u32 1.1754944e-38, %v3462_v2  ;;  %v3655_v51 = vand.u32 2147483647, %v7754_v39  ;;  %vm7821_vm14 = vmor %vm3456_vm12, %vm3457_vm11  ;;  %v2538_v15 = vpop.f32.mrf.mxu3 }
 0x2d6   : > { %v3449_v57 = vsel %vm7771_vm7, %v3448_v25, %v3444_v45  ;;  %v3455_v19 = vadd.f32 %v7767_v62, %v3454_v3  ;;  %vm3651_vm13 = vweird.f32 %v7754_v39  ;;  %v3657_v16 = vand.u32 2147483648, %v7754_v39 }
 0x2d7   : > { %v3648_v47 = vsub.f32 1.0, %v3647_v28  ;;  %v7810_v59 = vadd.f32 1.0, %v4902_v29  ;;  %v7813_v56 = vadd.f32 %v7713_v10, %v3895_v14  ;;  %v3896_v18 = vmul.f32 %v7089_v42, %v3808_v40  ;;  %v2454_v28 = vpop.f32.mrf.mxu0 }
 0x2d8   : > { %v3809_v34 = vmul.f32 %v6886_v23, %v3449_v57  ;;  %v2481_v49 = vadd.f32 %v2480_v5, %v6821_v30  ;;  %v3459_v10 = vsel %vm7821_vm14, %v7767_v62, %v3455_v19  ;;  %v4357_v36 = vmul.f32 -1.442695, %v2452_v7 }
 0x2d9   : > { %v4904_v1 = vpop.eup %4903  ;;  %v3649_v52 = vmul.f32 %v7792_v60, %v3648_v47  ;;  %4907 = vrcp.f32 %v7810_v59  ;;  %vm7831_vm0 = vcmp.eq.f32.partialorder %v3655_v51, 8.507059e+37  ;;  %v3670_v31 = vand.u32 2147483647, %v7783_v13  ;;  %v2483_v47 = vpop.f32.mrf.mxu1 }
 0x2da   : > { %v4906_v17 = vpop.eup %4905  ;;  %v3672_v9 = vand.u32 2147483648, %v7783_v13  ;;  %v2510_v25 = vadd.f32 %v2509_v37, %v6821_v30  ;;  %vm3652_vm1 = vweird.f32 %v7792_v60  ;;  %v3658_v48 = vor.u32 1.1754944e-38, %v3657_v16 }
 0x2db   : > { %v3662_v62 = vmul.f32 %v4906_v17, %v7783_v13  ;;  %vm3666_vm2 = vweird.f32 %v7783_v13  ;;  %v3464_v46 = vsel %vm7788_vm8, %v3463_v22, %v3459_v10  ;;  %v3650_v20 = vadd.f32 %v7792_v60, %v3649_v52  ;;  %vm7860_vm6 = vmor %vm3651_vm13, %vm3652_vm1 }
 0x2dc   : > { %v7844_v38 = vadd.f32 1.0, %v4904_v1  ;;  %v4358_v63 = vmul.f32 -1.442695, %v2481_v49  ;;  %v7847_v54 = vadd.f32 %v7734_v27, %v3896_v18  ;;  %v3897_v2 = vmul.f32 %v7089_v42, %v3809_v34 }
 0x2dd   : > { %v3663_v4 = vsub.f32 1.0, %v3662_v62  ;;  %4909 = vpow2.f32 %v4357_v36  ;;  %vm7850_vm15 = vcmp.eq.f32.partialorder %v3670_v31, 8.507059e+37  ;;  %v3673_v40 = vor.u32 1.1754944e-38, %v3672_v9 }
 0x2de   : > { %4911 = vrcp.f32 %v7844_v38  ;;  %v4359_v32 = vmul.f32 -1.442695, %v2510_v25  ;;  %v3810_v29 = vmul.f32 %v6886_v23, %v3464_v46  ;;  %vm3667_vm9 = vweird.f32 %v4906_v17 }
 0x2df   : > { %v4908_v3 = vpop.eup %4907  ;;  %v3664_v45 = vmul.f32 %v4906_v17, %v3663_v4  ;;  %vm3681_vm4 = vweird.f32 %v7810_v59  ;;  %v3654_v7 = vsel %vm7860_vm6, %v7792_v60, %v3650_v20  ;;  %4913 = vpow2.f32 %v4358_v63  ;;  %vm7877_vm5 = vmor %vm3666_vm2, %vm3667_vm9 }
 0x2e0   : > { %v3677_v5 = vmul.f32 %v4908_v3, %v7810_v59  ;;  %v2539_v57 = vadd.f32 %v2538_v15, %v6821_v30  ;;  %v7871_v39 = vadd.f32 %v7763_v43, %v3897_v2  ;;  %v3685_v22 = vand.u32 2147483647, %v7810_v59 }
 0x2e1   : > { %v3665_v19 = vadd.f32 %v4906_v17, %v3664_v45  ;;  %v3687_v51 = vand.u32 2147483648, %v7810_v59  ;;  %4915 = vpow2.f32 %v4359_v32  ;;  %v2455_v30 = vadd.f32 %v2454_v28, %v6836_v12  ;;  %v2512_v59 = vpop.f32.mrf.mxu2 }
 0x2e2   : > { %v3678_v60 = vsub.f32 1.0, %v3677_v5  ;;  %v4360_v37 = vmul.f32 -1.442695, %v2539_v57  ;;  %v3898_v43 = vmul.f32 %v7089_v42, %v3810_v29  ;;  %v3659_v34 = vsel %vm7831_vm0, %v3658_v48, %v3654_v7 }
 0x2e3   : > { %v4910_v18 = vpop.eup %4909  ;;  %v3669_v33 = vsel %vm7877_vm5, %v4906_v17, %v3665_v19  ;;  %vm3682_vm7 = vweird.f32 %v4908_v3  ;;  %v2484_v10 = vadd.f32 %v2483_v47, %v6836_v12  ;;  %vm7892_vm3 = vcmp.eq.f32.partialorder %v3685_v22, 8.507059e+37 }
 0x2e4   : > { %v4912_v13 = vpop.eup %4911  ;;  %v3679_v49 = vmul.f32 %v4908_v3, %v3678_v60  ;;  %v7887_v1 = vadd.f32 1.0, %v4910_v18  ;;  %4917 = vpow2.f32 %v4360_v37  ;;  %v3674_v52 = vsel %vm7850_vm15, %v3673_v40, %v3669_v33  ;;  %vm3683_vm12 = vmor %vm3681_vm4, %vm3682_vm7 }
 0x2e5   : > { %v3692_v26 = vmul.f32 %v4912_v13, %v7844_v38  ;;  %v4373_v31 = vmul.f32 -1.442695, %v2455_v30  ;;  %v4914_v9 = vpop.eup %4913  ;;  %v3823_v17 = vmul.f32 %v6886_v23, %v3659_v34  ;;  %v3688_v48 = vor.u32 1.1754944e-38, %v3687_v51 }
 0x2e6   : > { %v3680_v25 = vadd.f32 %v4908_v3, %v3679_v49  ;;  %4919 = vrcp.f32 %v7887_v1  ;;  %v7900_v62 = vadd.f32 %v7786_v58, %v3898_v43  ;;  %v3700_v20 = vand.u32 2147483647, %v7844_v38 }
 0x2e7   : > { %v3693_v46 = vsub.f32 1.0, %v3692_v26  ;;  %v7906_v63 = vadd.f32 1.0, %v4914_v9  ;;  %v4916_v2 = vpop.eup %4915  ;;  %v3824_v4 = vmul.f32 %v6886_v23, %v3674_v52  ;;  %v3702_v14 = vand.u32 2147483648, %v7844_v38 }
 0x2e8   : > { %v3684_v15 = vsel %vm3683_vm12, %v4908_v3, %v3680_v25  ;;  %v4374_v40 = vmul.f32 -1.442695, %v2484_v10  ;;  %vm3697_vm8 = vweird.f32 %v4912_v13  ;;  %4921 = vpow2.f32 %v4373_v31 }
 0x2e9   : > { %v3689_v58 = vsel %vm7892_vm3, %v3688_v48, %v3684_v15  ;;  %v3694_v32 = vmul.f32 %v4912_v13, %v3693_v46  ;;  %v3911_v27 = vmul.f32 %v7135_v11, %v3823_v17  ;;  %vm3696_vm10 = vweird.f32 %v7844_v38 }
 0x2ea   : > { %v4918_v29 = vpop.eup %4917  ;;  %v3825_v45 = vmul.f32 %v6886_v23, %v3689_v58  ;;  %4923 = vrcp.f32 %v7906_v63  ;;  %vm7916_vm11 = vcmp.eq.f32.partialorder %v3700_v20, 8.507059e+37  ;;  %v2995_v7 = vand.u32 2147483647, %v7887_v1  ;;  %vm3698_vm13 = vmor %vm3696_vm10, %vm3697_vm8 }
 0x2eb   : > { %v3695_v3 = vadd.f32 %v4912_v13, %v3694_v32  ;;  %v7921_v5 = vadd.f32 1.0, %v4916_v2  ;;  %v3912_v19 = vmul.f32 %v7135_v11, %v3824_v4  ;;  %v7924_v22 = vadd.f32 1.0, %v4918_v29 }
 0x2ec   : > { %v4920_v57 = vpop.eup %4919  ;;  %4925 = vpow2.f32 %v4374_v40  ;;  %v2513_v38 = vadd.f32 %v2512_v59, %v6836_v12  ;;  %v3703_v47 = vor.u32 1.1754944e-38, %v3702_v14  ;;  %v2997_v60 = vand.u32 2147483648, %v7887_v1 }
 0x2ed   : > { %v3699_v51 = vsel %vm3698_vm13, %v4912_v13, %v3695_v3  ;;  %v2987_v16 = vmul.f32 %v4920_v57, %v7887_v1  ;;  %v7930_v37 = vadd.f32 %v7813_v56, %v3911_v27  ;;  %v3913_v30 = vmul.f32 %v7135_v11, %v3825_v45 }
 0x2ee   : > { %v3012_v18 = vand.u32 2147483648, %v7906_v63  ;;  %4927 = vrcp.f32 %v7921_v5  ;;  %v4922_v43 = vpop.eup %4921  ;;  %v3704_v34 = vsel %vm7916_vm11, %v3703_v47, %v3699_v51  ;;  %vm2991_vm14 = vweird.f32 %v7887_v1 }
 0x2ef   : > { %v2988_v33 = vsub.f32 1.0, %v2987_v16  ;;  %vm7938_vm0 = vcmp.eq.f32.partialorder %v2995_v7, 8.507059e+37  ;;  %v7945_v56 = vadd.f32 %v7847_v54, %v3912_v19  ;;  %v3010_v10 = vand.u32 2147483647, %v7906_v63  ;;  %v2541_v19 = vpop.f32.mrf.mxu3  ;;  %v2457_v16 = vpop.f32.mrf.mxu0 }
 0x2f0   : > { %v7942_v49 = vpop.eup %4923  ;;  %4929 = vrcp.f32 %v7924_v22  ;;  %v4375_v52 = vmul.f32 -1.442695, %v2513_v38  ;;  %vm2992_vm1 = vweird.f32 %v4920_v57  ;;  %v2998_v26 = vor.u32 1.1754944e-38, %v2997_v60 }
 0x2f1   : > { %v2989_v36 = vmul.f32 %v4920_v57, %v2988_v33  ;;  %v3002_v31 = vmul.f32 %v7942_v49, %v7906_v63  ;;  %v7952_v17 = vadd.f32 %v7871_v39, %v3913_v30  ;;  %v3826_v25 = vmul.f32 %v6886_v23, %v3704_v34  ;;  %vm7961_vm15 = vmor %vm2991_vm14, %vm2992_vm1 }
 0x2f2   : > { %v4926_v9 = vpop.eup %4925  ;;  %vm3006_vm2 = vweird.f32 %v7906_v63  ;;  %v3013_v54 = vor.u32 1.1754944e-38, %v3012_v18  ;;  %v3025_v20 = vand.u32 2147483647, %v7921_v5  ;;  %v7957_v2 = vadd.f32 1.0, %v4922_v43 }
 0x2f3   : > { %v2990_v48 = vadd.f32 %v4920_v57, %v2989_v36  ;;  %v3003_v46 = vsub.f32 1.0, %v3002_v31  ;;  %vm7965_vm6 = vcmp.eq.f32.partialorder %v3010_v10, 8.507059e+37  ;;  %v3027_v14 = vand.u32 2147483648, %v7921_v5 }
 0x2f4   : > { %v4928_v4 = vpop.eup %4927  ;;  %v3042_v40 = vand.u32 2147483648, %v7924_v22  ;;  %v7971_v58 = vadd.f32 1.0, %v4926_v9  ;;  %4931 = vpow2.f32 %v4375_v52  ;;  %vm3021_vm9 = vweird.f32 %v7921_v5 }
 0x2f5   : > { %v2994_v32 = vsel %vm7961_vm15, %v4920_v57, %v2990_v48  ;;  %v3004_v1 = vmul.f32 %v7942_v49, %v3003_v46  ;;  %v3017_v59 = vmul.f32 %v4928_v4, %v7921_v5  ;;  %v3914_v27 = vmul.f32 %v7135_v11, %v3826_v25 }
 0x2f6   : > { %v7978_v29 = vpop.eup %4929  ;;  %vm3007_vm4 = vweird.f32 %v7942_v49  ;;  %v3040_v45 = vand.u32 2147483647, %v7924_v22  ;;  %4933 = vrcp.f32 %v7957_v2  ;;  %v2999_v3 = vsel %vm7938_vm0, %v2998_v26, %v2994_v32 }
 0x2f7   : > { %v3005_v28 = vadd.f32 %v7942_v49, %v3004_v1  ;;  %v3018_v7 = vsub.f32 1.0, %v3017_v59  ;;  %v3032_v57 = vmul.f32 %v7978_v29, %v7924_v22  ;;  %vm3036_vm5 = vweird.f32 %v7924_v22  ;;  %vm7997_vm3 = vmor %vm3006_vm2, %vm3007_vm4  ;;  %v2544_v22 = vpop.f32.mrf.mxu3 }
 0x2f8   : > { %vm7990_vm7 = vcmp.eq.f32.partialorder %v3025_v20, 8.507059e+37  ;;  %v3028_v51 = vor.u32 1.1754944e-38, %v3027_v14  ;;  %v3043_v47 = vor.u32 1.1754944e-38, %v3042_v40  ;;  %4935 = vrcp.f32 %v7971_v58 }
 0x2f9   : > { %v3019_v30 = vmul.f32 %v4928_v4, %v3018_v7  ;;  %vm3022_vm12 = vweird.f32 %v4928_v4  ;;  %v3033_v18 = vsub.f32 1.0, %v3032_v57  ;;  %v3235_v43 = vand.u32 2147483647, %v7957_v2 }
 0x2fa   : > { %v4932_v34 = vpop.eup %4931  ;;  %v8003_v33 = vadd.f32 %v7900_v62, %v3914_v27  ;;  %v3779_v13 = vmul.f32 %v6886_v23, %v2999_v3  ;;  %v3009_v10 = vsel %vm7997_vm3, %v7942_v49, %v3005_v28  ;;  %v2542_v63 = vadd.f32 %v2541_v19, %v6836_v12  ;;  %vm8019_vm11 = vmor %vm3021_vm9, %vm3022_vm12  ;;  %v2486_v27 = vpop.f32.mrf.mxu1 }
 0x2fb   : > { %v3020_v52 = vadd.f32 %v4928_v4, %v3019_v30  ;;  %v3034_v36 = vmul.f32 %v7978_v29, %v3033_v18  ;;  %vm8011_vm8 = vcmp.eq.f32.partialorder %v3040_v45, 8.507059e+37  ;;  %vm3231_vm10 = vweird.f32 %v7957_v2 }
 0x2fc   : > { %v2458_v62 = vadd.f32 %v2457_v16, %v6903_v35  ;;  %v4934_v31 = vpop.eup %4933  ;;  %vm3037_vm13 = vweird.f32 %v7978_v29  ;;  %v3237_v12 = vand.u32 2147483648, %v7957_v2  ;;  %v3250_v49 = vand.u32 2147483647, %v7971_v58 }
 0x2fd   : > { %v8026_v25 = vadd.f32 1.0, %v4932_v34  ;;  %v3014_v48 = vsel %vm7965_vm6, %v3013_v54, %v3009_v10  ;;  %v3024_v46 = vsel %vm8019_vm11, %v4928_v4, %v3020_v52  ;;  %v3035_v5 = vadd.f32 %v7978_v29, %v3034_v36  ;;  %vm8051_vm0 = vmor %vm3036_vm5, %vm3037_vm13 }
 0x2fe   : > { %v3227_v20 = vmul.f32 %v4934_v31, %v7957_v2  ;;  %vm8034_vm14 = vcmp.eq.f32.partialorder %v3235_v43, 8.507059e+37  ;;  %v4936_v14 = vpop.eup %4935  ;;  %v8039_v40 = vmul.f32 %v6953_v41, %v3779_v13  ;;  %v3252_v32 = vand.u32 2147483648, %v7971_v58 }
 0x2ff   : > { %4937 = vrcp.f32 %v8026_v25  ;;  %v4376_v54 = vmul.f32 -1.442695, %v2542_v63  ;;  %v3029_v4 = vsel %vm7990_vm7, %v3028_v51, %v3024_v46  ;;  %v3242_v1 = vmul.f32 %v4936_v14, %v7971_v58  ;;  %v2515_v51 = vpop.f32.mrf.mxu2 }
 0x300   : > { %v3228_v39 = vsub.f32 1.0, %v3227_v20  ;;  %v4389_v59 = vmul.f32 -1.442695, %v2458_v62  ;;  %v3780_v45 = vmul.f32 %v6886_v23, %v3014_v48  ;;  %v3238_v28 = vor.u32 1.1754944e-38, %v3237_v12  ;;  %v2460_v12 = vpop.f32.mrf.mxu0 }
 0x301   : > { %vm3246_vm1 = vweird.f32 %v7971_v58  ;;  %vm8056_vm2 = vcmp.eq.f32.partialorder %v3250_v49, 8.507059e+37  ;;  %v3039_v57 = vsel %vm8051_vm0, %v7978_v29, %v3035_v5  ;;  %vm3232_vm15 = vweird.f32 %v4934_v31 }
 0x302   : > { %v3229_v19 = vmul.f32 %v4934_v31, %v3228_v39  ;;  %v3243_v38 = vsub.f32 1.0, %v3242_v1  ;;  %v3781_v16 = vmul.f32 %v6886_v23, %v3029_v4  ;;  %v3253_v60 = vor.u32 1.1754944e-38, %v3252_v32  ;;  %vm3233_vm9 = vmor %vm3231_vm10, %vm3232_vm15 }
 0x303   : > { %4939 = vpow2.f32 %v4376_v54  ;;  %v2487_v30 = vadd.f32 %v2486_v27, %v6903_v35  ;;  %vm3247_vm6 = vweird.f32 %v4936_v14  ;;  %v3044_v13 = vsel %vm8011_vm8, %v3043_v47, %v3039_v57 }
 0x304   : > { %v3230_v18 = vadd.f32 %v4934_v31, %v3229_v19  ;;  %v3244_v43 = vmul.f32 %v4936_v14, %v3243_v38  ;;  %4941 = vpow2.f32 %v4389_v59  ;;  %v2516_v10 = vadd.f32 %v2515_v51, %v6903_v35  ;;  %vm3248_vm4 = vmor %vm3246_vm1, %vm3247_vm6 }
 0x305   : > { %v4938_v34 = vpop.eup %4937  ;;  %v4390_v29 = vmul.f32 -1.442695, %v2487_v30  ;;  %v2545_v63 = vadd.f32 %v2544_v22, %v6903_v35  ;;  %v3265_v9 = vand.u32 2147483647, %v8026_v25  ;;  %v3782_v26 = vmul.f32 %v6886_v23, %v3044_v13 }
 0x306   : > { %v3234_v52 = vsel %vm3233_vm9, %v4934_v31, %v3230_v18  ;;  %v3245_v36 = vadd.f32 %v4936_v14, %v3244_v43  ;;  %v3257_v62 = vmul.f32 %v4938_v34, %v8026_v25  ;;  %v4391_v2 = vmul.f32 -1.442695, %v2516_v10 }
 0x307   : > { %v3239_v49 = vsel %vm8034_vm14, %v3238_v28, %v3234_v52  ;;  %4943 = vpow2.f32 %v4390_v29  ;;  %v4392_v47 = vmul.f32 -1.442695, %v2545_v63  ;;  %v3267_v31 = vand.u32 2147483648, %v8026_v25  ;;  %v2518_v51 = vpop.f32.mrf.mxu2 }
 0x308   : > { %v3249_v48 = vsel %vm3248_vm4, %v4936_v14, %v3245_v36  ;;  %v3258_v35 = vsub.f32 1.0, %v3257_v62  ;;  %v3795_v5 = vmul.f32 %v6886_v23, %v3239_v49  ;;  %4945 = vpow2.f32 %v4391_v2  ;;  %v2489_v14 = vpop.f32.mrf.mxu1 }
 0x309   : > { %v4940_v46 = vpop.eup %4939  ;;  %v3254_v20 = vsel %vm8056_vm2, %v3253_v60, %v3249_v48  ;;  %v2461_v15 = vadd.f32 %v2460_v12, %v7035_v61  ;;  %vm3262_vm5 = vweird.f32 %v4938_v34  ;;  %v3868_v39 = vmul.f32 %v6953_v41, %v3780_v45 }
 0x30a   : > { %v4942_v58 = vpop.eup %4941  ;;  %v3796_v32 = vmul.f32 %v6886_v23, %v3254_v20  ;;  %v3259_v54 = vmul.f32 %v4938_v34, %v3258_v35  ;;  %v8084_v4 = vadd.f32 1.0, %v4940_v46  ;;  %vm3261_vm7 = vweird.f32 %v8026_v25 }
 0x30b   : > { %v8088_v1 = vadd.f32 1.0, %v4942_v58  ;;  %4947 = vpow2.f32 %v4392_v47  ;;  %v3869_v59 = vmul.f32 %v6953_v41, %v3781_v16  ;;  %v3268_v3 = vor.u32 1.1754944e-38, %v3267_v31  ;;  %vm3263_vm3 = vmor %vm3261_vm7, %vm3262_vm5 }
 0x30c   : > { %v3260_v27 = vadd.f32 %v4938_v34, %v3259_v54  ;;  %4949 = vrcp.f32 %v8084_v4  ;;  %v3883_v7 = vmul.f32 %v6959_v24, %v3795_v5  ;;  %v4405_v57 = vmul.f32 -1.442695, %v2461_v15 }
 0x30d   : > { %v4944_v28 = vpop.eup %4943  ;;  %4951 = vrcp.f32 %v8088_v1  ;;  %v2490_v45 = vadd.f32 %v2489_v14, %v7035_v61  ;;  %v8096_v25 = vmul.f32 %v6953_v41, %v3782_v26  ;;  %v3884_v19 = vmul.f32 %v6959_v24, %v3796_v32 }
 0x30e   : > { %v3264_v38 = vsel %vm3263_vm3, %v4938_v34, %v3260_v27  ;;  %vm3266_vm12 = vcmp.eq.f32.partialorder %v3265_v9, 8.507059e+37  ;;  %v4946_v22 = vpop.eup %4945  ;;  %v3280_v60 = vand.u32 2147483647, %v8084_v4  ;;  %v3282_v30 = vand.u32 2147483648, %v8084_v4  ;;  %v2547_v9 = vpop.f32.mrf.mxu3 }
 0x30f   : > { %v3269_v16 = vsel %vm3266_vm12, %v3268_v3, %v3264_v38  ;;  %v3475_v18 = vand.u32 2147483647, %v8088_v1  ;;  %v3477_v13 = vand.u32 2147483648, %v8088_v1  ;;  %v8104_v29 = vadd.f32 1.0, %v4944_v28 }
 0x310   : > { %v3797_v43 = vmul.f32 %v6886_v23, %v3269_v16  ;;  %v8106_v41 = vadd.f32 1.0, %v4946_v22  ;;  %v8109_v34 = vadd.f32 %v3883_v7, %v8039_v40  ;;  %4953 = vpow2.f32 %v4405_v57 }
 0x311   : > { %v4948_v10 = vpop.eup %4947  ;;  %v4406_v63 = vmul.f32 -1.442695, %v2490_v45  ;;  %v2519_v52 = vadd.f32 %v2518_v51, %v7035_v61  ;;  %v8112_v62 = vadd.f32 %v3884_v19, %v3868_v39  ;;  %vm3276_vm8 = vweird.f32 %v8084_v4 }
 0x312   : > { %v4950_v36 = vpop.eup %4949  ;;  %vm3471_vm10 = vweird.f32 %v8088_v1  ;;  %4955 = vrcp.f32 %v8104_v29  ;;  %v3885_v49 = vmul.f32 %v6959_v24, %v3797_v43  ;;  %vm8119_vm11 = vcmp.eq.f32.partialorder %v3280_v60, 8.507059e+37 }
 0x313   : > { %v4952_v12 = vpop.eup %4951  ;;  %v3272_v40 = vmul.f32 %v4950_v36, %v8084_v4  ;;  %v3283_v47 = vor.u32 1.1754944e-38, %v3282_v30  ;;  %4957 = vrcp.f32 %v8106_v41  ;;  %vm8125_vm13 = vcmp.eq.f32.partialorder %v3475_v18, 8.507059e+37 }
 0x314   : > { %v3467_v26 = vmul.f32 %v4952_v12, %v8088_v1  ;;  %v3478_v35 = vor.u32 1.1754944e-38, %v3477_v13  ;;  %v3492_v31 = vand.u32 2147483648, %v8104_v29  ;;  %v3490_v5 = vand.u32 2147483647, %v8104_v29 }
 0x315   : > { %v3273_v46 = vsub.f32 1.0, %v3272_v40  ;;  %v4407_v20 = vmul.f32 -1.442695, %v2519_v52  ;;  %v2548_v15 = vadd.f32 %v2547_v9, %v7035_v61  ;;  %vm3277_vm14 = vweird.f32 %v4950_v36 }
 0x316   : > { %v3468_v58 = vsub.f32 1.0, %v3467_v26  ;;  %v3505_v32 = vand.u32 2147483647, %v8106_v41  ;;  %v8133_v54 = vadd.f32 1.0, %v4948_v10  ;;  %v4954_v14 = vpop.eup %4953  ;;  %v8135_v39 = vadd.f32 %v3885_v49, %v3869_v59  ;;  %vm3278_vm6 = vmor %vm3276_vm8, %vm3277_vm14 }
 0x317   : > { %v3274_v27 = vmul.f32 %v4950_v36, %v3273_v46  ;;  %vm3472_vm0 = vweird.f32 %v4952_v12  ;;  %vm3486_vm1 = vweird.f32 %v8104_v29  ;;  %4959 = vpow2.f32 %v4406_v63 }
 0x318   : > { %v4956_v3 = vpop.eup %4955  ;;  %v3469_v28 = vmul.f32 %v4952_v12, %v3468_v58  ;;  %v3493_v7 = vor.u32 1.1754944e-38, %v3492_v31  ;;  %vm3501_vm2 = vweird.f32 %v8106_v41  ;;  %4961 = vrcp.f32 %v8133_v54  ;;  %vm3473_vm5 = vmor %vm3471_vm10, %vm3472_vm0 }
 0x319   : > { %v4958_v61 = vpop.eup %4957  ;;  %v3275_v57 = vadd.f32 %v4950_v36, %v3274_v27  ;;  %v3482_v45 = vmul.f32 %v4956_v3, %v8104_v29  ;;  %vm8141_vm15 = vcmp.eq.f32.partialorder %v3490_v5, 8.507059e+37  ;;  %v3507_v59 = vand.u32 2147483648, %v8106_v41 }
 0x31a   : > { %4963 = vpow2.f32 %v4407_v20  ;;  %v3470_v38 = vadd.f32 %v4952_v12, %v3469_v28  ;;  %vm3487_vm9 = vweird.f32 %v4956_v3  ;;  %v3497_v51 = vmul.f32 %v4958_v61, %v8106_v41 }
 0x31b   : > { %vm8150_vm4 = vcmp.eq.f32.partialorder %v3505_v32, 8.507059e+37  ;;  %v4408_v16 = vmul.f32 -1.442695, %v2548_v15  ;;  %v3279_v60 = vsel %vm3278_vm6, %v4950_v36, %v3275_v57  ;;  %v3483_v30 = vsub.f32 1.0, %v3482_v45  ;;  %vm3488_vm8 = vmor %vm3486_vm1, %vm3487_vm9 }
 0x31c   : > { %v3520_v18 = vand.u32 2147483647, %v8133_v54  ;;  %v8158_v43 = vadd.f32 1.0, %v4954_v14  ;;  %v3284_v4 = vsel %vm8119_vm11, %v3283_v47, %v3279_v60  ;;  %v3474_v13 = vsel %vm3473_vm5, %v4952_v12, %v3470_v38 }
 0x31d   : > { %v3498_v10 = vsub.f32 1.0, %v3497_v51  ;;  %v3522_v63 = vand.u32 2147483648, %v8133_v54  ;;  %v4960_v52 = vpop.eup %4959  ;;  %v3798_v9 = vmul.f32 %v6886_v23, %v3284_v4  ;;  %v3479_v36 = vsel %vm8125_vm13, %v3478_v35, %v3474_v13 }
 0x31e   : > { %v3484_v1 = vmul.f32 %v4956_v3, %v3483_v30  ;;  %4965 = vrcp.f32 %v8158_v43  ;;  %v4962_v49 = vpop.eup %4961  ;;  %v3811_v40 = vmul.f32 %v6886_v23, %v3479_v36  ;;  %vm3502_vm7 = vweird.f32 %v4958_v61 }
 0x31f   : > { %v3499_v26 = vmul.f32 %v4958_v61, %v3498_v10  ;;  %v3508_v2 = vor.u32 1.1754944e-38, %v3507_v59  ;;  %v3512_v31 = vmul.f32 %v4962_v49, %v8133_v54  ;;  %vm3516_vm3 = vweird.f32 %v8133_v54  ;;  %vm3503_vm10 = vmor %vm3501_vm2, %vm3502_vm7 }
 0x320   : > { %v4964_v47 = vpop.eup %4963  ;;  %v3485_v12 = vadd.f32 %v4956_v3, %v3484_v1  ;;  %vm8170_vm12 = vcmp.eq.f32.partialorder %v3520_v18, 8.507059e+37  ;;  %v3886_v48 = vmul.f32 %v6959_v24, %v3798_v9  ;;  %v3523_v5 = vor.u32 1.1754944e-38, %v3522_v63 }
 0x321   : > { %v3500_v35 = vadd.f32 %v4958_v61, %v3499_v26  ;;  %v3715_v20 = vand.u32 2147483647, %v8158_v43  ;;  %v3513_v58 = vsub.f32 1.0, %v3512_v31  ;;  %vm3517_vm11 = vweird.f32 %v4962_v49 }
 0x322   : > { %v3489_v15 = vsel %vm3488_vm8, %v4956_v3, %v3485_v12  ;;  %v8181_v32 = vadd.f32 1.0, %v4960_v52  ;;  %v3899_v14 = vmul.f32 %v7089_v42, %v3811_v40  ;;  %v3717_v29 = vand.u32 2147483648, %v8158_v43  ;;  %vm3518_vm0 = vmor %vm3516_vm3, %vm3517_vm11 }
 0x323   : > { %v3494_v24 = vsel %vm8141_vm15, %v3493_v7, %v3489_v15  ;;  %v3504_v27 = vsel %vm3503_vm10, %v4958_v61, %v3500_v35  ;;  %v3514_v41 = vmul.f32 %v4962_v49, %v3513_v58  ;;  %vm3711_vm13 = vweird.f32 %v8158_v43 }
 0x324   : > { %v4966_v28 = vpop.eup %4965  ;;  %v3812_v57 = vmul.f32 %v6886_v23, %v3494_v24  ;;  %v3509_v3 = vsel %vm8150_vm4, %v3508_v2, %v3504_v27  ;;  %4967 = vrcp.f32 %v8181_v32  ;;  %vm8194_vm14 = vcmp.eq.f32.partialorder %v3715_v20, 8.507059e+37 }
 0x325   : > { %v3813_v45 = vmul.f32 %v6886_v23, %v3509_v3  ;;  %v3707_v59 = vmul.f32 %v4966_v28, %v8158_v43  ;;  %v3515_v19 = vadd.f32 %v4962_v49, %v3514_v41  ;;  %v3730_v38 = vand.u32 2147483647, %v8181_v32 }
 0x326   : > { %v3900_v61 = vmul.f32 %v7089_v42, %v3812_v57  ;;  %v3732_v51 = vand.u32 2147483648, %v8181_v32  ;;  %v8205_v30 = vadd.f32 1.0, %v4964_v47  ;;  %4969 = vpow2.f32 %v4408_v16 }
 0x327   : > { %v3901_v22 = vmul.f32 %v7089_v42, %v3813_v45  ;;  %v3708_v60 = vsub.f32 1.0, %v3707_v59  ;;  %v4054_v18 = vadd.f32 %v3886_v48, %v8096_v25  ;;  %v4028_v4 = vadd.f32 %v8109_v34, %v3899_v14 }
 0x328   : > { %v3519_v13 = vsel %vm3518_vm0, %v4962_v49, %v3515_v19  ;;  %v3718_v10 = vor.u32 1.1754944e-38, %v3717_v29  ;;  %vm3712_vm1 = vweird.f32 %v4966_v28  ;;  %4971 = vrcp.f32 %v8205_v30 }
 0x329   : > { %v3524_v63 = vsel %vm8170_vm12, %v3523_v5, %v3519_v13  ;;  %v3709_v52 = vmul.f32 %v4966_v28, %v3708_v60  ;;  %v8213_v54 = vadd.f32 %v8112_v62, %v3900_v61  ;;  %vm3726_vm2 = vweird.f32 %v8181_v32  ;;  %vm3713_vm6 = vmor %vm3711_vm13, %vm3712_vm1 }
 0x32a   : > { %v4968_v9 = vpop.eup %4967  ;;  %v3814_v36 = vmul.f32 %v6886_v23, %v3524_v63  ;;  %v3733_v25 = vor.u32 1.1754944e-38, %v3732_v51  ;;  %v8218_v34 = vadd.f32 %v8135_v39, %v3901_v22  ;;  %vm8221_vm15 = vcmp.eq.f32.partialorder %v3730_v38, 8.507059e+37 }
 0x32b   : > { %v3710_v16 = vadd.f32 %v4966_v28, %v3709_v52  ;;  %v3722_v1 = vmul.f32 %v4968_v9, %v8181_v32  ;;  %v3922_v40 = vrot.slane %v7145_v55, 4  ;;  %v3745_v26 = vand.u32 2147483647, %v8205_v30 }
 0x32c   : > { %v3902_v62 = vmul.f32 %v7089_v42, %v3814_v36  ;;  %v3747_v2 = vand.u32 2147483648, %v8205_v30  ;;  %v3931_v39 = vrot.slane %v7164_v44, 4  ;;  %v4970_v47 = vpop.eup %4969  ;;  %v3940_v48 = vrot.slane %v7182_v0, 4 }
 0x32d   : > { %v3714_v12 = vsel %vm3713_vm6, %v4966_v28, %v3710_v16  ;;  %v3723_v31 = vsub.f32 1.0, %v3722_v1  ;;  %v3923_v46 = vadd.f32 %v3922_v40, %v7145_v55  ;;  %vm3727_vm9 = vweird.f32 %v4968_v9 }
 0x32e   : > { %v3719_v35 = vsel %vm8194_vm14, %v3718_v10, %v3714_v12  ;;  %vm3741_vm4 = vweird.f32 %v8205_v30  ;;  %v8237_v42 = vadd.f32 1.0, %v4970_v47  ;;  %v3932_v43 = vadd.f32 %v3931_v39, %v7164_v44  ;;  %v4972_v5 = vpop.eup %4971  ;;  %vm3728_vm3 = vmor %vm3726_vm2, %vm3727_vm9 }
 0x32f   : > { %v3827_v20 = vmul.f32 %v6886_v23, %v3719_v35  ;;  %v3724_v15 = vmul.f32 %v4968_v9, %v3723_v31  ;;  %v3924_v58 = vrot.slane %v3923_v46, 2  ;;  %v3941_v14 = vadd.f32 %v3940_v48, %v7182_v0 }
 0x330   : > { %v8242_v55 = vadd.f32 %v4054_v18, %v3902_v62  ;;  %v3737_v24 = vmul.f32 %v4972_v5, %v8205_v30  ;;  %vm8245_vm5 = vcmp.eq.f32.partialorder %v3745_v26, 8.507059e+37  ;;  %v3748_v29 = vor.u32 1.1754944e-38, %v3747_v2 }
 0x331   : > { %4973 = vrcp.f32 %v8237_v42  ;;  %v3915_v44 = vmul.f32 %v7135_v11, %v3827_v20  ;;  %v3725_v28 = vadd.f32 %v4968_v9, %v3724_v15  ;;  %vm3742_vm7 = vweird.f32 %v4972_v5 }
 0x332   : > { %v3762_v57 = vand.u32 2147483648, %v8237_v42  ;;  %v3738_v0 = vsub.f32 1.0, %v3737_v24  ;;  %v3925_v3 = vadd.f32 %v3924_v58, %v3923_v46  ;;  %v3933_v41 = vrot.slane %v3932_v43, 2  ;;  %vm3743_vm8 = vmor %vm3741_vm4, %vm3742_vm7 }
 0x333   : > { %v3942_v45 = vrot.slane %v3941_v14, 2  ;;  %v8255_v59 = vadd.f32 %v4028_v4, %v3915_v44  ;;  %v3729_v7 = vsel %vm3728_vm3, %v4968_v9, %v3725_v28  ;;  %v3760_v61 = vand.u32 2147483647, %v8237_v42 }
 0x334   : > { %v3763_v19 = vor.u32 1.1754944e-38, %v3762_v57  ;;  %v3734_v38 = vsel %vm8221_vm15, %v3733_v25, %v3729_v7  ;;  %v3739_v51 = vmul.f32 %v4972_v5, %v3738_v0  ;;  %v3926_v22 = vrot.slane %v3925_v3, 1 }
 0x335   : > { %v3934_v60 = vadd.f32 %v3933_v41, %v3932_v43  ;;  %v3828_v18 = vmul.f32 %v6886_v23, %v3734_v38  ;;  %vm3756_vm12 = vweird.f32 %v8237_v42  ;;  %v3943_v32 = vadd.f32 %v3942_v45, %v3941_v14 }
 0x336   : > { %v3949_v13 = vrot.slane %v7193_v53, 4  ;;  %v3958_v4 = vrot.slane %v7466_v21, 4  ;;  %v3740_v63 = vadd.f32 %v4972_v5, %v3739_v51  ;;  %v8264_v52 = vadd.f32 %v3926_v22, %v3925_v3 }
 0x337   : > { %v4974_v10 = vpop.eup %4973  ;;  %v3935_v9 = vrot.slane %v3934_v60, 1  ;;  %v3967_v36 = vrot.slane %v7474_v6, 4  ;;  %v3916_v25 = vmul.f32 %v7135_v11, %v3828_v18  ;;  %vm8272_vm11 = vcmp.eq.f32.partialorder %v3760_v61, 8.507059e+37 }
 0x338   : > { %v3752_v16 = vmul.f32 %v4974_v10, %v8237_v42  ;;  %vm3757_vm10 = vweird.f32 %v4974_v10  ;;  %v3944_v49 = vrot.slane %v3943_v32, 1  ;;  %v3744_v40 = vsel %vm3743_vm8, %v4972_v5, %v3740_v63 }
 0x339   : > { %v8276_v62 = vadd.f32 %v3935_v9, %v3934_v60  ;;  %v3950_v26 = vadd.f32 %v3949_v13, %v7193_v53  ;;  %v3959_v2 = vadd.f32 %v3958_v4, %v7466_v21  ;;  %v8281_v39 = vadd.f32 %v8213_v54, %v3916_v25  ;;  %vm3758_vm13 = vmor %vm3756_vm12, %vm3757_vm10 }
 0x33a   : > { %v3749_v30 = vsel %vm8245_vm5, %v3748_v29, %v3744_v40  ;;  %v3753_v47 = vsub.f32 1.0, %v3752_v16  ;;  %v8285_v12 = vadd.f32 %v3944_v49, %v3943_v32  ;;  %v3968_v35 = vadd.f32 %v3967_v36, %v7474_v6 }
 0x33b   : > { %v3829_v31 = vmul.f32 %v6886_v23, %v3749_v30  ;;  %v3951_v46 = vrot.slane %v3950_v26, 2  ;;  %v3960_v48 = vrot.slane %v3959_v2, 2  ;;  %v3976_v53 = vrot.slane %v7495_v8, 4 }
 0x33c   : > { %v3754_v43 = vmul.f32 %v4974_v10, %v3753_v47  ;;  %v3985_v21 = vrot.slane %v7527_v50, 4  ;;  %v3994_v54 = vrot.slane %v7930_v37, 4  ;;  %v3969_v58 = vrot.slane %v3968_v35, 2 }
 0x33d   : > { %v3917_v5 = vmul.f32 %v7135_v11, %v3829_v31  ;;  %v3952_v20 = vadd.f32 %v3951_v46, %v3950_v26  ;;  %v3961_v15 = vadd.f32 %v3960_v48, %v3959_v2  ;;  %v3977_v24 = vadd.f32 %v3976_v53, %v7495_v8 }
 0x33e   : > { %v3755_v14 = vadd.f32 %v4974_v10, %v3754_v43  ;;  %v3986_v27 = vadd.f32 %v3985_v21, %v7527_v50  ;;  %v3995_v29 = vadd.f32 %v3994_v54, %v7930_v37  ;;  %v3970_v57 = vadd.f32 %v3969_v58, %v3968_v35 }
 0x33f   : > { %v4047_v6 = vadd.f32 %v8218_v34, %v3917_v5  ;;  %v3953_v44 = vrot.slane %v3952_v20, 1  ;;  %v3962_v28 = vrot.slane %v3961_v15, 1  ;;  %v3978_v3 = vrot.slane %v3977_v24, 2 }
 0x340   : > { %v3759_v0 = vsel %vm3758_vm13, %v4974_v10, %v3755_v14  ;;  %v3987_v41 = vrot.slane %v3986_v27, 2  ;;  %v3996_v45 = vrot.slane %v3995_v29, 2  ;;  %v3971_v7 = vrot.slane %v3970_v57, 1 }
 0x341   : > { %v3764_v8 = vsel %vm8272_vm11, %v3763_v19, %v3759_v0  ;;  %v3954_v50 = vadd.f32 %v3953_v44, %v3952_v20  ;;  %v3963_v37 = vadd.f32 %v3962_v28, %v3961_v15  ;;  %v3979_v61 = vadd.f32 %v3978_v3, %v3977_v24 }
 0x342   : > { %v3830_v34 = vmul.f32 %v6886_v23, %v3764_v8  ;;  %v3988_v42 = vadd.f32 %v3987_v41, %v3986_v27  ;;  %v3997_v38 = vadd.f32 %v3996_v45, %v3995_v29  ;;  %v3972_v51 = vadd.f32 %v3971_v7, %v3970_v57 }
 0x343   : > { %v4003_v22 = vrot.slane %v7945_v56, 4  ;;  %v4012_v60 = vrot.slane %v7952_v17, 4  ;;  %v4021_v18 = vrot.slane %v8003_v33, 4  ;;  %v3980_v13 = vrot.slane %v3979_v61, 1 }
 0x344   : > { %v3918_v32 = vmul.f32 %v7135_v11, %v3830_v34  ;;  %v3989_v4 = vrot.slane %v3988_v42, 1  ;;  %v3998_v19 = vrot.slane %v3997_v38, 1  ;;  %v4030_v9 = vrot.slane %v8255_v59, 4 }
 0x345   : > { %v4004_v10 = vadd.f32 %v4003_v22, %v7945_v56  ;;  %v4013_v23 = vadd.f32 %v4012_v60, %v7952_v17  ;;  %v4022_v63 = vadd.f32 %v4021_v18, %v8003_v33  ;;  %v3981_v25 = vadd.f32 %v3980_v13, %v3979_v61 }
 0x346   : > { %v4056_v36 = vadd.f32 %v8242_v55, %v3918_v32  ;;  %v3990_v16 = vadd.f32 %v3989_v4, %v3988_v42  ;;  %v3999_v1 = vadd.f32 %v3998_v19, %v3997_v38  ;;  %v4031_v26 = vadd.f32 %v4030_v9, %v8255_v59 }
 0x347   : > { %v4005_v49 = vrot.slane %v4004_v10, 2  ;;  %v4014_v40 = vrot.slane %v4013_v23, 2  ;;  %v4023_v11 = vrot.slane %v4022_v63, 2  ;;  %v4039_v2 = vrot.slane %v8281_v39, 4 }
 0x348   : > { %v4048_v30 = vrot.slane %v4047_v6, 4  ;;  %v4057_v56 = vrot.slane %v4056_v36, 4  ;;  %v4063_v47 = vstv %s8300_s13  ;;  %v4032_v46 = vrot.slane %v4031_v26, 2 }
 0x349   : > { %v4006_v17 = vadd.f32 %v4005_v49, %v4004_v10  ;;  %v4015_v31 = vadd.f32 %v4014_v40, %v4013_v23  ;;  %v4024_v33 = vadd.f32 %v4023_v11, %v4022_v63  ;;  %v4040_v48 = vadd.f32 %v4039_v2, %v8281_v39 }
 0x34a   : > { %v4049_v55 = vadd.f32 %v4048_v30, %v4047_v6  ;;  %v4058_v35 = vadd.f32 %v4057_v56, %v4056_v36  ;;  %v4064_v43 = vadd.f32 %v4063_v47, %v8264_v52  ;;  %v4033_v5 = vadd.f32 %v4032_v46, %v4031_v26 }
 0x34b   : > { %v4007_v53 = vrot.slane %v4006_v17, 1  ;;  %v4016_v21 = vrot.slane %v4015_v31, 1  ;;  %v4025_v54 = vrot.slane %v4024_v33, 1  ;;  %v4041_v59 = vrot.slane %v4040_v48, 2 }
 0x34c   : > { %v4050_v20 = vrot.slane %v4049_v55, 2  ;;  %v4059_v15 = vrot.slane %v4058_v35, 2  ;;  %v4065_v58 = vadd.f32 %v4063_v47, %v8276_v62  ;;  %v4034_v29 = vrot.slane %v4033_v5, 1 }
 0x34d   : > { %v4008_v14 = vadd.f32 %v4007_v53, %v4006_v17  ;;  %v4017_v24 = vadd.f32 %v4016_v21, %v4015_v31  ;;  %v4026_v27 = vadd.f32 %v4025_v54, %v4024_v33  ;;  %v4042_v44 = vadd.f32 %v4041_v59, %v4040_v48 }
 0x34e   : > { %v4051_v39 = vadd.f32 %v4050_v20, %v4049_v55  ;;  %v4060_v6 = vadd.f32 %v4059_v15, %v4058_v35  ;;  %v4066_v28 = vadd.f32 %v4063_v47, %v8285_v12  ;;  %v4035_v52 = vadd.f32 %v4034_v29, %v4033_v5 }
 0x34f   : > { %v4067_v57 = vadd.f32 %v4063_v47, %v3954_v50  ;;  %v4068_v0 = vadd.f32 %v4063_v47, %v3963_v37  ;;  %v4069_v3 = vadd.f32 %v4063_v47, %v3972_v51  ;;  %v4043_v41 = vrot.slane %v4042_v44, 1 }
 0x350   : > { %v4052_v45 = vrot.slane %v4051_v39, 1  ;;  %v4061_v8 = vrot.slane %v4060_v6, 1  ;;  %v4070_v7 = vadd.f32 %v4063_v47, %v3981_v25  ;;  %v4071_v34 = vadd.f32 %v4063_v47, %v3990_v16 }
 0x351   : > { %v4072_v62 = vadd.f32 %v4063_v47, %v3999_v1  ;;  %v4073_v61 = vadd.f32 %v4063_v47, %v4008_v14  ;;  %v4074_v42 = vadd.f32 %v4063_v47, %v4017_v24  ;;  %v4044_v38 = vadd.f32 %v4043_v41, %v4042_v44 }
 0x352   : > { %v4053_v22 = vadd.f32 %v4052_v45, %v4051_v39  ;;  %v4062_v60 = vadd.f32 %v4061_v8, %v4060_v6  ;;  %v4075_v18 = vadd.f32 %v4063_v47, %v4026_v27  ;;  %v4076_v32 = vadd.f32 %v4063_v47, %v4035_v52 }
 0x353   : > { %v4096_v12 = vrot.slane %v4065_v58, 7  ;;  %v4097_v50 = vrot.slane %v4066_v28, 6  ;;  %v4098_v37 = vrot.slane %v4067_v57, 5  ;;  %v4077_v51 = vadd.f32 %v4063_v47, %v4044_v38 }
 0x354   : > { %v4078_v13 = vadd.f32 %v4063_v47, %v4053_v22  ;;  %v4079_v4 = vadd.f32 %v4063_v47, %v4062_v60  ;;  %v4099_v19 = vrot.slane %v4068_v0, 4  ;;  %v4100_v10 = vrot.slane %v4069_v3, 3 }
 0x355   : > { %v4101_v23 = vrot.slane %v4070_v7, 2  ;;  %v4102_v63 = vrot.slane %v4071_v34, 1  ;;  %v4103_v9 = vrot.slane %v4073_v61, 7  ;;  %v4104_v36 = vrot.slane %v4074_v42, 6 }
 0x356   : > { %v4105_v25 = vrot.slane %v4075_v18, 5  ;;  %v4106_v16 = vrot.slane %v4076_v32, 4  ;;  %v4107_v1 = vrot.slane %v4077_v51, 3  ;;  %v4108_v49 = vrot.slane %v4078_v13, 2 }
 0x357   : > { %v4109_v40 = vrot.slane %v4079_v4, 1  ;;  %vm4110_vm14 = vcmask 1040384   ;;  %vm4112_vm0 = vcmask 1042434   ;;  %vm4114_vm1 = vcmask 1041408  }
 0x358   : > { %v4111_v11 = vsel %vm4110_vm14, %v4064_v43, %v4096_v12  ;;  %v4113_v26 = vsel %vm4112_vm0, %v4097_v50, %v4098_v37  ;;  %vm4116_vm2 = vcmask 1044484   ;;  %vm4118_vm15 = vcmask 1046534  }
 0x359   : > { %v4115_v2 = vsel %vm4114_vm1, %v4111_v11, %v4113_v26  ;;  %v4117_v30 = vsel %vm4116_vm2, %v4099_v19, %v4100_v10  ;;  %vm4120_vm6 = vcmask 1045508   ;;  %v4119_v56 = vsel %vm4118_vm15, %v4101_v23, %v4102_v63 }
 0x35a   : > { %vm4122_vm9 = vcmask 1043456   ;;  %v4125_v47 = vsel %vm4112_vm0, %v4104_v36, %v4105_v25  ;;  %v4121_v17 = vsel %vm4120_vm6, %v4117_v30, %v4119_v56  ;;  %v4124_v31 = vsel %vm4110_vm14, %v4072_v62, %v4103_v9 }
 0x35b   : > { %v4127_v33 = vsel %vm4116_vm2, %v4106_v16, %v4107_v1  ;;  %v4128_v46 = vsel %vm4118_vm15, %v4108_v49, %v4109_v40  ;;  %v4123_v48 = vsel %vm4122_vm9, %v4115_v2, %v4121_v17  ;;  %v4126_v55 = vsel %vm4114_vm1, %v4124_v31, %v4125_v47 }
 0x35c   : > { %v4129_v35 = vsel %vm4120_vm6, %v4127_v33, %v4128_v46  ;;  %4133 = vst [vmem:[%s329_s25] sm:$0xff] %v4123_v48 }
 0x35d   : > { %v4130_v43 = vsel %vm4122_vm9, %v4126_v55, %v4129_v35 }
 0x35e   : > { %4134 = vst [vmem:[%s329_s25 + $0x8] sm:$0xff] %v4130_v43 }
 0x35f   : > { %5006 = shalt.err (!%p5003_p3)
}
 0x360   : > { %4413 = dma.vmem_to_hbm [thread:$0]  (%p5141_p5), %s4149_s27, 256, %s4151_s28, %s4136_s26  }
 0x361 PF: > { %p4419_p4 = scmp.ge.s32.totalorder %s5041_s18, 2  ;;  %s4162_s14 = sand.u32 1, %s5029_s15  }
 0x362   : > { %s4163_s1 = scalar_lea.sflag [#allocation6], %s4162_s14 }
 0x363   : > { %p4416_p7 = pnand %p4419_p4, %p5145_p6 }
 0x365   : > { %p4417_p8 = pneg %p4416_p7 }
 0x367   : > { %5024 = dma.done.wait (%p4417_p8), %s4163_s1, 256  }
 0x368   : > { %5026 = vsyncadd (%p4417_p8), %s4163_s1, 4294967040  ;;  %p22_p9 = scmp.ge.s32.totalorder %s5127_s2, 4   ;;  %s8639_s15 = smov %s5033_s16 }
 0x369   : > { %s8640_s16 = smov %s5037_s17  ;;  %s8641_s17 = smov %s5139_s21 }
 0x36a   : > { %s8642_s18 = smov %s5127_s2  ;;  %24 = sbr.rel (!%p22_p9) target bundleno = 7 (0x7), region = 91 }
 0x36f   :  { %4169 = vsyncpa [#allocation6], 1 }
 0x370   :  { %4171 = vsyncpa [#allocation6 + $0x1], 1 }

</bundles_post_ra>
